<compile_context>
chip_gen: v7x
topology: tpu7x:2x2x1
jax: 0.10.0
libtpu: 0.0.40
codegen_flags: <defaults>
</compile_context>

<pallas_src>
import numpy as np
import jax
import jax.numpy as jnp
from jax import lax
from jax.experimental import pallas as pl
from jax.experimental.pallas import tpu as pltpu

EPS = 1e-10

# ---------------------------------------------------------------------------
# lgamma(z) for z > 0: shift-by-4 recurrence + 3-term Stirling series.
#   lgamma(z) = lgamma(z + 4) - log(z (z+1) (z+2) (z+3))
#   lgamma(t) ~ (t - 0.5) log t - t + 0.5 log(2 pi)
#               + 1/(12 t) - 1/(360 t^3) + 1/(1260 t^5)        (t >= 4)
# Series truncation error < 4e-8; the 4-term rising product stays inside the
# f32 range for z up to ~4e9, covering any representable count.
# ---------------------------------------------------------------------------
_HALF_LOG_2PI = 0.9189385332046727
_S1 = 1.0 / 12.0
_S2 = -1.0 / 360.0
_S3 = 1.0 / 1260.0


def _lgamma(z):
    zp1 = z + 1.0
    zp2 = z + 2.0
    zp3 = z + 3.0
    t = z + 4.0
    prod = (z * zp1) * (zp2 * zp3)
    r = 1.0 / t                       # exact divide: EUP recip + cheap refine
    r2 = r * r
    corr = r * (_S1 + r2 * (_S2 + r2 * _S3))
    return ((z + 3.5) * jnp.log(t) - t + _HALF_LOG_2PI + corr) - jnp.log(prod)


def _nb_loss_kernel(x_ref, mean_ref, disp_ref, sf_ref, out_ref):
    tb, tg = x_ref.shape
    rows = tb // 8          # tb is always a multiple of 8 (wrapper pads/asserts)

    def chunk(k, acc):
        r = pl.multiple_of(k * 8, 8)
        x = x_ref[pl.ds(r, 8), :].astype(jnp.float32)
        m = mean_ref[pl.ds(r, 8), :].astype(jnp.float32)
        d = disp_ref[pl.ds(r, 8), :].astype(jnp.float32)
        sf = sf_ref[pl.ds(r, 8), :].astype(jnp.float32)        # (8, 1)
        m = m * sf                                             # lane broadcast
        d_eps = d + EPS
        term = (
            _lgamma(d_eps)
            + _lgamma(x + 1.0)
            - _lgamma(x + d_eps)
            + (d + x) * jnp.log(1.0 + m / d_eps)
            + x * (jnp.log(d_eps) - jnp.log(m + EPS))
        )
        return acc + term

    # Bounded live ranges: each chunk only keeps (8, tg) temporaries alive.
    # Fully unroll short loops for cross-iteration overlap; unroll-by-4 on
    # longer ones to keep code size / compile time bounded.
    unroll = rows if rows <= 8 else (4 if rows % 4 == 0 else 1)
    acc = lax.fori_loop(0, rows, chunk, jnp.zeros((8, tg), jnp.float32),
                        unroll=unroll)
    out_ref[...] = acc


def _round_up(n, m):
    return ((n + m - 1) // m) * m


def _pick_tile(n, step, cap):
    """Largest multiple of `step` that divides n and is <= cap (n % step == 0)."""
    d = max(step, (min(n, cap) // step) * step)
    while d > step and n % d != 0:
        d -= step
    return d


def nb_loss(x, mean, disp, scale_factor, *, tb=None, tg=None):
    """Pallas TPU implementation of nb_loss.forward.  Returns a scalar f32."""
    B, G = x.shape
    sf2d = scale_factor.reshape(B, 1)

    # Pad to (8, 128)-aligned shapes.  Padding uses x=0, mean=0, disp=1, sf=1,
    # whose NB term is lgamma(1) == 0 (up to ~1e-7 approximation error), so
    # tiles stay bounded and output stores stay lane-dense for any shape.
    B_pad, G_pad = _round_up(B, 8), _round_up(G, 128)
    pb, pg = B_pad - B, G_pad - G
    if pb or pg:
        x = jnp.pad(x, ((0, pb), (0, pg)))
        mean = jnp.pad(mean, ((0, pb), (0, pg)))
        disp = jnp.pad(disp, ((0, pb), (0, pg)), constant_values=1.0)
        sf2d = jnp.pad(sf2d, ((0, pb), (0, 0)), constant_values=1.0)

    # tg <= 512 bounds per-chunk vreg pressure; tb <= 512 keeps ~1 MiB f32
    # input blocks (per-step overhead amortized, VMEM-safe on v5e/v6e/v7x).
    if tg is None:
        tg = 512 if G_pad % 512 == 0 else (256 if G_pad % 256 == 0 else 128)
    if tb is None:
        tb = _pick_tile(B_pad, 8, 512)
        # v7x megacore: make sure there are >= 2 "parallel" grid blocks.
        if (B_pad // tb) * (G_pad // tg) < 2 and B_pad >= 16:
            tb = _pick_tile(B_pad, 8, B_pad // 2)

    assert B_pad % tb == 0 and tb % 8 == 0, (B_pad, tb)
    assert G_pad % tg == 0 and tg % 128 == 0, (G_pad, tg)

    nb, ng = B_pad // tb, G_pad // tg

    row_spec = pl.BlockSpec((tb, tg), lambda i, j: (i, j))
    sf_spec = pl.BlockSpec((tb, 1), lambda i, j: (i, 0))
    out_spec = pl.BlockSpec((8, tg), lambda i, j: (i, j))

    itemsize = jnp.dtype(x.dtype).itemsize
    cost = pl.CostEstimate(
        flops=int(90 * B_pad * G_pad),
        transcendentals=int(13 * B_pad * G_pad),
        bytes_accessed=int(3 * B_pad * G_pad * itemsize + nb * 8 * G_pad * 4),
    )

    partials = pl.pallas_call(
        _nb_loss_kernel,
        out_shape=jax.ShapeDtypeStruct((nb * 8, G_pad), jnp.float32),
        grid_spec=pltpu.PrefetchScalarGridSpec(
            num_scalar_prefetch=0,
            grid=(nb, ng),
            in_specs=[row_spec, row_spec, row_spec, sf_spec],
            out_specs=out_spec,
        ),
        compiler_params=pltpu.CompilerParams(
            dimension_semantics=("parallel", "parallel"),
            # Explicit override: v5e's scoped-VMEM default is only 16 MiB.
            vmem_limit_bytes=32 * 1024 * 1024,
        ),
        cost_estimate=cost,
    )(x, mean, disp, sf2d)

    # Small lane-dense (nb*8, G_pad) partial-sum slab; final reduction in XLA.
    return jnp.sum(partials)


def _nb_loss_ref(x, mean, disp, scale_factor):
    # Pure-JAX reference mirroring the PyTorch forward.
    sf = scale_factor[:, None]
    mean = mean * sf
    lg = jax.scipy.special.gammaln
    n_log_nb = (
        lg(disp + EPS)
        + lg(x + 1.0)
        - lg(x + disp + EPS)
        + (disp + x) * jnp.log(1.0 + mean / (disp + EPS))
        + x * (jnp.log(disp + EPS) - jnp.log(mean + EPS))
    )
    return jnp.sum(n_log_nb)


if __name__ == "__main__":
    key = jax.random.PRNGKey(0)

    def make_inputs(k, B, G, max_count):
        kx, km, kd, ks = jax.random.split(k, 4)
        xx = jnp.floor(max_count * jax.random.uniform(kx, (B, G), jnp.float32))
        mm = jax.nn.softplus(jax.random.normal(km, (B, G), jnp.float32)) + 0.1
        dd = jax.nn.softplus(jax.random.normal(kd, (B, G), jnp.float32)) + 0.1
        ss = jax.random.uniform(ks, (B,), jnp.float32, minval=0.5, maxval=2.0)
        return xx, mm, dd, ss

    k1, k2 = jax.random.split(key)

    # Aligned shape: auto-tiled (grid split for v7x) and an explicit grid.
    x, mean, disp, sf = make_inputs(k1, 64, 512, 6.0)
    ref = jax.block_until_ready(_nb_loss_ref(x, mean, disp, sf))
    out_auto = jax.block_until_ready(nb_loss(x, mean, disp, sf))
    out_tiled = jax.block_until_ready(nb_loss(x, mean, disp, sf, tb=16, tg=128))
    np.testing.assert_allclose(np.asarray(out_auto), np.asarray(ref), rtol=5e-4)
    np.testing.assert_allclose(np.asarray(out_tiled), np.asarray(ref), rtol=5e-4)

    # Non-aligned shape (exercises the padding path) with larger counts.
    x2, mean2, disp2, sf2 = make_inputs(k2, 13, 200, 50.0)
    ref2 = jax.block_until_ready(_nb_loss_ref(x2, mean2, disp2, sf2))
    out2 = jax.block_until_ready(nb_loss(x2, mean2, disp2, sf2))
    np.testing.assert_allclose(np.asarray(out2), np.asarray(ref2), rtol=5e-4)

    print("KERNEL_OK")
</pallas_src>

<mosaic_0001>
module attributes {stable_mosaic.version = 11 : i64} {
  func.func @_nb_loss_kernel(%arg0: i32, %arg1: i32, %arg2: memref<32x512xf32, #tpu.memory_space<vmem>>, %arg3: memref<32x512xf32, #tpu.memory_space<vmem>>, %arg4: memref<32x512xf32, #tpu.memory_space<vmem>>, %arg5: memref<32x1xf32, #tpu.memory_space<vmem>>, %arg6: memref<8x512xf32, #tpu.memory_space<vmem>>) attributes {dimension_semantics = [#tpu.dimension_semantics<parallel>, #tpu.dimension_semantics<parallel>], iteration_bounds = array<i64: 2, 1>, scalar_prefetch = 0 : i64, scratch_operands = 0 : i64, tpu.core_type = #tpu.core_type<tc>, window_params = [{transform_indices = @transform_0, window_bounds = array<i64: 32, 512>}, {transform_indices = @transform_1, window_bounds = array<i64: 32, 512>}, {transform_indices = @transform_2, window_bounds = array<i64: 32, 512>}, {transform_indices = @transform_3, window_bounds = array<i64: 32, 1>}, {transform_indices = @transform_4, window_bounds = array<i64: 8, 512>}]} {
    %cst = arith.constant 0.000000e+00 : f32
    %0 = vector.broadcast %cst : f32 to vector<8x512xf32>
    %c0_i32 = arith.constant 0 : i32
    %c8_i32 = arith.constant 8 : i32
    %1 = arith.muli %c0_i32, %c8_i32 : i32
    %2 = tpu.assume_multiple %1, 8 : i32
    %3 = arith.index_cast %2 : i32 to index
    %c0 = arith.constant 0 : index
    %4 = vector.load %arg2[%3, %c0] : memref<32x512xf32, #tpu.memory_space<vmem>>, vector<8x512xf32>
    %5 = arith.index_cast %2 : i32 to index
    %c0_0 = arith.constant 0 : index
    %6 = vector.load %arg3[%5, %c0_0] : memref<32x512xf32, #tpu.memory_space<vmem>>, vector<8x512xf32>
    %7 = arith.index_cast %2 : i32 to index
    %c0_1 = arith.constant 0 : index
    %8 = vector.load %arg4[%7, %c0_1] : memref<32x512xf32, #tpu.memory_space<vmem>>, vector<8x512xf32>
    %9 = arith.index_cast %2 : i32 to index
    %c0_2 = arith.constant 0 : index
    %10 = vector.load %arg5[%9, %c0_2] : memref<32x1xf32, #tpu.memory_space<vmem>>, vector<8x1xf32>
    %11 = vector.broadcast %10 : vector<8x1xf32> to vector<8x512xf32>
    %12 = arith.mulf %6, %11 : vector<8x512xf32>
    %cst_3 = arith.constant 1.000000e-10 : f32
    %13 = vector.broadcast %cst_3 : f32 to vector<8x512xf32>
    %14 = arith.addf %8, %13 : vector<8x512xf32>
    %cst_4 = arith.constant 1.000000e+00 : f32
    %15 = vector.broadcast %cst_4 : f32 to vector<8x512xf32>
    %16 = arith.addf %14, %15 : vector<8x512xf32>
    %cst_5 = arith.constant 2.000000e+00 : f32
    %17 = vector.broadcast %cst_5 : f32 to vector<8x512xf32>
    %18 = arith.addf %14, %17 : vector<8x512xf32>
    %cst_6 = arith.constant 3.000000e+00 : f32
    %19 = vector.broadcast %cst_6 : f32 to vector<8x512xf32>
    %20 = arith.addf %14, %19 : vector<8x512xf32>
    %cst_7 = arith.constant 4.000000e+00 : f32
    %21 = vector.broadcast %cst_7 : f32 to vector<8x512xf32>
    %22 = arith.addf %14, %21 : vector<8x512xf32>
    %23 = arith.mulf %14, %16 : vector<8x512xf32>
    %24 = arith.mulf %18, %20 : vector<8x512xf32>
    %25 = arith.mulf %23, %24 : vector<8x512xf32>
    %cst_8 = arith.constant 1.000000e+00 : f32
    %26 = vector.broadcast %cst_8 : f32 to vector<8x512xf32>
    %27 = arith.divf %26, %22 : vector<8x512xf32>
    %28 = arith.mulf %27, %27 : vector<8x512xf32>
    %cst_9 = arith.constant 7.93650805E-4 : f32
    %29 = vector.broadcast %cst_9 : f32 to vector<8x512xf32>
    %30 = arith.mulf %28, %29 : vector<8x512xf32>
    %cst_10 = arith.constant -0.00277777785 : f32
    %31 = vector.broadcast %cst_10 : f32 to vector<8x512xf32>
    %32 = arith.addf %31, %30 : vector<8x512xf32>
    %33 = arith.mulf %28, %32 : vector<8x512xf32>
    %cst_11 = arith.constant 0.0833333358 : f32
    %34 = vector.broadcast %cst_11 : f32 to vector<8x512xf32>
    %35 = arith.addf %34, %33 : vector<8x512xf32>
    %36 = arith.mulf %27, %35 : vector<8x512xf32>
    %cst_12 = arith.constant 3.500000e+00 : f32
    %37 = vector.broadcast %cst_12 : f32 to vector<8x512xf32>
    %38 = arith.addf %14, %37 : vector<8x512xf32>
    %39 = math.log %22 : vector<8x512xf32>
    %40 = arith.mulf %38, %39 : vector<8x512xf32>
    %41 = arith.subf %40, %22 : vector<8x512xf32>
    %cst_13 = arith.constant 0.918938517 : f32
    %42 = vector.broadcast %cst_13 : f32 to vector<8x512xf32>
    %43 = arith.addf %41, %42 : vector<8x512xf32>
    %44 = arith.addf %43, %36 : vector<8x512xf32>
    %45 = math.log %25 : vector<8x512xf32>
    %46 = arith.subf %44, %45 : vector<8x512xf32>
    %cst_14 = arith.constant 1.000000e+00 : f32
    %47 = vector.broadcast %cst_14 : f32 to vector<8x512xf32>
    %48 = arith.addf %4, %47 : vector<8x512xf32>
    %cst_15 = arith.constant 1.000000e+00 : f32
    %49 = vector.broadcast %cst_15 : f32 to vector<8x512xf32>
    %50 = arith.addf %48, %49 : vector<8x512xf32>
    %cst_16 = arith.constant 2.000000e+00 : f32
    %51 = vector.broadcast %cst_16 : f32 to vector<8x512xf32>
    %52 = arith.addf %48, %51 : vector<8x512xf32>
    %cst_17 = arith.constant 3.000000e+00 : f32
    %53 = vector.broadcast %cst_17 : f32 to vector<8x512xf32>
    %54 = arith.addf %48, %53 : vector<8x512xf32>
    %cst_18 = arith.constant 4.000000e+00 : f32
    %55 = vector.broadcast %cst_18 : f32 to vector<8x512xf32>
    %56 = arith.addf %48, %55 : vector<8x512xf32>
    %57 = arith.mulf %48, %50 : vector<8x512xf32>
    %58 = arith.mulf %52, %54 : vector<8x512xf32>
    %59 = arith.mulf %57, %58 : vector<8x512xf32>
    %cst_19 = arith.constant 1.000000e+00 : f32
    %60 = vector.broadcast %cst_19 : f32 to vector<8x512xf32>
    %61 = arith.divf %60, %56 : vector<8x512xf32>
    %62 = arith.mulf %61, %61 : vector<8x512xf32>
    %cst_20 = arith.constant 7.93650805E-4 : f32
    %63 = vector.broadcast %cst_20 : f32 to vector<8x512xf32>
    %64 = arith.mulf %62, %63 : vector<8x512xf32>
    %cst_21 = arith.constant -0.00277777785 : f32
    %65 = vector.broadcast %cst_21 : f32 to vector<8x512xf32>
    %66 = arith.addf %65, %64 : vector<8x512xf32>
    %67 = arith.mulf %62, %66 : vector<8x512xf32>
    %cst_22 = arith.constant 0.0833333358 : f32
    %68 = vector.broadcast %cst_22 : f32 to vector<8x512xf32>
    %69 = arith.addf %68, %67 : vector<8x512xf32>
    %70 = arith.mulf %61, %69 : vector<8x512xf32>
    %cst_23 = arith.constant 3.500000e+00 : f32
    %71 = vector.broadcast %cst_23 : f32 to vector<8x512xf32>
    %72 = arith.addf %48, %71 : vector<8x512xf32>
    %73 = math.log %56 : vector<8x512xf32>
    %74 = arith.mulf %72, %73 : vector<8x512xf32>
    %75 = arith.subf %74, %56 : vector<8x512xf32>
    %cst_24 = arith.constant 0.918938517 : f32
    %76 = vector.broadcast %cst_24 : f32 to vector<8x512xf32>
    %77 = arith.addf %75, %76 : vector<8x512xf32>
    %78 = arith.addf %77, %70 : vector<8x512xf32>
    %79 = math.log %59 : vector<8x512xf32>
    %80 = arith.subf %78, %79 : vector<8x512xf32>
    %81 = arith.addf %46, %80 : vector<8x512xf32>
    %82 = arith.addf %4, %14 : vector<8x512xf32>
    %cst_25 = arith.constant 1.000000e+00 : f32
    %83 = vector.broadcast %cst_25 : f32 to vector<8x512xf32>
    %84 = arith.addf %82, %83 : vector<8x512xf32>
    %cst_26 = arith.constant 2.000000e+00 : f32
    %85 = vector.broadcast %cst_26 : f32 to vector<8x512xf32>
    %86 = arith.addf %82, %85 : vector<8x512xf32>
    %cst_27 = arith.constant 3.000000e+00 : f32
    %87 = vector.broadcast %cst_27 : f32 to vector<8x512xf32>
    %88 = arith.addf %82, %87 : vector<8x512xf32>
    %cst_28 = arith.constant 4.000000e+00 : f32
    %89 = vector.broadcast %cst_28 : f32 to vector<8x512xf32>
    %90 = arith.addf %82, %89 : vector<8x512xf32>
    %91 = arith.mulf %82, %84 : vector<8x512xf32>
    %92 = arith.mulf %86, %88 : vector<8x512xf32>
    %93 = arith.mulf %91, %92 : vector<8x512xf32>
    %cst_29 = arith.constant 1.000000e+00 : f32
    %94 = vector.broadcast %cst_29 : f32 to vector<8x512xf32>
    %95 = arith.divf %94, %90 : vector<8x512xf32>
    %96 = arith.mulf %95, %95 : vector<8x512xf32>
    %cst_30 = arith.constant 7.93650805E-4 : f32
    %97 = vector.broadcast %cst_30 : f32 to vector<8x512xf32>
    %98 = arith.mulf %96, %97 : vector<8x512xf32>
    %cst_31 = arith.constant -0.00277777785 : f32
    %99 = vector.broadcast %cst_31 : f32 to vector<8x512xf32>
    %100 = arith.addf %99, %98 : vector<8x512xf32>
    %101 = arith.mulf %96, %100 : vector<8x512xf32>
    %cst_32 = arith.constant 0.0833333358 : f32
    %102 = vector.broadcast %cst_32 : f32 to vector<8x512xf32>
    %103 = arith.addf %102, %101 : vector<8x512xf32>
    %104 = arith.mulf %95, %103 : vector<8x512xf32>
    %cst_33 = arith.constant 3.500000e+00 : f32
    %105 = vector.broadcast %cst_33 : f32 to vector<8x512xf32>
    %106 = arith.addf %82, %105 : vector<8x512xf32>
    %107 = math.log %90 : vector<8x512xf32>
    %108 = arith.mulf %106, %107 : vector<8x512xf32>
    %109 = arith.subf %108, %90 : vector<8x512xf32>
    %cst_34 = arith.constant 0.918938517 : f32
    %110 = vector.broadcast %cst_34 : f32 to vector<8x512xf32>
    %111 = arith.addf %109, %110 : vector<8x512xf32>
    %112 = arith.addf %111, %104 : vector<8x512xf32>
    %113 = math.log %93 : vector<8x512xf32>
    %114 = arith.subf %112, %113 : vector<8x512xf32>
    %115 = arith.subf %81, %114 : vector<8x512xf32>
    %116 = arith.addf %8, %4 : vector<8x512xf32>
    %117 = arith.divf %12, %14 : vector<8x512xf32>
    %cst_35 = arith.constant 1.000000e+00 : f32
    %118 = vector.broadcast %cst_35 : f32 to vector<8x512xf32>
    %119 = arith.addf %118, %117 : vector<8x512xf32>
    %120 = math.log %119 : vector<8x512xf32>
    %121 = arith.mulf %116, %120 : vector<8x512xf32>
    %122 = arith.addf %115, %121 : vector<8x512xf32>
    %123 = math.log %14 : vector<8x512xf32>
    %cst_36 = arith.constant 1.000000e-10 : f32
    %124 = vector.broadcast %cst_36 : f32 to vector<8x512xf32>
    %125 = arith.addf %12, %124 : vector<8x512xf32>
    %126 = math.log %125 : vector<8x512xf32>
    %127 = arith.subf %123, %126 : vector<8x512xf32>
    %128 = arith.mulf %4, %127 : vector<8x512xf32>
    %129 = arith.addf %122, %128 : vector<8x512xf32>
    %130 = arith.addf %0, %129 : vector<8x512xf32>
    %c1_i32 = arith.constant 1 : i32
    %c8_i32_37 = arith.constant 8 : i32
    %131 = arith.muli %c1_i32, %c8_i32_37 : i32
    %132 = tpu.assume_multiple %131, 8 : i32
    %133 = arith.index_cast %132 : i32 to index
    %c0_38 = arith.constant 0 : index
    %134 = vector.load %arg2[%133, %c0_38] : memref<32x512xf32, #tpu.memory_space<vmem>>, vector<8x512xf32>
    %135 = arith.index_cast %132 : i32 to index
    %c0_39 = arith.constant 0 : index
    %136 = vector.load %arg3[%135, %c0_39] : memref<32x512xf32, #tpu.memory_space<vmem>>, vector<8x512xf32>
    %137 = arith.index_cast %132 : i32 to index
    %c0_40 = arith.constant 0 : index
    %138 = vector.load %arg4[%137, %c0_40] : memref<32x512xf32, #tpu.memory_space<vmem>>, vector<8x512xf32>
    %139 = arith.index_cast %132 : i32 to index
    %c0_41 = arith.constant 0 : index
    %140 = vector.load %arg5[%139, %c0_41] : memref<32x1xf32, #tpu.memory_space<vmem>>, vector<8x1xf32>
    %141 = vector.broadcast %140 : vector<8x1xf32> to vector<8x512xf32>
    %142 = arith.mulf %136, %141 : vector<8x512xf32>
    %cst_42 = arith.constant 1.000000e-10 : f32
    %143 = vector.broadcast %cst_42 : f32 to vector<8x512xf32>
    %144 = arith.addf %138, %143 : vector<8x512xf32>
    %cst_43 = arith.constant 1.000000e+00 : f32
    %145 = vector.broadcast %cst_43 : f32 to vector<8x512xf32>
    %146 = arith.addf %144, %145 : vector<8x512xf32>
    %cst_44 = arith.constant 2.000000e+00 : f32
    %147 = vector.broadcast %cst_44 : f32 to vector<8x512xf32>
    %148 = arith.addf %144, %147 : vector<8x512xf32>
    %cst_45 = arith.constant 3.000000e+00 : f32
    %149 = vector.broadcast %cst_45 : f32 to vector<8x512xf32>
    %150 = arith.addf %144, %149 : vector<8x512xf32>
    %cst_46 = arith.constant 4.000000e+00 : f32
    %151 = vector.broadcast %cst_46 : f32 to vector<8x512xf32>
    %152 = arith.addf %144, %151 : vector<8x512xf32>
    %153 = arith.mulf %144, %146 : vector<8x512xf32>
    %154 = arith.mulf %148, %150 : vector<8x512xf32>
    %155 = arith.mulf %153, %154 : vector<8x512xf32>
    %cst_47 = arith.constant 1.000000e+00 : f32
    %156 = vector.broadcast %cst_47 : f32 to vector<8x512xf32>
    %157 = arith.divf %156, %152 : vector<8x512xf32>
    %158 = arith.mulf %157, %157 : vector<8x512xf32>
    %cst_48 = arith.constant 7.93650805E-4 : f32
    %159 = vector.broadcast %cst_48 : f32 to vector<8x512xf32>
    %160 = arith.mulf %158, %159 : vector<8x512xf32>
    %cst_49 = arith.constant -0.00277777785 : f32
    %161 = vector.broadcast %cst_49 : f32 to vector<8x512xf32>
    %162 = arith.addf %161, %160 : vector<8x512xf32>
    %163 = arith.mulf %158, %162 : vector<8x512xf32>
    %cst_50 = arith.constant 0.0833333358 : f32
    %164 = vector.broadcast %cst_50 : f32 to vector<8x512xf32>
    %165 = arith.addf %164, %163 : vector<8x512xf32>
    %166 = arith.mulf %157, %165 : vector<8x512xf32>
    %cst_51 = arith.constant 3.500000e+00 : f32
    %167 = vector.broadcast %cst_51 : f32 to vector<8x512xf32>
    %168 = arith.addf %144, %167 : vector<8x512xf32>
    %169 = math.log %152 : vector<8x512xf32>
    %170 = arith.mulf %168, %169 : vector<8x512xf32>
    %171 = arith.subf %170, %152 : vector<8x512xf32>
    %cst_52 = arith.constant 0.918938517 : f32
    %172 = vector.broadcast %cst_52 : f32 to vector<8x512xf32>
    %173 = arith.addf %171, %172 : vector<8x512xf32>
    %174 = arith.addf %173, %166 : vector<8x512xf32>
    %175 = math.log %155 : vector<8x512xf32>
    %176 = arith.subf %174, %175 : vector<8x512xf32>
    %cst_53 = arith.constant 1.000000e+00 : f32
    %177 = vector.broadcast %cst_53 : f32 to vector<8x512xf32>
    %178 = arith.addf %134, %177 : vector<8x512xf32>
    %cst_54 = arith.constant 1.000000e+00 : f32
    %179 = vector.broadcast %cst_54 : f32 to vector<8x512xf32>
    %180 = arith.addf %178, %179 : vector<8x512xf32>
    %cst_55 = arith.constant 2.000000e+00 : f32
    %181 = vector.broadcast %cst_55 : f32 to vector<8x512xf32>
    %182 = arith.addf %178, %181 : vector<8x512xf32>
    %cst_56 = arith.constant 3.000000e+00 : f32
    %183 = vector.broadcast %cst_56 : f32 to vector<8x512xf32>
    %184 = arith.addf %178, %183 : vector<8x512xf32>
    %cst_57 = arith.constant 4.000000e+00 : f32
    %185 = vector.broadcast %cst_57 : f32 to vector<8x512xf32>
    %186 = arith.addf %178, %185 : vector<8x512xf32>
    %187 = arith.mulf %178, %180 : vector<8x512xf32>
    %188 = arith.mulf %182, %184 : vector<8x512xf32>
    %189 = arith.mulf %187, %188 : vector<8x512xf32>
    %cst_58 = arith.constant 1.000000e+00 : f32
    %190 = vector.broadcast %cst_58 : f32 to vector<8x512xf32>
    %191 = arith.divf %190, %186 : vector<8x512xf32>
    %192 = arith.mulf %191, %191 : vector<8x512xf32>
    %cst_59 = arith.constant 7.93650805E-4 : f32
    %193 = vector.broadcast %cst_59 : f32 to vector<8x512xf32>
    %194 = arith.mulf %192, %193 : vector<8x512xf32>
    %cst_60 = arith.constant -0.00277777785 : f32
    %195 = vector.broadcast %cst_60 : f32 to vector<8x512xf32>
    %196 = arith.addf %195, %194 : vector<8x512xf32>
    %197 = arith.mulf %192, %196 : vector<8x512xf32>
    %cst_61 = arith.constant 0.0833333358 : f32
    %198 = vector.broadcast %cst_61 : f32 to vector<8x512xf32>
    %199 = arith.addf %198, %197 : vector<8x512xf32>
    %200 = arith.mulf %191, %199 : vector<8x512xf32>
    %cst_62 = arith.constant 3.500000e+00 : f32
    %201 = vector.broadcast %cst_62 : f32 to vector<8x512xf32>
    %202 = arith.addf %178, %201 : vector<8x512xf32>
    %203 = math.log %186 : vector<8x512xf32>
    %204 = arith.mulf %202, %203 : vector<8x512xf32>
    %205 = arith.subf %204, %186 : vector<8x512xf32>
    %cst_63 = arith.constant 0.918938517 : f32
    %206 = vector.broadcast %cst_63 : f32 to vector<8x512xf32>
    %207 = arith.addf %205, %206 : vector<8x512xf32>
    %208 = arith.addf %207, %200 : vector<8x512xf32>
    %209 = math.log %189 : vector<8x512xf32>
    %210 = arith.subf %208, %209 : vector<8x512xf32>
    %211 = arith.addf %176, %210 : vector<8x512xf32>
    %212 = arith.addf %134, %144 : vector<8x512xf32>
    %cst_64 = arith.constant 1.000000e+00 : f32
    %213 = vector.broadcast %cst_64 : f32 to vector<8x512xf32>
    %214 = arith.addf %212, %213 : vector<8x512xf32>
    %cst_65 = arith.constant 2.000000e+00 : f32
    %215 = vector.broadcast %cst_65 : f32 to vector<8x512xf32>
    %216 = arith.addf %212, %215 : vector<8x512xf32>
    %cst_66 = arith.constant 3.000000e+00 : f32
    %217 = vector.broadcast %cst_66 : f32 to vector<8x512xf32>
    %218 = arith.addf %212, %217 : vector<8x512xf32>
    %cst_67 = arith.constant 4.000000e+00 : f32
    %219 = vector.broadcast %cst_67 : f32 to vector<8x512xf32>
    %220 = arith.addf %212, %219 : vector<8x512xf32>
    %221 = arith.mulf %212, %214 : vector<8x512xf32>
    %222 = arith.mulf %216, %218 : vector<8x512xf32>
    %223 = arith.mulf %221, %222 : vector<8x512xf32>
    %cst_68 = arith.constant 1.000000e+00 : f32
    %224 = vector.broadcast %cst_68 : f32 to vector<8x512xf32>
    %225 = arith.divf %224, %220 : vector<8x512xf32>
    %226 = arith.mulf %225, %225 : vector<8x512xf32>
    %cst_69 = arith.constant 7.93650805E-4 : f32
    %227 = vector.broadcast %cst_69 : f32 to vector<8x512xf32>
    %228 = arith.mulf %226, %227 : vector<8x512xf32>
    %cst_70 = arith.constant -0.00277777785 : f32
    %229 = vector.broadcast %cst_70 : f32 to vector<8x512xf32>
    %230 = arith.addf %229, %228 : vector<8x512xf32>
    %231 = arith.mulf %226, %230 : vector<8x512xf32>
    %cst_71 = arith.constant 0.0833333358 : f32
    %232 = vector.broadcast %cst_71 : f32 to vector<8x512xf32>
    %233 = arith.addf %232, %231 : vector<8x512xf32>
    %234 = arith.mulf %225, %233 : vector<8x512xf32>
    %cst_72 = arith.constant 3.500000e+00 : f32
    %235 = vector.broadcast %cst_72 : f32 to vector<8x512xf32>
    %236 = arith.addf %212, %235 : vector<8x512xf32>
    %237 = math.log %220 : vector<8x512xf32>
    %238 = arith.mulf %236, %237 : vector<8x512xf32>
    %239 = arith.subf %238, %220 : vector<8x512xf32>
    %cst_73 = arith.constant 0.918938517 : f32
    %240 = vector.broadcast %cst_73 : f32 to vector<8x512xf32>
    %241 = arith.addf %239, %240 : vector<8x512xf32>
    %242 = arith.addf %241, %234 : vector<8x512xf32>
    %243 = math.log %223 : vector<8x512xf32>
    %244 = arith.subf %242, %243 : vector<8x512xf32>
    %245 = arith.subf %211, %244 : vector<8x512xf32>
    %246 = arith.addf %138, %134 : vector<8x512xf32>
    %247 = arith.divf %142, %144 : vector<8x512xf32>
    %cst_74 = arith.constant 1.000000e+00 : f32
    %248 = vector.broadcast %cst_74 : f32 to vector<8x512xf32>
    %249 = arith.addf %248, %247 : vector<8x512xf32>
    %250 = math.log %249 : vector<8x512xf32>
    %251 = arith.mulf %246, %250 : vector<8x512xf32>
    %252 = arith.addf %245, %251 : vector<8x512xf32>
    %253 = math.log %144 : vector<8x512xf32>
    %cst_75 = arith.constant 1.000000e-10 : f32
    %254 = vector.broadcast %cst_75 : f32 to vector<8x512xf32>
    %255 = arith.addf %142, %254 : vector<8x512xf32>
    %256 = math.log %255 : vector<8x512xf32>
    %257 = arith.subf %253, %256 : vector<8x512xf32>
    %258 = arith.mulf %134, %257 : vector<8x512xf32>
    %259 = arith.addf %252, %258 : vector<8x512xf32>
    %260 = arith.addf %130, %259 : vector<8x512xf32>
    %c2_i32 = arith.constant 2 : i32
    %c8_i32_76 = arith.constant 8 : i32
    %261 = arith.muli %c2_i32, %c8_i32_76 : i32
    %262 = tpu.assume_multiple %261, 8 : i32
    %263 = arith.index_cast %262 : i32 to index
    %c0_77 = arith.constant 0 : index
    %264 = vector.load %arg2[%263, %c0_77] : memref<32x512xf32, #tpu.memory_space<vmem>>, vector<8x512xf32>
    %265 = arith.index_cast %262 : i32 to index
    %c0_78 = arith.constant 0 : index
    %266 = vector.load %arg3[%265, %c0_78] : memref<32x512xf32, #tpu.memory_space<vmem>>, vector<8x512xf32>
    %267 = arith.index_cast %262 : i32 to index
    %c0_79 = arith.constant 0 : index
    %268 = vector.load %arg4[%267, %c0_79] : memref<32x512xf32, #tpu.memory_space<vmem>>, vector<8x512xf32>
    %269 = arith.index_cast %262 : i32 to index
    %c0_80 = arith.constant 0 : index
    %270 = vector.load %arg5[%269, %c0_80] : memref<32x1xf32, #tpu.memory_space<vmem>>, vector<8x1xf32>
    %271 = vector.broadcast %270 : vector<8x1xf32> to vector<8x512xf32>
    %272 = arith.mulf %266, %271 : vector<8x512xf32>
    %cst_81 = arith.constant 1.000000e-10 : f32
    %273 = vector.broadcast %cst_81 : f32 to vector<8x512xf32>
    %274 = arith.addf %268, %273 : vector<8x512xf32>
    %cst_82 = arith.constant 1.000000e+00 : f32
    %275 = vector.broadcast %cst_82 : f32 to vector<8x512xf32>
    %276 = arith.addf %274, %275 : vector<8x512xf32>
    %cst_83 = arith.constant 2.000000e+00 : f32
    %277 = vector.broadcast %cst_83 : f32 to vector<8x512xf32>
    %278 = arith.addf %274, %277 : vector<8x512xf32>
    %cst_84 = arith.constant 3.000000e+00 : f32
    %279 = vector.broadcast %cst_84 : f32 to vector<8x512xf32>
    %280 = arith.addf %274, %279 : vector<8x512xf32>
    %cst_85 = arith.constant 4.000000e+00 : f32
    %281 = vector.broadcast %cst_85 : f32 to vector<8x512xf32>
    %282 = arith.addf %274, %281 : vector<8x512xf32>
    %283 = arith.mulf %274, %276 : vector<8x512xf32>
    %284 = arith.mulf %278, %280 : vector<8x512xf32>
    %285 = arith.mulf %283, %284 : vector<8x512xf32>
    %cst_86 = arith.constant 1.000000e+00 : f32
    %286 = vector.broadcast %cst_86 : f32 to vector<8x512xf32>
    %287 = arith.divf %286, %282 : vector<8x512xf32>
    %288 = arith.mulf %287, %287 : vector<8x512xf32>
    %cst_87 = arith.constant 7.93650805E-4 : f32
    %289 = vector.broadcast %cst_87 : f32 to vector<8x512xf32>
    %290 = arith.mulf %288, %289 : vector<8x512xf32>
    %cst_88 = arith.constant -0.00277777785 : f32
    %291 = vector.broadcast %cst_88 : f32 to vector<8x512xf32>
    %292 = arith.addf %291, %290 : vector<8x512xf32>
    %293 = arith.mulf %288, %292 : vector<8x512xf32>
    %cst_89 = arith.constant 0.0833333358 : f32
    %294 = vector.broadcast %cst_89 : f32 to vector<8x512xf32>
    %295 = arith.addf %294, %293 : vector<8x512xf32>
    %296 = arith.mulf %287, %295 : vector<8x512xf32>
    %cst_90 = arith.constant 3.500000e+00 : f32
    %297 = vector.broadcast %cst_90 : f32 to vector<8x512xf32>
    %298 = arith.addf %274, %297 : vector<8x512xf32>
    %299 = math.log %282 : vector<8x512xf32>
    %300 = arith.mulf %298, %299 : vector<8x512xf32>
    %301 = arith.subf %300, %282 : vector<8x512xf32>
    %cst_91 = arith.constant 0.918938517 : f32
    %302 = vector.broadcast %cst_91 : f32 to vector<8x512xf32>
    %303 = arith.addf %301, %302 : vector<8x512xf32>
    %304 = arith.addf %303, %296 : vector<8x512xf32>
    %305 = math.log %285 : vector<8x512xf32>
    %306 = arith.subf %304, %305 : vector<8x512xf32>
    %cst_92 = arith.constant 1.000000e+00 : f32
    %307 = vector.broadcast %cst_92 : f32 to vector<8x512xf32>
    %308 = arith.addf %264, %307 : vector<8x512xf32>
    %cst_93 = arith.constant 1.000000e+00 : f32
    %309 = vector.broadcast %cst_93 : f32 to vector<8x512xf32>
    %310 = arith.addf %308, %309 : vector<8x512xf32>
    %cst_94 = arith.constant 2.000000e+00 : f32
    %311 = vector.broadcast %cst_94 : f32 to vector<8x512xf32>
    %312 = arith.addf %308, %311 : vector<8x512xf32>
    %cst_95 = arith.constant 3.000000e+00 : f32
    %313 = vector.broadcast %cst_95 : f32 to vector<8x512xf32>
    %314 = arith.addf %308, %313 : vector<8x512xf32>
    %cst_96 = arith.constant 4.000000e+00 : f32
    %315 = vector.broadcast %cst_96 : f32 to vector<8x512xf32>
    %316 = arith.addf %308, %315 : vector<8x512xf32>
    %317 = arith.mulf %308, %310 : vector<8x512xf32>
    %318 = arith.mulf %312, %314 : vector<8x512xf32>
    %319 = arith.mulf %317, %318 : vector<8x512xf32>
    %cst_97 = arith.constant 1.000000e+00 : f32
    %320 = vector.broadcast %cst_97 : f32 to vector<8x512xf32>
    %321 = arith.divf %320, %316 : vector<8x512xf32>
    %322 = arith.mulf %321, %321 : vector<8x512xf32>
    %cst_98 = arith.constant 7.93650805E-4 : f32
    %323 = vector.broadcast %cst_98 : f32 to vector<8x512xf32>
    %324 = arith.mulf %322, %323 : vector<8x512xf32>
    %cst_99 = arith.constant -0.00277777785 : f32
    %325 = vector.broadcast %cst_99 : f32 to vector<8x512xf32>
    %326 = arith.addf %325, %324 : vector<8x512xf32>
    %327 = arith.mulf %322, %326 : vector<8x512xf32>
    %cst_100 = arith.constant 0.0833333358 : f32
    %328 = vector.broadcast %cst_100 : f32 to vector<8x512xf32>
    %329 = arith.addf %328, %327 : vector<8x512xf32>
    %330 = arith.mulf %321, %329 : vector<8x512xf32>
    %cst_101 = arith.constant 3.500000e+00 : f32
    %331 = vector.broadcast %cst_101 : f32 to vector<8x512xf32>
    %332 = arith.addf %308, %331 : vector<8x512xf32>
    %333 = math.log %316 : vector<8x512xf32>
    %334 = arith.mulf %332, %333 : vector<8x512xf32>
    %335 = arith.subf %334, %316 : vector<8x512xf32>
    %cst_102 = arith.constant 0.918938517 : f32
    %336 = vector.broadcast %cst_102 : f32 to vector<8x512xf32>
    %337 = arith.addf %335, %336 : vector<8x512xf32>
    %338 = arith.addf %337, %330 : vector<8x512xf32>
    %339 = math.log %319 : vector<8x512xf32>
    %340 = arith.subf %338, %339 : vector<8x512xf32>
    %341 = arith.addf %306, %340 : vector<8x512xf32>
    %342 = arith.addf %264, %274 : vector<8x512xf32>
    %cst_103 = arith.constant 1.000000e+00 : f32
    %343 = vector.broadcast %cst_103 : f32 to vector<8x512xf32>
    %344 = arith.addf %342, %343 : vector<8x512xf32>
    %cst_104 = arith.constant 2.000000e+00 : f32
    %345 = vector.broadcast %cst_104 : f32 to vector<8x512xf32>
    %346 = arith.addf %342, %345 : vector<8x512xf32>
    %cst_105 = arith.constant 3.000000e+00 : f32
    %347 = vector.broadcast %cst_105 : f32 to vector<8x512xf32>
    %348 = arith.addf %342, %347 : vector<8x512xf32>
    %cst_106 = arith.constant 4.000000e+00 : f32
    %349 = vector.broadcast %cst_106 : f32 to vector<8x512xf32>
    %350 = arith.addf %342, %349 : vector<8x512xf32>
    %351 = arith.mulf %342, %344 : vector<8x512xf32>
    %352 = arith.mulf %346, %348 : vector<8x512xf32>
    %353 = arith.mulf %351, %352 : vector<8x512xf32>
    %cst_107 = arith.constant 1.000000e+00 : f32
    %354 = vector.broadcast %cst_107 : f32 to vector<8x512xf32>
    %355 = arith.divf %354, %350 : vector<8x512xf32>
    %356 = arith.mulf %355, %355 : vector<8x512xf32>
    %cst_108 = arith.constant 7.93650805E-4 : f32
    %357 = vector.broadcast %cst_108 : f32 to vector<8x512xf32>
    %358 = arith.mulf %356, %357 : vector<8x512xf32>
    %cst_109 = arith.constant -0.00277777785 : f32
    %359 = vector.broadcast %cst_109 : f32 to vector<8x512xf32>
    %360 = arith.addf %359, %358 : vector<8x512xf32>
    %361 = arith.mulf %356, %360 : vector<8x512xf32>
    %cst_110 = arith.constant 0.0833333358 : f32
    %362 = vector.broadcast %cst_110 : f32 to vector<8x512xf32>
    %363 = arith.addf %362, %361 : vector<8x512xf32>
    %364 = arith.mulf %355, %363 : vector<8x512xf32>
    %cst_111 = arith.constant 3.500000e+00 : f32
    %365 = vector.broadcast %cst_111 : f32 to vector<8x512xf32>
    %366 = arith.addf %342, %365 : vector<8x512xf32>
    %367 = math.log %350 : vector<8x512xf32>
    %368 = arith.mulf %366, %367 : vector<8x512xf32>
    %369 = arith.subf %368, %350 : vector<8x512xf32>
    %cst_112 = arith.constant 0.918938517 : f32
    %370 = vector.broadcast %cst_112 : f32 to vector<8x512xf32>
    %371 = arith.addf %369, %370 : vector<8x512xf32>
    %372 = arith.addf %371, %364 : vector<8x512xf32>
    %373 = math.log %353 : vector<8x512xf32>
    %374 = arith.subf %372, %373 : vector<8x512xf32>
    %375 = arith.subf %341, %374 : vector<8x512xf32>
    %376 = arith.addf %268, %264 : vector<8x512xf32>
    %377 = arith.divf %272, %274 : vector<8x512xf32>
    %cst_113 = arith.constant 1.000000e+00 : f32
    %378 = vector.broadcast %cst_113 : f32 to vector<8x512xf32>
    %379 = arith.addf %378, %377 : vector<8x512xf32>
    %380 = math.log %379 : vector<8x512xf32>
    %381 = arith.mulf %376, %380 : vector<8x512xf32>
    %382 = arith.addf %375, %381 : vector<8x512xf32>
    %383 = math.log %274 : vector<8x512xf32>
    %cst_114 = arith.constant 1.000000e-10 : f32
    %384 = vector.broadcast %cst_114 : f32 to vector<8x512xf32>
    %385 = arith.addf %272, %384 : vector<8x512xf32>
    %386 = math.log %385 : vector<8x512xf32>
    %387 = arith.subf %383, %386 : vector<8x512xf32>
    %388 = arith.mulf %264, %387 : vector<8x512xf32>
    %389 = arith.addf %382, %388 : vector<8x512xf32>
    %390 = arith.addf %260, %389 : vector<8x512xf32>
    %c3_i32 = arith.constant 3 : i32
    %c8_i32_115 = arith.constant 8 : i32
    %391 = arith.muli %c3_i32, %c8_i32_115 : i32
    %392 = tpu.assume_multiple %391, 8 : i32
    %393 = arith.index_cast %392 : i32 to index
    %c0_116 = arith.constant 0 : index
    %394 = vector.load %arg2[%393, %c0_116] : memref<32x512xf32, #tpu.memory_space<vmem>>, vector<8x512xf32>
    %395 = arith.index_cast %392 : i32 to index
    %c0_117 = arith.constant 0 : index
    %396 = vector.load %arg3[%395, %c0_117] : memref<32x512xf32, #tpu.memory_space<vmem>>, vector<8x512xf32>
    %397 = arith.index_cast %392 : i32 to index
    %c0_118 = arith.constant 0 : index
    %398 = vector.load %arg4[%397, %c0_118] : memref<32x512xf32, #tpu.memory_space<vmem>>, vector<8x512xf32>
    %399 = arith.index_cast %392 : i32 to index
    %c0_119 = arith.constant 0 : index
    %400 = vector.load %arg5[%399, %c0_119] : memref<32x1xf32, #tpu.memory_space<vmem>>, vector<8x1xf32>
    %401 = vector.broadcast %400 : vector<8x1xf32> to vector<8x512xf32>
    %402 = arith.mulf %396, %401 : vector<8x512xf32>
    %cst_120 = arith.constant 1.000000e-10 : f32
    %403 = vector.broadcast %cst_120 : f32 to vector<8x512xf32>
    %404 = arith.addf %398, %403 : vector<8x512xf32>
    %cst_121 = arith.constant 1.000000e+00 : f32
    %405 = vector.broadcast %cst_121 : f32 to vector<8x512xf32>
    %406 = arith.addf %404, %405 : vector<8x512xf32>
    %cst_122 = arith.constant 2.000000e+00 : f32
    %407 = vector.broadcast %cst_122 : f32 to vector<8x512xf32>
    %408 = arith.addf %404, %407 : vector<8x512xf32>
    %cst_123 = arith.constant 3.000000e+00 : f32
    %409 = vector.broadcast %cst_123 : f32 to vector<8x512xf32>
    %410 = arith.addf %404, %409 : vector<8x512xf32>
    %cst_124 = arith.constant 4.000000e+00 : f32
    %411 = vector.broadcast %cst_124 : f32 to vector<8x512xf32>
    %412 = arith.addf %404, %411 : vector<8x512xf32>
    %413 = arith.mulf %404, %406 : vector<8x512xf32>
    %414 = arith.mulf %408, %410 : vector<8x512xf32>
    %415 = arith.mulf %413, %414 : vector<8x512xf32>
    %cst_125 = arith.constant 1.000000e+00 : f32
    %416 = vector.broadcast %cst_125 : f32 to vector<8x512xf32>
    %417 = arith.divf %416, %412 : vector<8x512xf32>
    %418 = arith.mulf %417, %417 : vector<8x512xf32>
    %cst_126 = arith.constant 7.93650805E-4 : f32
    %419 = vector.broadcast %cst_126 : f32 to vector<8x512xf32>
    %420 = arith.mulf %418, %419 : vector<8x512xf32>
    %cst_127 = arith.constant -0.00277777785 : f32
    %421 = vector.broadcast %cst_127 : f32 to vector<8x512xf32>
    %422 = arith.addf %421, %420 : vector<8x512xf32>
    %423 = arith.mulf %418, %422 : vector<8x512xf32>
    %cst_128 = arith.constant 0.0833333358 : f32
    %424 = vector.broadcast %cst_128 : f32 to vector<8x512xf32>
    %425 = arith.addf %424, %423 : vector<8x512xf32>
    %426 = arith.mulf %417, %425 : vector<8x512xf32>
    %cst_129 = arith.constant 3.500000e+00 : f32
    %427 = vector.broadcast %cst_129 : f32 to vector<8x512xf32>
    %428 = arith.addf %404, %427 : vector<8x512xf32>
    %429 = math.log %412 : vector<8x512xf32>
    %430 = arith.mulf %428, %429 : vector<8x512xf32>
    %431 = arith.subf %430, %412 : vector<8x512xf32>
    %cst_130 = arith.constant 0.918938517 : f32
    %432 = vector.broadcast %cst_130 : f32 to vector<8x512xf32>
    %433 = arith.addf %431, %432 : vector<8x512xf32>
    %434 = arith.addf %433, %426 : vector<8x512xf32>
    %435 = math.log %415 : vector<8x512xf32>
    %436 = arith.subf %434, %435 : vector<8x512xf32>
    %cst_131 = arith.constant 1.000000e+00 : f32
    %437 = vector.broadcast %cst_131 : f32 to vector<8x512xf32>
    %438 = arith.addf %394, %437 : vector<8x512xf32>
    %cst_132 = arith.constant 1.000000e+00 : f32
    %439 = vector.broadcast %cst_132 : f32 to vector<8x512xf32>
    %440 = arith.addf %438, %439 : vector<8x512xf32>
    %cst_133 = arith.constant 2.000000e+00 : f32
    %441 = vector.broadcast %cst_133 : f32 to vector<8x512xf32>
    %442 = arith.addf %438, %441 : vector<8x512xf32>
    %cst_134 = arith.constant 3.000000e+00 : f32
    %443 = vector.broadcast %cst_134 : f32 to vector<8x512xf32>
    %444 = arith.addf %438, %443 : vector<8x512xf32>
    %cst_135 = arith.constant 4.000000e+00 : f32
    %445 = vector.broadcast %cst_135 : f32 to vector<8x512xf32>
    %446 = arith.addf %438, %445 : vector<8x512xf32>
    %447 = arith.mulf %438, %440 : vector<8x512xf32>
    %448 = arith.mulf %442, %444 : vector<8x512xf32>
    %449 = arith.mulf %447, %448 : vector<8x512xf32>
    %cst_136 = arith.constant 1.000000e+00 : f32
    %450 = vector.broadcast %cst_136 : f32 to vector<8x512xf32>
    %451 = arith.divf %450, %446 : vector<8x512xf32>
    %452 = arith.mulf %451, %451 : vector<8x512xf32>
    %cst_137 = arith.constant 7.93650805E-4 : f32
    %453 = vector.broadcast %cst_137 : f32 to vector<8x512xf32>
    %454 = arith.mulf %452, %453 : vector<8x512xf32>
    %cst_138 = arith.constant -0.00277777785 : f32
    %455 = vector.broadcast %cst_138 : f32 to vector<8x512xf32>
    %456 = arith.addf %455, %454 : vector<8x512xf32>
    %457 = arith.mulf %452, %456 : vector<8x512xf32>
    %cst_139 = arith.constant 0.0833333358 : f32
    %458 = vector.broadcast %cst_139 : f32 to vector<8x512xf32>
    %459 = arith.addf %458, %457 : vector<8x512xf32>
    %460 = arith.mulf %451, %459 : vector<8x512xf32>
    %cst_140 = arith.constant 3.500000e+00 : f32
    %461 = vector.broadcast %cst_140 : f32 to vector<8x512xf32>
    %462 = arith.addf %438, %461 : vector<8x512xf32>
    %463 = math.log %446 : vector<8x512xf32>
    %464 = arith.mulf %462, %463 : vector<8x512xf32>
    %465 = arith.subf %464, %446 : vector<8x512xf32>
    %cst_141 = arith.constant 0.918938517 : f32
    %466 = vector.broadcast %cst_141 : f32 to vector<8x512xf32>
    %467 = arith.addf %465, %466 : vector<8x512xf32>
    %468 = arith.addf %467, %460 : vector<8x512xf32>
    %469 = math.log %449 : vector<8x512xf32>
    %470 = arith.subf %468, %469 : vector<8x512xf32>
    %471 = arith.addf %436, %470 : vector<8x512xf32>
    %472 = arith.addf %394, %404 : vector<8x512xf32>
    %cst_142 = arith.constant 1.000000e+00 : f32
    %473 = vector.broadcast %cst_142 : f32 to vector<8x512xf32>
    %474 = arith.addf %472, %473 : vector<8x512xf32>
    %cst_143 = arith.constant 2.000000e+00 : f32
    %475 = vector.broadcast %cst_143 : f32 to vector<8x512xf32>
    %476 = arith.addf %472, %475 : vector<8x512xf32>
    %cst_144 = arith.constant 3.000000e+00 : f32
    %477 = vector.broadcast %cst_144 : f32 to vector<8x512xf32>
    %478 = arith.addf %472, %477 : vector<8x512xf32>
    %cst_145 = arith.constant 4.000000e+00 : f32
    %479 = vector.broadcast %cst_145 : f32 to vector<8x512xf32>
    %480 = arith.addf %472, %479 : vector<8x512xf32>
    %481 = arith.mulf %472, %474 : vector<8x512xf32>
    %482 = arith.mulf %476, %478 : vector<8x512xf32>
    %483 = arith.mulf %481, %482 : vector<8x512xf32>
    %cst_146 = arith.constant 1.000000e+00 : f32
    %484 = vector.broadcast %cst_146 : f32 to vector<8x512xf32>
    %485 = arith.divf %484, %480 : vector<8x512xf32>
    %486 = arith.mulf %485, %485 : vector<8x512xf32>
    %cst_147 = arith.constant 7.93650805E-4 : f32
    %487 = vector.broadcast %cst_147 : f32 to vector<8x512xf32>
    %488 = arith.mulf %486, %487 : vector<8x512xf32>
    %cst_148 = arith.constant -0.00277777785 : f32
    %489 = vector.broadcast %cst_148 : f32 to vector<8x512xf32>
    %490 = arith.addf %489, %488 : vector<8x512xf32>
    %491 = arith.mulf %486, %490 : vector<8x512xf32>
    %cst_149 = arith.constant 0.0833333358 : f32
    %492 = vector.broadcast %cst_149 : f32 to vector<8x512xf32>
    %493 = arith.addf %492, %491 : vector<8x512xf32>
    %494 = arith.mulf %485, %493 : vector<8x512xf32>
    %cst_150 = arith.constant 3.500000e+00 : f32
    %495 = vector.broadcast %cst_150 : f32 to vector<8x512xf32>
    %496 = arith.addf %472, %495 : vector<8x512xf32>
    %497 = math.log %480 : vector<8x512xf32>
    %498 = arith.mulf %496, %497 : vector<8x512xf32>
    %499 = arith.subf %498, %480 : vector<8x512xf32>
    %cst_151 = arith.constant 0.918938517 : f32
    %500 = vector.broadcast %cst_151 : f32 to vector<8x512xf32>
    %501 = arith.addf %499, %500 : vector<8x512xf32>
    %502 = arith.addf %501, %494 : vector<8x512xf32>
    %503 = math.log %483 : vector<8x512xf32>
    %504 = arith.subf %502, %503 : vector<8x512xf32>
    %505 = arith.subf %471, %504 : vector<8x512xf32>
    %506 = arith.addf %398, %394 : vector<8x512xf32>
    %507 = arith.divf %402, %404 : vector<8x512xf32>
    %cst_152 = arith.constant 1.000000e+00 : f32
    %508 = vector.broadcast %cst_152 : f32 to vector<8x512xf32>
    %509 = arith.addf %508, %507 : vector<8x512xf32>
    %510 = math.log %509 : vector<8x512xf32>
    %511 = arith.mulf %506, %510 : vector<8x512xf32>
    %512 = arith.addf %505, %511 : vector<8x512xf32>
    %513 = math.log %404 : vector<8x512xf32>
    %cst_153 = arith.constant 1.000000e-10 : f32
    %514 = vector.broadcast %cst_153 : f32 to vector<8x512xf32>
    %515 = arith.addf %402, %514 : vector<8x512xf32>
    %516 = math.log %515 : vector<8x512xf32>
    %517 = arith.subf %513, %516 : vector<8x512xf32>
    %518 = arith.mulf %394, %517 : vector<8x512xf32>
    %519 = arith.addf %512, %518 : vector<8x512xf32>
    %520 = arith.addf %390, %519 : vector<8x512xf32>
    %c4_i32 = arith.constant 4 : i32
    %c0_154 = arith.constant 0 : index
    %c0_155 = arith.constant 0 : index
    %521 = vector.load %arg6[%c0_154, %c0_155] : memref<8x512xf32, #tpu.memory_space<vmem>>, vector<8x512xf32>
    tpu.vector_store %arg6[%c0_154, %c0_155], %520 {strides = array<i32>} : memref<8x512xf32, #tpu.memory_space<vmem>>, vector<8x512xf32>,
    return
  }
  func.func @transform_0(%arg0: i32, %arg1: i32) -> (i32, i32) {
    %c0_i32 = arith.constant 0 : i32
    return %arg0, %arg1 : i32, i32
  }
  func.func @transform_1(%arg0: i32, %arg1: i32) -> (i32, i32) {
    %c0_i32 = arith.constant 0 : i32
    return %arg0, %arg1 : i32, i32
  }
  func.func @transform_2(%arg0: i32, %arg1: i32) -> (i32, i32) {
    %c0_i32 = arith.constant 0 : i32
    return %arg0, %arg1 : i32, i32
  }
  func.func @transform_3(%arg0: i32, %arg1: i32) -> (i32, i32) {
    %c0_i32 = arith.constant 0 : i32
    %c0_i32_0 = arith.constant 0 : i32
    return %arg0, %c0_i32 : i32, i32
  }
  func.func @transform_4(%arg0: i32, %arg1: i32) -> (i32, i32) {
    %c0_i32 = arith.constant 0 : i32
    return %arg0, %arg1 : i32, i32
  }
}

</mosaic_0001>

<bundles_post_ra>
// kernel: tpu_custom_call.1
= control target key start
LH: loop header
LB: loop body
LE: loop exit
PB: predicated region body
PF: predicated region fallthrough
CT: control target
= control target key end

     0   :  { %s5082_s0 = inlined_call_operand.hbm [shape: f32[64,512], index: 0, kind: input, shape index: {}]   ;;  %s5083_s1 = inlined_call_operand.hbm [shape: f32[64,512], index: 1, kind: input, shape index: {}]   ;;  %s5084_s2 = inlined_call_operand.hbm [shape: f32[64,512], index: 2, kind: input, shape index: {}]   ;;  %s5085_s3 = inlined_call_operand.vmem [shape: f32[64,1], index: 3, kind: input, shape index: {}]   ;;  %s5086_s4 = inlined_call_operand.hbm [shape: f32[16,512], index: 4, kind: output, shape index: {}]  }
   0x1   :  { %5181 = sst [smem:[#allocation52_spill]] %s5083_s1 }
   0x2   :  { %9 = vsyncpa [#allocation3], 0 }
   0x3   :  { %11 = vsyncpa [#allocation3 + $0x1], 0 }
   0x4   :  { %12 = vsyncpa [#allocation6], 0 }
   0x5   :  { %14 = vsyncpa [#allocation6 + $0x1], 0 }
   0x6   :  { %15 = vsyncpa [#allocation4], 0 }
   0x7   :  { %17 = vsyncpa [#allocation4 + $0x1], 0  ;;  %s2986_s15 = smov 0   ;;  %s2988_s16 = smov 0  }
   0x8   :  { %s2990_s17 = smov 0   ;;  %s2992_s18 = smov 0  }
   0x9   :  { %s2994_s19 = smov 0   ;;  %s2996_s20 = smov 0  }
   0xa LB: > { %5182 = sst [smem:[#allocation12_spill]] %s2948_s19  ;;  %s3017_s21 = sadd.s32 4294967295, %s2952_s20   ;;  %s2952_s20 = sphi %s2996_s20, %s23_s20   ;;  %s2948_s19 = sphi %s2994_s19, %s5418_s19   ;;  %s2944_s18 = sphi %s2992_s18, %s5417_s18   ;;  %s2940_s17 = sphi %s2990_s17, %s5421_s17   ;;  %s2936_s16 = sphi %s2988_s16, %s5420_s16   ;;  %s2932_s15 = sphi %s2986_s15, %s5419_s15  }
   0xb   : > { %5183 = sst [smem:[#allocation13_spill]] %s2952_s20  ;;  %s2198_s22 = sadd.s32 4294967294, %s2952_s20  }
   0xc   : > { %s35_s23 = sadd.s32 1, %s2948_s19  ;;  %s44_s24 = sadd.s32 1, %s2940_s17 }
   0xd   : > { %p37_p0 = scmp.ge.s32.totalorder %s35_s23, 2  ;;  %p51_p1 = scmp.ne.s32.totalorder %s2940_s17, %s2936_s16 }
   0xe   : > { %p52_p2 = scmp.eq.s32.totalorder %s2952_s20, 0  ;;  %p57_p3 = scmp.ne.s32.totalorder %s2936_s16, %s2932_s15 }
   0xf   : > { %s5423_s23 = smov (%p37_p0, %s35_s23), 0  ;;  %p58_p5 = scmp.eq.s32.totalorder %s3017_s21, 0 }
  0x10   : > { %5184 = sst [smem:[#allocation14_spill]] %s5423_s23  ;;  %p3029_p4 = por %p52_p2, %p51_p1 }
  0x11   : > { %s39_s26 = ssub.s32 %s2948_s19, %s5423_s23  ;;  %p165_p6 = scmp.eq.s32.totalorder %s3017_s21, 1 }
  0x12   : > { %p42_p7 = scmp.eq.s32.totalorder %s39_s26, 0  ;;  %p3037_p8 = por %p58_p5, %p57_p3 }
  0x13   : > { %p3041_p9 = por %p165_p6, %p51_p1  ;;  %p171_p10 = scmp.eq.s32.totalorder %s2198_s22, 1 }
  0x14   : > { %s5186_s27 = scalar_select %p3037_p8, 1, 0 }
  0x15   : > { %s5187_s28 = scalar_select %p3041_p9, 1, 0 }
  0x16   : > { %s3046_s29 = scalar_select %p42_p7, %s2940_s17, %s44_s24  }
  0x17   : > { %p3048_p11 = por %p171_p10, %p57_p3  ;;  %p2293_p13 = scmp.lt.s32.totalorder %s2952_s20, 2 }
  0x18   : > { %5188 = sst [smem:[#allocation15_spill]] %s3046_s29  ;;  %s5087_s5 = sand.u32 1, %s2940_s17  }
  0x19   : > { %s5189_s30 = scalar_select %p3048_p11, 1, 0 }
  0x1a   : > { %s3057_s6 = sshll.u32 %s5087_s5, 7  ;;  %s3060_s7 = sshll.u32 %s2948_s19, 11 }
  0x1b   : > { %p3064_p0 = pnand %p2293_p13, %p3029_p4  ;;  %s215_s9 = sand.u32 1, %s2952_s20  }
  0x1c   : > { %s5191_s1 = sld [smem:[#allocation52_spill]]  ;;  %s219_s13 = scalar_lea.vmem [#allocation5], %s3057_s6 }
  0x1d   : > { %s229_s14 = sshll.u32 %s219_s13, 4  ;;  %s3080_s22 = scalar_lea.sflag [#allocation6], %s215_s9  ;;  %s3077_s14 = int_to_ptr.vmem [resolvable:$true] %s229_s14 }
  0x1e   : > { %p3086_p4 = pneg %p3064_p0 }
  0x22   : > { %s3073_s12 = scalar_lea.hbm %s5191_s1, %s3060_s7  ;;  %s2781_s11 = scalar_lea.hbm %s5191_s1, 4096 }
  0x23   : > { %s2776_s24 = scalar_lea.hbm %s3073_s12, 2048  ;;  %p2782_p7 = scmp.lt.u32.totalorder %s3073_s12, %s5191_s1 }
  0x24   : > { %p2777_p3 = scmp.ne.s32.totalorder %s3073_s12, %s2776_s24  ;;  %p2783_p10 = scmp.lt.u32.totalorder %s2781_s11, %s2776_s24 }
  0x25   : > { %p2785_p12 = scmp.lt.u32.totalorder %s2776_s24, %s3073_s12 }
  0x26   : > { %p2779_p5 = pnand %p3086_p4, %p2777_p3  ;;  %p2784_p13 = por %p2783_p10, %p2782_p7 }
  0x28   : > { %p2780_p6 = pneg %p2779_p5  ;;  %p2786_p1 = por %p2785_p12, %p2784_p13 }
  0x2a   : > { %p2787_p2 = pnand %p2786_p1, %p2780_p6 }
  0x2c   : > { %2790 = shalt.err (!%p2787_p2)
}
  0x2d   : > { %s2791_s9 = scalar_lea.vmem %s3077_s14, 2048  ;;  %s2954_s26 = smov [#allocation5]  }
  0x2e   : > { %p2792_p3 = scmp.ne.s32.totalorder %s3077_s14, %s2791_s9  ;;  %s2796_s10 = sshll.u32 %s2954_s26, 4  ;;  %s2797_s10 = int_to_ptr.vmem [resolvable:$false] %s2796_s10 }
  0x2f   : > { %s2798_s5 = scalar_lea.vmem %s2797_s10, 4096  ;;  %p2799_p9 = scmp.lt.s32.totalorder %s3077_s14, %s2797_s10 }
  0x30   : > { %p2794_p5 = pnand %p2792_p3, %p3086_p4  ;;  %p2800_p8 = scmp.lt.s32.totalorder %s2798_s5, %s2791_s9 }
  0x32   : > { %p2795_p11 = pneg %p2794_p5  ;;  %p2801_p7 = por %p2800_p8, %p2799_p9 }
  0x34   : > { %p2802_p10 = pnand %p2801_p7, %p2795_p11 }
  0x36   : > { %2805 = shalt.err (!%p2802_p10)
}
  0x37   : > { %s5090_s24 = smov 512   ;;  %s5092_s11 = smov 32  }
  0x38   : > { %2285 = dma.hbm_to_vmem [thread:$0]  (!%p3064_p0), %s3073_s12, 2048, %s3077_s14, %s3080_s22, %s5090_s24, %s5090_s24, %s5092_s11  }
  0x39   : > { %p5193_p8 = scmp.lt.s32.totalorder %s2952_s20, 3  ;;  %p5194_p9 = scmp.ge.s32.totalorder %s2952_s20, 1 }
  0x3a   : > { %s3125_s10 = scalar_lea.hbm %s5082_s0, %s3060_s7  ;;  %s195_s5 = scalar_lea.vmem [#allocation2], %s3057_s6 }
  0x3b   : > { %p3117_p11 = pnand %p5194_p9, %p5193_p8  ;;  %s205_s1 = sshll.u32 %s195_s5, 4  ;;  %s3128_s1 = int_to_ptr.vmem [resolvable:$true] %s205_s1 }
  0x3c   : > { %s3134_s24 = scalar_lea.hbm %s5084_s2, %s3060_s7  ;;  %s5196_s11 = sand.u32 1, %s2940_s17  }
  0x3d   : > { %s5195_s13 = scalar_select %p3117_p11, 1, 0 }
  0x3e   : > { %s3138_s23 = scalar_lea.sflag [#allocation3], %s5196_s11  ;;  %s2806_s19 = scalar_lea.hbm %s3125_s10, 2048 }
  0x3f   : > { %p2807_p12 = scmp.ne.s32.totalorder %s3125_s10, %s2806_s19  ;;  %s2811_s29 = scalar_lea.hbm %s5082_s0, 4096 }
  0x40   : > { %p2812_p6 = scmp.lt.u32.totalorder %s3125_s10, %s5082_s0  ;;  %p2813_p13 = scmp.lt.u32.totalorder %s2811_s29, %s2806_s19 }
  0x41   : > { %p2809_p1 = pnand %p2807_p12, %p3086_p4  ;;  %p2815_p5 = scmp.lt.u32.totalorder %s2806_s19, %s3125_s10 }
  0x42   : > { %p2814_p3 = por %p2813_p13, %p2812_p6 }
  0x43   : > { %p2810_p2 = pneg %p2809_p1 }
  0x44   : > { %p2816_p7 = por %p2815_p5, %p2814_p3 }
  0x46   : > { %p2817_p10 = pnand %p2816_p7, %p2810_p2 }
  0x48   : > { %2820 = shalt.err (!%p2817_p10)
}
  0x49   : > { %s2821_s7 = scalar_lea.vmem %s3128_s1, 2048  ;;  %s2957_s11 = smov [#allocation2]  }
  0x4a   : > { %p2822_p8 = scmp.ne.s32.totalorder %s3128_s1, %s2821_s7  ;;  %s2826_s12 = sshll.u32 %s2957_s11, 4  ;;  %s2827_s12 = int_to_ptr.vmem [resolvable:$false] %s2826_s12 }
  0x4b   : > { %s2828_s20 = scalar_lea.vmem %s2827_s12, 4096  ;;  %p2829_p1 = scmp.lt.s32.totalorder %s3128_s1, %s2827_s12 }
  0x4c   : > { %p2824_p9 = pnand %p2822_p8, %p3086_p4  ;;  %p2830_p11 = scmp.lt.s32.totalorder %s2828_s20, %s2821_s7 }
  0x4e   : > { %p2825_p12 = pneg %p2824_p9  ;;  %p2831_p6 = por %p2830_p11, %p2829_p1 }
  0x50   : > { %p2832_p13 = pnand %p2831_p6, %p2825_p12 }
  0x52   : > { %2835 = shalt.err (!%p2832_p13)
}
  0x53   : > { %s5197_s19 = smov 32   ;;  %s5198_s29 = smov 512  }
  0x54   : > { %2282 = dma.hbm_to_vmem [thread:$0]  (!%p3064_p0), %s3125_s10, 2048, %s3128_s1, %s3138_s23, %s5198_s29, %s5198_s29, %s5197_s19  }
  0x55   : > { %s243_s14 = scalar_lea.vmem [#allocation7], %s3057_s6  ;;  %s2836_s26 = scalar_lea.hbm %s3134_s24, 2048 }
  0x56   : > { %s253_s9 = sshll.u32 %s243_s14, 4  ;;  %p2837_p11 = scmp.ne.s32.totalorder %s3134_s24, %s2836_s26  ;;  %s3166_s9 = int_to_ptr.vmem [resolvable:$true] %s253_s9 }
  0x57   : > { %s2841_s11 = scalar_lea.hbm %s5084_s2, 4096  ;;  %p2842_p5 = scmp.lt.u32.totalorder %s3134_s24, %s5084_s2 }
  0x58   : > { %p2839_p2 = pnand %p2837_p11, %p3086_p4  ;;  %p2843_p7 = scmp.lt.u32.totalorder %s2841_s11, %s2836_s26 }
  0x59   : > { %p2845_p8 = scmp.lt.u32.totalorder %s2836_s26, %s3134_s24 }
  0x5a   : > { %p2840_p3 = pneg %p2839_p2  ;;  %p2844_p10 = por %p2843_p7, %p2842_p5 }
  0x5c   : > { %p2846_p9 = por %p2845_p8, %p2844_p10 }
  0x5e   : > { %p2847_p12 = pnand %p2846_p9, %p2840_p3 }
  0x60   : > { %2850 = shalt.err (!%p2847_p12)
}
  0x61   : > { %s2851_s1 = scalar_lea.vmem %s3166_s9, 2048  ;;  %s2958_s23 = smov [#allocation7]  }
  0x62   : > { %p2852_p1 = scmp.ne.s32.totalorder %s3166_s9, %s2851_s1  ;;  %s2856_s6 = sshll.u32 %s2958_s23, 4  ;;  %s2857_s6 = int_to_ptr.vmem [resolvable:$false] %s2856_s6 }
  0x63   : > { %s2858_s10 = scalar_lea.vmem %s2857_s6, 4096  ;;  %p2859_p11 = scmp.lt.s32.totalorder %s3166_s9, %s2857_s6 }
  0x64   : > { %p2854_p6 = pnand %p2852_p1, %p3086_p4  ;;  %p2860_p2 = scmp.lt.s32.totalorder %s2858_s10, %s2851_s1 }
  0x66   : > { %p2855_p13 = pneg %p2854_p6  ;;  %p2861_p5 = por %p2860_p2, %p2859_p11 }
  0x68   : > { %p2862_p7 = pnand %p2861_p5, %p2855_p13 }
  0x6a   : > { %2865 = shalt.err (!%p2862_p7)
}
  0x6b   : > { %2288 = dma.hbm_to_vmem [thread:$0]  (!%p3064_p0), %s3134_s24, 2048, %s3166_s9, %s3080_s22, %s5198_s29, %s5198_s29, %s5197_s19  }
  0x6c   : > { %p5199_p4 = scmp.ne.s32.totalorder %s5195_s13, 0 }
  0x6e   : > { %274 = sbr.rel (%p5199_p4) target bundleno = 534 (0x216), region = 36 }
  0x75   : > { %s3196_s25 = sand.u32 1, %s2936_s16   ;;  %p5200_p3 = scmp.ne.s32.totalorder %s5186_s27, 0 }
  0x76   : > { %s2214_s14 = sshll.u32 %s3196_s25, 7  ;;  %s277_s26 = scalar_lea.sflag [#allocation3], %s3196_s25 }
  0x77   : > { %s3200_s5 = scalar_lea.vmem [#allocation2], %s2214_s14 }
  0x78   : > { %2919 = dma.done.wait (%p5200_p3), %s277_s26, 2048  }
  0x79   : > { %2921 = vsyncadd (%p5200_p3), %s277_s26, 4294965248  ;;  %s285_s8 = sand.u32 1, %s3017_s21   ;;  %s3207_s24 = scalar_lea.vmem [#allocation5], %s2214_s14 }
  0x7a   : > { %s286_s22 = scalar_lea.sflag [#allocation6], %s285_s8 }
  0x7b   : > { %2923 = dma.done.wait (%p5200_p3), %s286_s22, 4096  }
  0x7c   : > { %2925 = vsyncadd (%p5200_p3), %s286_s22, 4294963200  ;;  %s2218_s13 = sshll.u32 %s2944_s18, 2  ;;  %v2959_v0 = vmov 0   ;;  %s3217_s27 = scalar_lea.vmem [#allocation7], %s2214_s14  ;;  %v3241_v14 = vld [vmem:[%s3200_s5] sm:$0xff]  ;;  %v3247_v16 = vld [vmem:[%s3200_s5 + $0x8] sm:$0xff] }
  0x7d   : > { %2347 = vset.pattern.permute.xlu1 %v2959_v0  ;;  %2346 = vset.pattern.permute.xlu0 %v2959_v0  ;;  %p345_p0 = scmp.lt.s32.totalorder %s2218_s13, 7  ;;  %v366_v5 = vld [vmem:[%s3217_s27] sm:$0xff]  ;;  %v367_v6 = vld [vmem:[%s3217_s27 + $0x8] sm:$0xff]  ;;  %v3224_v8 = vld [vmem:[%s3217_s27 + $0x10] sm:$0xff]  ;;  %v3257_v19 = vadd.f32 1.0, %v3241_v14  ;;  %v3263_v22 = vadd.f32 1.0, %v3247_v16 }
  0x7e   : > { %v3221_v7 = vadd.f32 1e-10, %v366_v5  ;;  %5201 = vst [vmem:[#allocation16_spill] sm:$0xff] %v3224_v8  ;;  %v3227_v9 = vld [vmem:[%s3217_s27 + $0x18] sm:$0xff]  ;;  %v3229_v10 = vadd.f32 1e-10, %v367_v6  ;;  %v3293_v40 = vadd.f32 %v366_v5, %v3241_v14  ;;  %v3305_v51 = vadd.f32 %v367_v6, %v3247_v16 }
  0x7f   : > { %s5425_s13 = smov (!%p345_p0, %s2218_s13), 7  ;;  %5202 = vst [vmem:[#allocation17_spill] sm:$0xff] %v3227_v9  ;;  %v3232_v11 = vadd.f32 1e-10, %v3224_v8  ;;  %v3238_v13 = vadd.f32 1e-10, %v3227_v9 }
  0x80   : > { %s2219_s19 = sshll.u32 %s5425_s13, 3  ;;  %v3235_v12 = vadd.f32 4.0, %v3221_v7  ;;  %v3244_v15 = vadd.f32 4.0, %v3229_v10  ;;  %v384_v20 = vadd.f32 1.0, %v3221_v7  ;;  %v385_v21 = vadd.f32 1.0, %v3229_v10  ;;  %v3266_v23 = vld [vmem:[%s3200_s5 + $0x10] sm:$0xff] }
  0x81   : > { %s348_s21 = scalar_lea.vmem %s5085_s3, %s2219_s19  ;;  %v3250_v17 = vadd.f32 4.0, %v3232_v11  ;;  %v3254_v18 = vadd.f32 4.0, %v3238_v13  ;;  %v3269_v24 = vld [vmem:[%s3200_s5 + $0x18] sm:$0xff]  ;;  %v386_v25 = vadd.f32 1.0, %v3232_v11  ;;  %v388_v26 = vadd.f32 2.0, %v3221_v7  ;;  %5203 = vst [vmem:[#allocation18_spill] sm:$0xff] %v3293_v40 }
  0x82   : > { %v2245_v1 = vld [vmem:[%s348_s21 + $0x10] sm:$0xff]  ;;  %v370_v2 = vld [vmem:[%s348_s21] sm:$0xff]  ;;  %v2258_v3 = vld [vmem:[%s348_s21 + $0x18] sm:$0xff]  ;;  %2348 = vrcp.f32 %v3235_v12  ;;  %v389_v27 = vadd.f32 2.0, %v3229_v10  ;;  %v387_v28 = vadd.f32 1.0, %v3238_v13  ;;  %v390_v29 = vadd.f32 2.0, %v3232_v11 }
  0x83   : > { %1209 = vperm.xlu1 %2347, %v2245_v1   ;;  %373 = vperm.xlu0 %2346, %v370_v2   ;;  %v2232_v4 = vld [vmem:[%s348_s21 + $0x8] sm:$0xff]  ;;  %2350 = vrcp.f32 %v3244_v15  ;;  %v391_v30 = vadd.f32 2.0, %v3238_v13  ;;  %v392_v31 = vadd.f32 3.0, %v3221_v7  ;;  %v393_v32 = vadd.f32 3.0, %v3229_v10  ;;  %5204 = vst [vmem:[#allocation19_spill] sm:$0xff] %v3305_v51  ;;  %s2217_s7 = sshll.u32 %s3196_s25, 5 }
  0x84   : > { %2352 = vrcp.f32 %v3250_v17  ;;  %v394_v33 = vadd.f32 3.0, %v3232_v11  ;;  %v395_v34 = vadd.f32 3.0, %v3238_v13  ;;  %v3284_v35 = vadd.f32 1.0, %v3266_v23  ;;  %s2270_s11 = sshll.u32 %s2944_s18, 9  ;;  %s337_s12 = scalar_lea.vmem [#allocation8], %s2217_s7 }
  0x85   : > { %2354 = vrcp.f32 %v3254_v18  ;;  %v3287_v36 = vadd.f32 1.0, %v3269_v24  ;;  %v400_v37 = vmul.f32 %v384_v20, %v3221_v7  ;;  %v488_v38 = vadd.f32 1.0, %v3257_v19  ;;  %s2043_s20 = sshll.u32 %s337_s12, 4  ;;  %s5033_s6 = scalar_lea.hbm %s5086_s4, %s2270_s11  ;;  %s5035_s20 = int_to_ptr.vmem [resolvable:$true] %s2043_s20 }
  0x86   : > { %v489_v39 = vadd.f32 1.0, %v3263_v22  ;;  %v401_v41 = vmul.f32 %v385_v21, %v3229_v10  ;;  %v402_v42 = vmul.f32 %v386_v25, %v3232_v11  ;;  %v404_v43 = vmul.f32 %v392_v31, %v388_v26  ;;  %s2027_s18 = scalar_lea.sflag [#allocation4], %s3196_s25  ;;  %s2866_s10 = scalar_lea.vmem %s5035_s20, 512 }
  0x87   : > { %1627 = vperm.xlu1 %2347, %v2258_v3   ;;  %791 = vperm.xlu0 %2346, %v2232_v4   ;;  %2356 = vlog2.f32 %v3235_v12  ;;  %v403_v45 = vmul.f32 %v387_v28, %v3238_v13  ;;  %v405_v46 = vmul.f32 %v393_v32, %v389_v27  ;;  %v406_v47 = vmul.f32 %v394_v33, %v390_v29  ;;  %p2867_p10 = scmp.ne.s32.totalorder %s5035_s20, %s2866_s10  ;;  %p5412_p8 = scmp.ne.s32.totalorder %s5187_s28, 0 }
  0x88   : > { %v407_v48 = vmul.f32 %v395_v34, %v391_v30  ;;  %2358 = vlog2.f32 %v3244_v15  ;;  %v490_v49 = vadd.f32 1.0, %v3284_v35  ;;  %v491_v50 = vadd.f32 1.0, %v3287_v36  ;;  %s2960_s14 = smov [#allocation8]  }
  0x89   : > { %v3308_v52 = vadd.f32 3.5, %v3221_v7  ;;  %v3311_v53 = vadd.f32 3.5, %v3229_v10  ;;  %2360 = vlog2.f32 %v3250_v17  ;;  %v3315_v54 = vadd.f32 4.0, %v3257_v19  ;;  %p2868_p9 = pnand %p2867_p10, %p5412_p8  ;;  %s2870_s26 = sshll.u32 %s2960_s14, 4  ;;  %s2871_s26 = int_to_ptr.vmem [resolvable:$false] %s2870_s26 }
  0x8a   : > { %v408_v56 = vmul.f32 %v404_v43, %v400_v37  ;;  %v3322_v58 = vadd.f32 3.5, %v3232_v11  ;;  %2362 = vlog2.f32 %v3254_v18  ;;  %v409_v60 = vmul.f32 %v405_v46, %v401_v41  ;;  %p2873_p1 = scmp.lt.s32.totalorder %s5035_s20, %s2871_s26 }
  0x8b   : > { %v410_v61 = vmul.f32 %v406_v47, %v402_v42  ;;  %v411_v62 = vmul.f32 %v407_v48, %v403_v45  ;;  %v3328_v63 = vadd.f32 4.0, %v3263_v22  ;;  %v3331_v0 = vadd.f32 3.5, %v3238_v13  ;;  %p2869_p12 = pneg %p2868_p9 }
  0x8c   : > { %v3298_v44 = vpop.eup %2348  ;;  %v492_v1 = vadd.f32 2.0, %v3257_v19  ;;  %v496_v2 = vadd.f32 3.0, %v3257_v19  ;;  %v3336_v3 = vadd.f32 4.0, %v3284_v35  ;;  %v493_v6 = vadd.f32 2.0, %v3263_v22 }
  0x8d   : > { %v3317_v55 = vpop.eup %2350  ;;  %v420_v57 = vmul.f32 %v3298_v44, %v3298_v44  ;;  %v494_v20 = vadd.f32 2.0, %v3284_v35  ;;  %2364 = vrcp.f32 %v3315_v54  ;;  %v497_v26 = vadd.f32 3.0, %v3263_v22 }
  0x8e   : > { %v3325_v59 = vpop.eup %2352  ;;  %v421_v5 = vmul.f32 %v3317_v55, %v3317_v55  ;;  %v3349_v27 = vadd.f32 4.0, %v3287_v36  ;;  %v495_v28 = vadd.f32 2.0, %v3287_v36  ;;  %v498_v29 = vadd.f32 3.0, %v3284_v35 }
  0x8f   : > { %v3338_v4 = vpop.eup %2354  ;;  %v422_v21 = vmul.f32 %v3325_v59, %v3325_v59  ;;  %v424_v25 = vmul.f32 0.0007936508, %v420_v57  ;;  %v499_v30 = vadd.f32 3.0, %v3287_v36  ;;  %2366 = vrcp.f32 %v3328_v63 }
  0x90   : > { %v423_v32 = vmul.f32 %v3338_v4, %v3338_v4  ;;  %v504_v33 = vmul.f32 %v488_v38, %v3257_v19  ;;  %v508_v34 = vmul.f32 %v496_v2, %v492_v1  ;;  %2368 = vrcp.f32 %v3336_v3 }
  0x91   : > { %v2357_v31 = vpop.eup %2356  ;;  %v425_v37 = vmul.f32 0.0007936508, %v421_v5  ;;  %v505_v41 = vmul.f32 %v489_v39, %v3263_v22  ;;  %v506_v42 = vmul.f32 %v490_v49, %v3284_v35  ;;  %v507_v43 = vmul.f32 %v491_v50, %v3287_v36 }
  0x92   : > { %v2359_v45 = vpop.eup %2358  ;;  %v426_v46 = vmul.f32 0.0007936508, %v422_v21  ;;  %v428_v47 = vadd.f32 -0.0027777778, %v424_v25  ;;  %v509_v48 = vmul.f32 %v497_v26, %v493_v6  ;;  %2370 = vrcp.f32 %v3349_v27 }
  0x93   : > { %v2361_v51 = vpop.eup %2360  ;;  %v449_v40 = vmul.f32 0.6931472, %v2357_v31  ;;  %2372 = vlog2.f32 %v408_v56  ;;  %v510_v38 = vmul.f32 %v498_v29, %v494_v20  ;;  %v511_v1 = vmul.f32 %v499_v30, %v495_v28 }
  0x94   : > { %v2363_v2 = vpop.eup %2362  ;;  %v427_v9 = vmul.f32 0.0007936508, %v423_v32  ;;  %v3363_v8 = vmul.f32 %v508_v34, %v504_v33  ;;  %v3366_v39 = vadd.f32 3.5, %v3257_v19  ;;  %2374 = vlog2.f32 %v3315_v54 }
  0x95   : > { %v429_v49 = vadd.f32 -0.0027777778, %v425_v37  ;;  %v451_v50 = vmul.f32 0.6931472, %v2359_v45  ;;  %2376 = vlog2.f32 %v409_v60  ;;  %v3370_v6 = vadd.f32 3.5, %v3263_v22 }
  0x96   : > { %v430_v25 = vadd.f32 -0.0027777778, %v426_v46  ;;  %v432_v26 = vmul.f32 %v428_v47, %v420_v57  ;;  %v453_v56 = vmul.f32 0.6931472, %v2361_v51  ;;  %v3372_v20 = vmul.f32 %v509_v48, %v505_v41 }
  0x97   : > { %v3374_v28 = vpop.eup %2364  ;;  %v455_v29 = vmul.f32 0.6931472, %v2363_v2  ;;  %v456_v30 = vmul.f32 %v449_v40, %v3308_v52  ;;  %2378 = vlog2.f32 %v410_v61  ;;  %v3377_v19 = vmul.f32 %v510_v38, %v506_v42 }
  0x98   : > { %v431_v31 = vadd.f32 -0.0027777778, %v427_v9  ;;  %2380 = vlog2.f32 %v411_v62  ;;  %v3379_v33 = vmul.f32 %v511_v1, %v507_v43  ;;  %v3382_v22 = vadd.f32 3.5, %v3284_v35 }
  0x99   : > { %v3384_v60 = vpop.eup %2366  ;;  %v433_v51 = vmul.f32 %v429_v49, %v421_v5  ;;  %v457_v57 = vmul.f32 %v451_v50, %v3311_v53  ;;  %v3388_v34 = vadd.f32 3.5, %v3287_v36  ;;  %2382 = vlog2.f32 %v3328_v63 }
  0x9a   : > { %v3391_v40 = vpop.eup %2368  ;;  %v434_v52 = vmul.f32 %v430_v25, %v422_v21  ;;  %v436_v9 = vadd.f32 0.083333336, %v432_v26  ;;  %v458_v61 = vmul.f32 %v453_v56, %v3322_v58  ;;  %v524_v35 = vmul.f32 %v3374_v28, %v3374_v28 }
  0x9b   : > { %v459_v62 = vmul.f32 %v455_v29, %v3331_v0  ;;  %v460_v5 = vsub.f32 %v456_v30, %v3235_v12  ;;  %v3400_v53 = vadd.f32 %v3221_v7, %v3241_v14  ;;  %v3404_v36 = vadd.f32 %v3229_v10, %v3247_v16 }
  0x9c   : > { %v3406_v37 = vpop.eup %2370  ;;  %v435_v21 = vmul.f32 %v431_v31, %v423_v32  ;;  %v525_v58 = vmul.f32 %v3384_v60, %v3384_v60  ;;  %v3412_v41 = vadd.f32 %v3232_v11, %v3266_v23  ;;  %v3416_v12 = vadd.f32 %v3238_v13, %v3269_v24 }
  0x9d   : > { %v2373_v14 = vpop.eup %2372  ;;  %v437_v0 = vadd.f32 0.083333336, %v433_v51  ;;  %v461_v42 = vsub.f32 %v457_v57, %v3244_v15  ;;  %v526_v16 = vmul.f32 %v3391_v40, %v3391_v40  ;;  %2384 = vlog2.f32 %v3336_v3 }
  0x9e   : > { %v2375_v32 = vpop.eup %2374  ;;  %v438_v43 = vadd.f32 0.083333336, %v434_v52  ;;  %v440_v45 = vmul.f32 %v3298_v44, %v436_v9  ;;  %v462_v46 = vsub.f32 %v458_v61, %v3250_v17  ;;  %v528_v47 = vmul.f32 0.0007936508, %v524_v35 }
  0x9f   : > { %v2377_v48 = vpop.eup %2376  ;;  %v463_v38 = vsub.f32 %v459_v62, %v3254_v18  ;;  %v464_v1 = vadd.f32 0.9189385, %v460_v5  ;;  %v527_v2 = vmul.f32 %v3406_v37, %v3406_v37  ;;  %2386 = vlog2.f32 %v3349_v27 }
  0xa0   : > { %v439_v15 = vadd.f32 0.083333336, %v435_v21  ;;  %v529_v49 = vmul.f32 0.0007936508, %v525_v58  ;;  %v3429_v50 = vadd.f32 1.0, %v3400_v53  ;;  %v3432_v25 = vadd.f32 1.0, %v3404_v36 }
  0xa1   : > { %v2379_v44 = vpop.eup %2378  ;;  %v441_v17 = vmul.f32 %v3317_v55, %v437_v0  ;;  %v465_v26 = vadd.f32 0.9189385, %v461_v42  ;;  %v530_v56 = vmul.f32 0.0007936508, %v526_v16  ;;  %v553_v18 = vmul.f32 0.6931472, %v2375_v32 }
  0xa2   : > { %v2381_v29 = vpop.eup %2380  ;;  %v442_v30 = vmul.f32 %v3325_v59, %v438_v43  ;;  %v3436_v31 = vmul.f32 0.6931472, %v2373_v14  ;;  %v532_v51 = vadd.f32 -0.0027777778, %v528_v47  ;;  %v3439_v57 = vadd.f32 1.0, %v3412_v41 }
  0xa3   : > { %v2383_v52 = vpop.eup %2382  ;;  %v466_v9 = vadd.f32 0.9189385, %v462_v46  ;;  %v467_v61 = vadd.f32 0.9189385, %v463_v38  ;;  %v3441_v62 = vadd.f32 %v464_v1, %v440_v45  ;;  %v531_v5 = vmul.f32 0.0007936508, %v527_v2 }
  0xa4   : > { %v443_v55 = vmul.f32 %v3338_v4, %v439_v15  ;;  %v3444_v21 = vmul.f32 0.6931472, %v2377_v48  ;;  %v533_v0 = vadd.f32 -0.0027777778, %v529_v49  ;;  %v3447_v42 = vadd.f32 4.0, %v3400_v53 }
  0xa5   : > { %v3449_v59 = vadd.f32 %v465_v26, %v441_v17  ;;  %v3451_v14 = vmul.f32 0.6931472, %v2379_v44  ;;  %v534_v32 = vadd.f32 -0.0027777778, %v530_v56  ;;  %v560_v43 = vmul.f32 %v553_v18, %v3366_v39 }
  0xa6   : > { %v536_v46 = vmul.f32 %v532_v51, %v524_v35  ;;  %v555_v47 = vmul.f32 0.6931472, %v2383_v52  ;;  %2388 = vlog2.f32 %v3363_v8  ;;  %v3456_v45 = vadd.f32 4.0, %v3404_v36 }
  0xa7   : > { %v2385_v4 = vpop.eup %2384  ;;  %v3458_v48 = vadd.f32 %v466_v9, %v442_v30  ;;  %v535_v38 = vadd.f32 -0.0027777778, %v531_v5  ;;  %2390 = vlog2.f32 %v3372_v20  ;;  %v3462_v1 = vadd.f32 4.0, %v3412_v41 }
  0xa8   : > { %v3464_v15 = vmul.f32 0.6931472, %v2381_v29  ;;  %v480_v39 = vsub.f32 %v3441_v62, %v3436_v31  ;;  %v537_v35 = vmul.f32 %v533_v0, %v525_v58  ;;  %2392 = vrcp.f32 %v3447_v42 }
  0xa9   : > { %v2387_v8 = vpop.eup %2386  ;;  %v538_v49 = vmul.f32 %v534_v32, %v526_v16  ;;  %v564_v44 = vsub.f32 %v560_v43, %v3315_v54  ;;  %2394 = vlog2.f32 %v3377_v19  ;;  %v3472_v17 = vadd.f32 4.0, %v3416_v12 }
  0xaa   : > { %v540_v20 = vadd.f32 0.083333336, %v536_v46  ;;  %v557_v26 = vmul.f32 0.6931472, %v2385_v4  ;;  %v561_v56 = vmul.f32 %v555_v47, %v3370_v6  ;;  %2396 = vrcp.f32 %v3456_v45 }
  0xab   : > { %v3476_v18 = vadd.f32 %v467_v61, %v443_v55  ;;  %v481_v58 = vsub.f32 %v3449_v59, %v3444_v21  ;;  %v539_v29 = vmul.f32 %v535_v38, %v527_v2  ;;  %2398 = vrcp.f32 %v3462_v1 }
  0xac   : > { %v482_v54 = vsub.f32 %v3458_v48, %v3451_v14  ;;  %v559_v19 = vmul.f32 0.6931472, %v2387_v8  ;;  %2400 = vlog2.f32 %v3379_v33  ;;  %v599_v16 = vadd.f32 1.0, %v3416_v12 }
  0xad   : > { %v541_v30 = vadd.f32 0.083333336, %v537_v35  ;;  %v542_v6 = vadd.f32 0.083333336, %v538_v49  ;;  %v600_v51 = vadd.f32 2.0, %v3400_v53  ;;  %2402 = vrcp.f32 %v3472_v17 }
  0xae   : > { %v544_v52 = vmul.f32 %v3374_v28, %v540_v20  ;;  %v562_v2 = vmul.f32 %v557_v26, %v3382_v22  ;;  %v565_v9 = vsub.f32 %v561_v56, %v3328_v63  ;;  %v568_v61 = vadd.f32 0.9189385, %v564_v44 }
  0xaf   : > { %v543_v5 = vadd.f32 0.083333336, %v539_v29  ;;  %v601_v55 = vadd.f32 2.0, %v3404_v36  ;;  %v602_v33 = vadd.f32 2.0, %v3412_v41  ;;  %v603_v0 = vadd.f32 2.0, %v3416_v12 }
  0xb0   : > { %v2389_v32 = vpop.eup %2388  ;;  %v563_v43 = vmul.f32 %v559_v19, %v3388_v34  ;;  %v604_v46 = vadd.f32 3.0, %v3400_v53  ;;  %v605_v47 = vadd.f32 3.0, %v3404_v36  ;;  %2404 = vlog2.f32 %v3447_v42 }
  0xb1   : > { %v2391_v28 = vpop.eup %2390  ;;  %v545_v63 = vmul.f32 %v3384_v60, %v541_v30  ;;  %v546_v22 = vmul.f32 %v3391_v40, %v542_v6  ;;  %v606_v4 = vadd.f32 3.0, %v3412_v41  ;;  %v607_v38 = vadd.f32 3.0, %v3416_v12 }
  0xb2   : > { %v3501_v35 = vpop.eup %2392  ;;  %v566_v8 = vsub.f32 %v562_v2, %v3336_v3  ;;  %v569_v34 = vadd.f32 0.9189385, %v565_v9  ;;  %v572_v49 = vadd.f32 %v568_v61, %v544_v52  ;;  %2406 = vlog2.f32 %v3456_v45 }
  0xb3   : > { %v2395_v44 = vpop.eup %2394  ;;  %v577_v20 = vmul.f32 0.6931472, %v2389_v32  ;;  %v612_v26 = vmul.f32 %v3429_v50, %v3400_v53  ;;  %v613_v60 = vmul.f32 %v3432_v25, %v3404_v36  ;;  %2408 = vlog2.f32 %v3462_v1 }
  0xb4   : > { %v3510_v40 = vpop.eup %2396  ;;  %v567_v56 = vsub.f32 %v563_v43, %v3349_v27  ;;  %v614_v3 = vmul.f32 %v3439_v57, %v3412_v41  ;;  %v616_v29 = vmul.f32 %v604_v46, %v600_v51  ;;  %v617_v19 = vmul.f32 %v605_v47, %v601_v55 }
  0xb5   : > { %v3515_v30 = vpop.eup %2398  ;;  %v615_v6 = vmul.f32 %v599_v16, %v3416_v12  ;;  %v618_v52 = vmul.f32 %v606_v4, %v602_v33  ;;  %v632_v50 = vmul.f32 %v3501_v35, %v3501_v35  ;;  %2410 = vlog2.f32 %v3472_v17 }
  0xb6   : > { %v2401_v25 = vpop.eup %2400  ;;  %v570_v2 = vadd.f32 0.9189385, %v566_v8  ;;  %v573_v9 = vadd.f32 %v569_v34, %v545_v63  ;;  %v579_v61 = vmul.f32 0.6931472, %v2391_v28  ;;  %v619_v27 = vmul.f32 %v607_v38, %v603_v0 }
  0xb7   : > { %v3521_v32 = vpop.eup %2402  ;;  %v483_v57 = vsub.f32 %v3476_v18, %v3464_v15  ;;  %v547_v51 = vmul.f32 %v3406_v37, %v543_v5  ;;  %v584_v16 = vsub.f32 %v572_v49, %v577_v20  ;;  %v633_v55 = vmul.f32 %v3510_v40, %v3510_v40  ;;  %v3533_v49 = vld [vmem:[%s3217_s27 + $0x20] sm:$0xff] }
  0xb8   : > { %v571_v33 = vadd.f32 0.9189385, %v567_v56  ;;  %v620_v43 = vmul.f32 %v616_v29, %v612_v26  ;;  %v621_v46 = vmul.f32 %v617_v19, %v613_v60  ;;  %v634_v47 = vmul.f32 %v3515_v30, %v3515_v30  ;;  %5205 = vst [vmem:[#allocation20_spill] sm:$0xff] %v3533_v49  ;;  %v3543_v56 = vld [vmem:[%s3217_s27 + $0x28] sm:$0xff] }
  0xb9   : > { %v581_v0 = vmul.f32 0.6931472, %v2395_v44  ;;  %v583_v28 = vmul.f32 0.6931472, %v2401_v25  ;;  %v622_v63 = vmul.f32 %v618_v52, %v614_v3  ;;  %v636_v4 = vmul.f32 0.0007936508, %v632_v50 }
  0xba   : > { %v2405_v38 = vpop.eup %2404  ;;  %v574_v8 = vadd.f32 %v570_v2, %v546_v22  ;;  %v585_v37 = vsub.f32 %v573_v9, %v579_v61  ;;  %v623_v5 = vmul.f32 %v619_v27, %v615_v6  ;;  %v635_v34 = vmul.f32 %v3521_v32, %v3521_v32  ;;  %5206 = vst [vmem:[#allocation21_spill] sm:$0xff] %v3543_v56  ;;  %v3548_v52 = vld [vmem:[%s3217_s27 + $0x30] sm:$0xff]  ;;  %v3551_v25 = vld [vmem:[%s3217_s27 + $0x38] sm:$0xff] }
  0xbb   : > { %v3538_v20 = vadd.f32 %v584_v16, %v480_v39  ;;  %v637_v44 = vmul.f32 0.0007936508, %v633_v55  ;;  %v656_v26 = vadd.f32 3.5, %v3400_v53  ;;  %v657_v60 = vadd.f32 3.5, %v3404_v36  ;;  %5207 = vst [vmem:[#allocation22_spill] sm:$0xff] %v3548_v52  ;;  %5208 = vst [vmem:[#allocation23_spill] sm:$0xff] %v3551_v25 }
  0xbc   : > { %v2407_v22 = vpop.eup %2406  ;;  %v575_v3 = vadd.f32 %v571_v33, %v547_v51  ;;  %v638_v29 = vmul.f32 0.0007936508, %v634_v47  ;;  %v658_v19 = vadd.f32 3.5, %v3412_v41  ;;  %v659_v6 = vadd.f32 3.5, %v3416_v12  ;;  %v5209_v53 = vld [vmem:[#allocation16_spill] sm:$0xff]  ;;  %v5213_v33 = vld [vmem:[#allocation17_spill] sm:$0xff] }
  0xbd   : > { %v2409_v31 = vpop.eup %2408  ;;  %v640_v62 = vadd.f32 -0.0027777778, %v636_v4  ;;  %v661_v39 = vmul.f32 0.6931472, %v2405_v38  ;;  %v3555_v2 = vadd.f32 %v5209_v53, %v3266_v23  ;;  %v3558_v36 = vadd.f32 1e-10, %v3533_v49 }
  0xbe   : > { %v586_v9 = vsub.f32 %v574_v8, %v581_v0  ;;  %v3563_v41 = vadd.f32 %v585_v37, %v481_v58  ;;  %v639_v12 = vmul.f32 0.0007936508, %v635_v34  ;;  %v3566_v61 = vadd.f32 1e-10, %v3543_v56 }
  0xbf   : > { %5210 = vst [vmem:[#allocation16_spill] sm:$0xff] %v3555_v2  ;;  %5211 = vst [vmem:[#allocation24_spill] sm:$0xff] %v3558_v36  ;;  %v2411_v27 = vpop.eup %2410  ;;  %v641_v51 = vadd.f32 -0.0027777778, %v637_v44  ;;  %v663_v16 = vmul.f32 0.6931472, %v2407_v22  ;;  %v3570_v23 = vadd.f32 %v5213_v33, %v3269_v24  ;;  %2412 = vlog2.f32 %v620_v43 }
  0xc0   : > { %5212 = vst [vmem:[#allocation25_spill] sm:$0xff] %v3566_v61  ;;  %v3573_v4 = vadd.f32 1e-10, %v3548_v52  ;;  %v642_v0 = vadd.f32 -0.0027777778, %v638_v29  ;;  %v587_v59 = vsub.f32 %v575_v3, %v583_v28  ;;  %v644_v58 = vmul.f32 %v640_v62, %v632_v50 }
  0xc1   : > { %5214 = vst [vmem:[#allocation17_spill] sm:$0xff] %v3570_v23  ;;  %v665_v38 = vmul.f32 0.6931472, %v2409_v31  ;;  %v3576_v21 = vadd.f32 1e-10, %v3551_v25  ;;  %v668_v8 = vmul.f32 %v661_v39, %v656_v26  ;;  %v3579_v37 = vadd.f32 4.0, %v3558_v36 }
  0xc2   : > { %5215 = vst [vmem:[#allocation26_spill] sm:$0xff] %v3573_v4  ;;  %v643_v44 = vadd.f32 -0.0027777778, %v639_v12  ;;  %v667_v22 = vmul.f32 0.6931472, %v2411_v27  ;;  %2414 = vlog2.f32 %v621_v46  ;;  %v3582_v24 = vadd.f32 4.0, %v3566_v61 }
  0xc3   : > { %5216 = vst [vmem:[#allocation27_spill] sm:$0xff] %v3576_v21  ;;  %v645_v53 = vmul.f32 %v641_v51, %v633_v55  ;;  %v669_v33 = vmul.f32 %v663_v16, %v657_v60  ;;  %2416 = vlog2.f32 %v622_v63  ;;  %v3585_v43 = vadd.f32 4.0, %v3573_v4 }
  0xc4   : > { %v646_v29 = vmul.f32 %v642_v0, %v634_v47  ;;  %v670_v31 = vmul.f32 %v665_v38, %v658_v19  ;;  %2418 = vlog2.f32 %v623_v5  ;;  %v3588_v50 = vadd.f32 4.0, %v3576_v21 }
  0xc5   : > { %v3593_v28 = vadd.f32 %v586_v9, %v482_v54  ;;  %v648_v46 = vadd.f32 0.083333336, %v644_v58  ;;  %v672_v26 = vsub.f32 %v668_v8, %v3447_v42  ;;  %2420 = vrcp.f32 %v3579_v37 }
  0xc6   : > { %v3600_v55 = vadd.f32 %v587_v59, %v483_v57  ;;  %v647_v47 = vmul.f32 %v643_v44, %v635_v34  ;;  %v671_v63 = vmul.f32 %v667_v22, %v659_v6  ;;  %2422 = vrcp.f32 %v3582_v24 }
  0xc7   : > { %v649_v5 = vadd.f32 0.083333336, %v645_v53  ;;  %v673_v60 = vsub.f32 %v669_v33, %v3456_v45  ;;  %v802_v14 = vadd.f32 1.0, %v3558_v36  ;;  %2424 = vrcp.f32 %v3585_v43 }
  0xc8   : > { %v650_v48 = vadd.f32 0.083333336, %v646_v29  ;;  %v674_v42 = vsub.f32 %v670_v31, %v3462_v1  ;;  %v803_v54 = vadd.f32 1.0, %v3566_v61  ;;  %2426 = vrcp.f32 %v3588_v50 }
  0xc9   : > { %v652_v15 = vmul.f32 %v3501_v35, %v648_v46  ;;  %v676_v18 = vadd.f32 0.9189385, %v672_v26  ;;  %2428 = vlog2.f32 %v3221_v7  ;;  %v804_v57 = vadd.f32 1.0, %v3573_v4  ;;  %v2413_v34 = vpop.eup %2412 }
  0xca   : > { %v651_v45 = vadd.f32 0.083333336, %v647_v47  ;;  %v675_v3 = vsub.f32 %v671_v63, %v3472_v17  ;;  %v3614_v19 = vadd.f32 1.0, %v3576_v21  ;;  %v806_v1 = vadd.f32 2.0, %v3558_v36 }
  0xcb   : > { %v653_v6 = vmul.f32 %v3510_v40, %v649_v5  ;;  %v677_v62 = vadd.f32 0.9189385, %v673_v60  ;;  %2430 = vrcp.f32 %v3221_v7  ;;  %v807_v35 = vadd.f32 2.0, %v3566_v61 }
  0xcc   : > { %v2415_v39 = vpop.eup %2414  ;;  %v654_v9 = vmul.f32 %v3515_v30, %v650_v48  ;;  %v678_v12 = vadd.f32 0.9189385, %v674_v42  ;;  %2432 = vrcp.f32 %v3229_v10  ;;  %v808_v17 = vadd.f32 2.0, %v3573_v4  ;;  %v3702_v42 = vld [vmem:[%s3200_s5 + $0x38] sm:$0xff] }
  0xcd   : > { %v2417_v27 = vpop.eup %2416  ;;  %v680_v51 = vadd.f32 %v676_v18, %v652_v15  ;;  %v685_v16 = vmul.f32 0.6931472, %v2413_v34  ;;  %v809_v0 = vadd.f32 2.0, %v3576_v21  ;;  %2434 = vlog2.f32 %v3579_v37  ;;  %5222 = vst [vmem:[#allocation33_spill] sm:$0xff] %v3702_v42 }
  0xce   : > { %v2419_v40 = vpop.eup %2418  ;;  %v655_v7 = vmul.f32 %v3521_v32, %v651_v45  ;;  %v679_v38 = vadd.f32 0.9189385, %v675_v3  ;;  %v810_v59 = vadd.f32 3.0, %v3558_v36  ;;  %2436 = vlog2.f32 %v3582_v24 }
  0xcf   : > { %v3628_v30 = vpop.eup %2420  ;;  %v3630_v58 = vadd.f32 %v677_v62, %v653_v6  ;;  %v3632_v8 = vmul.f32 0.6931472, %v2415_v39  ;;  %v811_v44 = vadd.f32 3.0, %v3566_v61  ;;  %2438 = vlog2.f32 %v3585_v43 }
  0xd0   : > { %v3636_v22 = vpop.eup %2422  ;;  %v3638_v53 = vadd.f32 %v678_v12, %v654_v9  ;;  %v3640_v32 = vmul.f32 0.6931472, %v2417_v27  ;;  %v812_v33 = vadd.f32 3.0, %v3573_v4  ;;  %2440 = vlog2.f32 %v3588_v50 }
  0xd1   : > { %v3644_v29 = vpop.eup %2424  ;;  %v692_v31 = vsub.f32 %v680_v51, %v685_v16  ;;  %2442 = vrcp.f32 %v3232_v11  ;;  %v813_v46 = vadd.f32 3.0, %v3576_v21  ;;  %v818_v26 = vmul.f32 %v802_v14, %v3558_v36 }
  0xd2   : > { %v3649_v47 = vpop.eup %2426  ;;  %v3651_v63 = vadd.f32 %v679_v38, %v655_v7  ;;  %v3653_v5 = vmul.f32 0.6931472, %v2419_v40  ;;  %2444 = vrcp.f32 %v3238_v13  ;;  %v3658_v60 = vmul.f32 %v3628_v30, %v3628_v30 }
  0xd3   : > { %v2429_v48 = vpop.eup %2428  ;;  %2446 = vlog2.f32 %v3229_v10  ;;  %v819_v14 = vmul.f32 %v803_v54, %v3566_v61  ;;  %v839_v15 = vmul.f32 %v3636_v22, %v3636_v22  ;;  %v822_v34 = vmul.f32 %v810_v59, %v806_v1 }
  0xd4   : > { %v823_v45 = vmul.f32 %v811_v44, %v807_v35  ;;  %v840_v3 = vmul.f32 %v3644_v29, %v3644_v29  ;;  %v3673_v62 = vsub.f32 %v3538_v20, %v692_v31  ;;  %v820_v10 = vmul.f32 %v804_v57, %v3573_v4  ;;  %v3688_v57 = vld [vmem:[%s3200_s5 + $0x20] sm:$0xff] }
  0xd5   : > { %v3670_v6 = vpop.eup %2430  ;;  %v824_v54 = vmul.f32 %v812_v33, %v808_v17  ;;  %v841_v39 = vmul.f32 %v3649_v47, %v3649_v47  ;;  %v3682_v35 = vmul.f32 0.6931472, %v2429_v48  ;;  %2448 = vlog2.f32 %v3232_v11  ;;  %v3691_v17 = vld [vmem:[%s3200_s5 + $0x28] sm:$0xff]  ;;  %v3697_v33 = vld [vmem:[%s3200_s5 + $0x30] sm:$0xff] }
  0xd6   : > { %5217 = vst [vmem:[#allocation28_spill] sm:$0xff] %v3670_v6  ;;  %5218 = vst [vmem:[#allocation29_spill] sm:$0xff] %v3673_v62  ;;  %v3678_v9 = vpop.eup %2432  ;;  %v842_v12 = vmul.f32 0.0007936508, %v3658_v60  ;;  %2450 = vlog2.f32 %v3238_v13  ;;  %v821_v27 = vmul.f32 %v3614_v19, %v3576_v21  ;;  %v825_v51 = vmul.f32 %v813_v46, %v809_v0 }
  0xd7   : > { %5219 = vst [vmem:[#allocation30_spill] sm:$0xff] %v3678_v9  ;;  %5220 = vst [vmem:[#allocation31_spill] sm:$0xff] %v3682_v35  ;;  %v2435_v20 = vpop.eup %2434  ;;  %v843_v16 = vmul.f32 0.0007936508, %v839_v15  ;;  %v826_v7 = vmul.f32 %v822_v34, %v818_v26  ;;  %v827_v38 = vmul.f32 %v823_v45, %v819_v14  ;;  %v844_v59 = vmul.f32 0.0007936508, %v840_v3 }
  0xd8   : > { %v2437_v40 = vpop.eup %2436  ;;  %v862_v11 = vadd.f32 3.5, %v3558_v36  ;;  %5221 = vst [vmem:[#allocation32_spill] sm:$0xff] %v3697_v33  ;;  %v828_v13 = vmul.f32 %v824_v54, %v820_v10  ;;  %v845_v31 = vmul.f32 0.0007936508, %v841_v39  ;;  %v863_v48 = vadd.f32 3.5, %v3566_v61 }
  0xd9   : > { %v2439_v44 = vpop.eup %2438  ;;  %v864_v1 = vadd.f32 3.5, %v3573_v4  ;;  %v846_v19 = vadd.f32 -0.0027777778, %v842_v12  ;;  %v865_v0 = vadd.f32 3.5, %v3576_v21  ;;  %v3706_v46 = vadd.f32 1.0, %v3688_v57 }
  0xda   : > { %v2441_v18 = vpop.eup %2440  ;;  %v3709_v26 = vadd.f32 1.0, %v3691_v17  ;;  %v829_v34 = vmul.f32 %v825_v51, %v821_v27  ;;  %v847_v45 = vadd.f32 -0.0027777778, %v843_v16  ;;  %v867_v10 = vmul.f32 0.6931472, %v2435_v20 }
  0xdb   : > { %v3711_v14 = vpop.eup %2442  ;;  %v869_v54 = vmul.f32 0.6931472, %v2437_v40  ;;  %v848_v52 = vadd.f32 -0.0027777778, %v844_v59  ;;  %v871_v23 = vmul.f32 0.6931472, %v2439_v44  ;;  %2452 = vlog2.f32 %v826_v7 }
  0xdc   : > { %5223 = vst [vmem:[#allocation34_spill] sm:$0xff] %v3711_v14  ;;  %v3713_v25 = vpop.eup %2444  ;;  %v3716_v12 = vadd.f32 1.0, %v3697_v33  ;;  %v849_v2 = vadd.f32 -0.0027777778, %v845_v31  ;;  %v873_v35 = vmul.f32 0.6931472, %v2441_v18  ;;  %2454 = vlog2.f32 %v827_v38 }
  0xdd   : > { %5224 = vst [vmem:[#allocation35_spill] sm:$0xff] %v3713_v25  ;;  %v3718_v62 = vpop.eup %2446  ;;  %v3721_v9 = vadd.f32 1.0, %v3702_v42  ;;  %2456 = vlog2.f32 %v828_v13  ;;  %v906_v20 = vadd.f32 1.0, %v3706_v46  ;;  %v910_v27 = vadd.f32 2.0, %v3706_v46 }
  0xde   : > { %v914_v51 = vadd.f32 3.0, %v3706_v46  ;;  %v850_v16 = vmul.f32 %v846_v19, %v3658_v60  ;;  %v851_v40 = vmul.f32 %v847_v45, %v839_v15  ;;  %v874_v7 = vmul.f32 %v867_v10, %v862_v11 }
  0xdf   : > { %v875_v59 = vmul.f32 %v869_v54, %v863_v48  ;;  %v3727_v44 = vpop.eup %2448  ;;  %v852_v31 = vmul.f32 %v848_v52, %v840_v3  ;;  %v876_v18 = vmul.f32 %v871_v23, %v864_v1  ;;  %2458 = vlog2.f32 %v829_v34 }
  0xe0   : > { %v907_v38 = vadd.f32 1.0, %v3709_v26  ;;  %v2451_v25 = vpop.eup %2450  ;;  %v853_v13 = vmul.f32 %v849_v2, %v841_v39  ;;  %v877_v14 = vmul.f32 %v873_v35, %v865_v0  ;;  %v908_v56 = vadd.f32 1.0, %v3716_v12 }
  0xe1   : > { %v909_v6 = vadd.f32 1.0, %v3721_v9  ;;  %v911_v49 = vadd.f32 2.0, %v3709_v26  ;;  %v912_v60 = vadd.f32 2.0, %v3716_v12  ;;  %v913_v15 = vadd.f32 2.0, %v3721_v9 }
  0xe2   : > { %v915_v11 = vadd.f32 3.0, %v3709_v26  ;;  %v854_v52 = vadd.f32 0.083333336, %v850_v16  ;;  %v855_v23 = vadd.f32 0.083333336, %v851_v40  ;;  %v878_v3 = vsub.f32 %v874_v7, %v3579_v37 }
  0xe3   : > { %v879_v1 = vsub.f32 %v875_v59, %v3582_v24  ;;  %v856_v2 = vadd.f32 0.083333336, %v852_v31  ;;  %v880_v39 = vsub.f32 %v876_v18, %v3585_v43  ;;  %v916_v35 = vadd.f32 3.0, %v3716_v12 }
  0xe4   : > { %v3741_v48 = vadd.f32 4.0, %v3706_v46  ;;  %v857_v19 = vadd.f32 0.083333336, %v853_v13  ;;  %v881_v0 = vsub.f32 %v877_v14, %v3588_v50  ;;  %v917_v34 = vadd.f32 3.0, %v3721_v9 }
  0xe5   : > { %v3746_v45 = vadd.f32 4.0, %v3709_v26  ;;  %v2453_v10 = vpop.eup %2452  ;;  %v3749_v37 = vadd.f32 4.0, %v3716_v12  ;;  %v3752_v24 = vadd.f32 4.0, %v3721_v9  ;;  %v922_v43 = vmul.f32 %v906_v20, %v3706_v46 }
  0xe6   : > { %v923_v54 = vmul.f32 %v907_v38, %v3709_v26  ;;  %v2455_v16 = vpop.eup %2454  ;;  %v858_v40 = vmul.f32 %v3628_v30, %v854_v52  ;;  %v859_v50 = vmul.f32 %v3636_v22, %v855_v23  ;;  %v882_v14 = vadd.f32 0.9189385, %v878_v3 }
  0xe7   : > { %v883_v7 = vadd.f32 0.9189385, %v879_v1  ;;  %v2457_v59 = vpop.eup %2456  ;;  %v860_v31 = vmul.f32 %v3644_v29, %v856_v2  ;;  %v884_v18 = vadd.f32 0.9189385, %v880_v39  ;;  %v924_v13 = vmul.f32 %v908_v56, %v3716_v12 }
  0xe8   : > { %2460 = vrcp.f32 %v3741_v48  ;;  %v861_v42 = vmul.f32 %v3649_v47, %v857_v19  ;;  %v885_v20 = vadd.f32 0.9189385, %v881_v0  ;;  %v925_v38 = vmul.f32 %v909_v6, %v3721_v9 }
  0xe9   : > { %2462 = vrcp.f32 %v3746_v45  ;;  %v2459_v30 = vpop.eup %2458  ;;  %v926_v22 = vmul.f32 %v914_v51, %v910_v27  ;;  %v927_v52 = vmul.f32 %v915_v11, %v911_v49  ;;  %v928_v23 = vmul.f32 %v916_v35, %v912_v60  ;;  %v360_v49 = vld [vmem:[%s3207_s24] sm:$0xff] }
  0xea   : > { %2464 = vrcp.f32 %v3749_v37  ;;  %v3765_v29 = vadd.f32 %v882_v14, %v858_v40  ;;  %v3767_v3 = vadd.f32 %v883_v7, %v859_v50  ;;  %v3769_v56 = vmul.f32 0.6931472, %v2453_v10 }
  0xeb   : > { %v3771_v1 = vmul.f32 0.6931472, %v2455_v16  ;;  %v3773_v47 = vadd.f32 %v884_v18, %v860_v31  ;;  %v3775_v2 = vmul.f32 0.6931472, %v2457_v59  ;;  %v929_v6 = vmul.f32 %v917_v34, %v913_v15  ;;  %v5240_v31 = vld [vmem:[#allocation33_spill] sm:$0xff] }
  0xec   : > { %5225 = vst [vmem:[#allocation36_spill] sm:$0xff] %v3765_v29  ;;  %5226 = vst [vmem:[#allocation37_spill] sm:$0xff] %v3767_v3  ;;  %2466 = vrcp.f32 %v3752_v24  ;;  %v5231_v27 = vsub.f32 %v3630_v58, %v3632_v8  ;;  %v5233_v60 = vsub.f32 %v3638_v53, %v3640_v32  ;;  %v3791_v39 = vadd.f32 %v885_v20, %v861_v42 }
  0xed   : > { %5227 = vst [vmem:[#allocation38_spill] sm:$0xff] %v3769_v56  ;;  %5228 = vst [vmem:[#allocation39_spill] sm:$0xff] %v3771_v1  ;;  %v3793_v15 = vmul.f32 0.6931472, %v2459_v30  ;;  %v5237_v19 = vsub.f32 %v3651_v63, %v3653_v5  ;;  %v3805_v8 = vmul.f32 0.6931472, %v3727_v44  ;;  %v930_v42 = vmul.f32 %v926_v22, %v922_v43 }
  0xee   : > { %5229 = vst [vmem:[#allocation40_spill] sm:$0xff] %v3773_v47  ;;  %5230 = vst [vmem:[#allocation41_spill] sm:$0xff] %v3775_v2  ;;  %v3783_v51 = vsub.f32 %v3563_v41, %v5231_v27  ;;  %v3789_v11 = vsub.f32 %v3593_v28, %v5233_v60  ;;  %v3802_v41 = vmul.f32 0.6931472, %v3718_v62  ;;  %v3807_v28 = vmul.f32 0.6931472, %v2451_v25 }
  0xef   : > { %5235 = vst [vmem:[#allocation44_spill] sm:$0xff] %v3791_v39  ;;  %5236 = vst [vmem:[#allocation45_spill] sm:$0xff] %v3793_v15  ;;  %v3799_v58 = vsub.f32 %v3600_v55, %v5237_v19  ;;  %v931_v63 = vmul.f32 %v927_v52, %v923_v54  ;;  %v361_v5 = vld [vmem:[%s3207_s24 + $0x8] sm:$0xff]  ;;  %v932_v62 = vmul.f32 %v928_v23, %v924_v13  ;;  %v3819_v44 = vadd.f32 3.5, %v3706_v46  ;;  %v362_v25 = vld [vmem:[%s3207_s24 + $0x10] sm:$0xff] }
  0xf0   : > { %5232 = vst [vmem:[#allocation42_spill] sm:$0xff] %v3783_v51  ;;  %5234 = vst [vmem:[#allocation43_spill] sm:$0xff] %v3789_v11  ;;  %v3816_v0 = vmul.f32 %v929_v6, %v925_v38  ;;  %v3825_v16 = vadd.f32 3.5, %v3709_v26  ;;  %2468 = vlog2.f32 %v3741_v48  ;;  %v363_v54 = vld [vmem:[%s3207_s24 + $0x18] sm:$0xff]  ;;  %v3832_v40 = vadd.f32 3.5, %v3716_v12  ;;  %v5241_v13 = vld [vmem:[#allocation20_spill] sm:$0xff] }
  0xf1   : > { %5238 = vst [vmem:[#allocation46_spill] sm:$0xff] %v3799_v58  ;;  %5239 = vst [vmem:[#allocation47_spill] sm:$0xff] %v3807_v28  ;;  %v3835_v50 = vadd.f32 3.5, %v3721_v9  ;;  %2470 = vlog2.f32 %v3746_v45  ;;  %v3840_v46 = vadd.f32 %v3688_v57, %v3558_v36  ;;  %v3847_v7 = vadd.f32 %v3691_v17, %v3566_v61  ;;  %v5243_v30 = vld [vmem:[#allocation28_spill] sm:$0xff]  ;;  %v5244_v23 = vld [vmem:[#allocation21_spill] sm:$0xff] }
  0xf2   : > { %v3828_v43 = vpop.eup %2460  ;;  %2472 = vlog2.f32 %v3749_v37  ;;  %v3851_v12 = vadd.f32 %v3697_v33, %v3573_v4  ;;  %v3858_v18 = vadd.f32 %v5240_v31, %v3576_v21  ;;  %v3862_v20 = vadd.f32 %v5241_v13, %v3688_v57  ;;  %v5246_v19 = vld [vmem:[#allocation30_spill] sm:$0xff] }
  0xf3   : > { %v3842_v14 = vpop.eup %2462  ;;  %2474 = vlog2.f32 %v3752_v24  ;;  %v3866_v52 = vadd.f32 1.0, %v3840_v46  ;;  %v3870_v6 = vadd.f32 %v5244_v23, %v3691_v17  ;;  %v942_v27 = vmul.f32 %v3828_v43, %v3828_v43  ;;  %v5247_v13 = vld [vmem:[#allocation34_spill] sm:$0xff] }
  0xf4   : > { %v3853_v9 = vpop.eup %2464  ;;  %5242 = vst [vmem:[#allocation20_spill] sm:$0xff] %v3862_v20  ;;  %v943_v60 = vmul.f32 %v3842_v14, %v3842_v14  ;;  %v3879_v57 = vadd.f32 1.0, %v3847_v7  ;;  %v3895_v23 = vadd.f32 2.0, %v3847_v7  ;;  %v3898_v10 = vadd.f32 2.0, %v3851_v12 }
  0xf5   : > { %5245 = vst [vmem:[#allocation28_spill] sm:$0xff] %v3870_v6  ;;  %v944_v17 = vmul.f32 %v3853_v9, %v3853_v9  ;;  %v3901_v55 = vadd.f32 2.0, %v3858_v18  ;;  %v3907_v20 = vadd.f32 3.0, %v3840_v46  ;;  %2476 = vlog2.f32 %v930_v42 }
  0xf6   : > { %v947_v33 = vmul.f32 0.0007936508, %v943_v60  ;;  %2478 = vlog2.f32 %v931_v63  ;;  %v1023_v36 = vadd.f32 3.0, %v3847_v7  ;;  %v3913_v1 = vadd.f32 4.0, %v3840_v46 }
  0xf7   : > { %v948_v61 = vmul.f32 0.0007936508, %v944_v17  ;;  %2480 = vlog2.f32 %v932_v62  ;;  %v3916_v28 = vadd.f32 4.0, %v3847_v7 }
  0xf8   : > { %v951_v3 = vadd.f32 -0.0027777778, %v947_v33 }
 0x102   : > { %v374_v35 = vpop.permute.xlu0 %373 }
 0x103   : > { %v376_v34 = vmul.f32 %v374_v35, %v360_v49  ;;  %v377_v26 = vmul.f32 %v374_v35, %v361_v5  ;;  %v378_v59 = vmul.f32 %v374_v35, %v362_v25  ;;  %v379_v38 = vmul.f32 %v374_v35, %v363_v54  ;;  %v3872_v49 = vpop.eup %2466 }
 0x104   : > { %v3882_v35 = vadd.f32 1.0, %v3851_v12  ;;  %v3888_v25 = vadd.f32 1.0, %v3858_v18  ;;  %v3891_v54 = vadd.f32 2.0, %v3840_v46  ;;  %v945_v6 = vmul.f32 %v3872_v49, %v3872_v49  ;;  %v2469_v21 = vpop.eup %2468 }
 0x105   : > { %v705_v22 = vmul.f32 %v5243_v30, %v376_v34  ;;  %v707_v5 = vmul.f32 %v5246_v19, %v377_v26  ;;  %v709_v30 = vmul.f32 %v5247_v13, %v378_v59  ;;  %v5248_v19 = vld [vmem:[#allocation35_spill] sm:$0xff]  ;;  %v740_v31 = vadd.f32 1e-10, %v376_v34  ;;  %v2471_v15 = vpop.eup %2470 }
 0x106   : > { %v711_v32 = vmul.f32 %v5248_v19, %v379_v38  ;;  %v946_v13 = vmul.f32 0.0007936508, %v942_v27  ;;  %v1025_v19 = vadd.f32 3.0, %v3858_v18  ;;  %v2473_v2 = vpop.eup %2472  ;;  %v949_v34 = vmul.f32 0.0007936508, %v945_v6 }
 0x107   : > { %v712_v53 = vadd.f32 1.0, %v705_v22  ;;  %v713_v4 = vadd.f32 1.0, %v707_v5  ;;  %v714_v39 = vadd.f32 1.0, %v709_v30  ;;  %v1024_v22 = vadd.f32 3.0, %v3851_v12  ;;  %v2475_v42 = vpop.eup %2474 }
 0x108   : > { %v715_v47 = vadd.f32 1.0, %v711_v32  ;;  %v741_v5 = vadd.f32 1e-10, %v377_v26  ;;  %v950_v63 = vadd.f32 -0.0027777778, %v946_v13  ;;  %v955_v26 = vmul.f32 %v951_v3, %v943_v60  ;;  %v2477_v33 = vpop.eup %2476 }
 0x109   : > { %2482 = vlog2.f32 %v712_v53  ;;  %v742_v56 = vadd.f32 1e-10, %v378_v59  ;;  %v952_v30 = vadd.f32 -0.0027777778, %v948_v61  ;;  %v971_v62 = vmul.f32 0.6931472, %v2469_v21 }
 0x10a   : > { %2484 = vlog2.f32 %v740_v31  ;;  %v743_v29 = vadd.f32 1e-10, %v379_v38  ;;  %v973_v58 = vmul.f32 0.6931472, %v2471_v15  ;;  %v975_v11 = vmul.f32 0.6931472, %v2473_v2 }
 0x10b   : > { %2486 = vlog2.f32 %v713_v4  ;;  %v953_v32 = vadd.f32 -0.0027777778, %v949_v34  ;;  %v977_v53 = vmul.f32 0.6931472, %v2475_v42  ;;  %v954_v51 = vmul.f32 %v950_v63, %v942_v27 }
 0x10c   : > { %2488 = vlog2.f32 %v714_v39  ;;  %v3919_v31 = vadd.f32 4.0, %v3851_v12  ;;  %v956_v61 = vmul.f32 %v952_v30, %v944_v17  ;;  %v978_v4 = vmul.f32 %v971_v62, %v3819_v44  ;;  %v2479_v39 = vpop.eup %2478 }
 0x10d   : > { %2490 = vlog2.f32 %v715_v47  ;;  %v3923_v21 = vadd.f32 4.0, %v3858_v18  ;;  %v979_v47 = vmul.f32 %v973_v58, %v3825_v16  ;;  %v980_v2 = vmul.f32 %v975_v11, %v3832_v40  ;;  %v3937_v59 = vpop.eup %2480  ;;  %v2224_v58 = vld [vmem:[%s3207_s24 + $0x20] sm:$0xff] }
 0x10e   : > { %2492 = vlog2.f32 %v741_v5  ;;  %v3929_v3 = vmul.f32 %v3866_v52, %v3840_v46  ;;  %v957_v15 = vmul.f32 %v953_v32, %v945_v6  ;;  %v3935_v44 = vmul.f32 %v3879_v57, %v3847_v7 }
 0x10f   : > { %2494 = vlog2.f32 %v742_v56  ;;  %v981_v56 = vmul.f32 %v977_v53, %v3835_v50  ;;  %v958_v11 = vadd.f32 0.083333336, %v954_v51  ;;  %v959_v16 = vadd.f32 0.083333336, %v955_v26  ;;  %v5249_v26 = vld [vmem:[#allocation18_spill] sm:$0xff] }
 0x110   : > { %2496 = vlog2.f32 %v743_v29  ;;  %v3939_v29 = vpop.permute.xlu0 %791  ;;  %v3944_v40 = vmul.f32 %v3882_v35, %v3851_v12  ;;  %v3948_v50 = vmul.f32 %v3888_v25, %v3858_v18  ;;  %v960_v38 = vadd.f32 0.083333336, %v956_v61 }
 0x111   : > { %2498 = vlog2.f32 %v3816_v0  ;;  %v982_v52 = vsub.f32 %v978_v4, %v3741_v48  ;;  %v3953_v6 = vmul.f32 %v3907_v20, %v3891_v54  ;;  %v3956_v51 = vmul.f32 %v1023_v36, %v3895_v23  ;;  %v2225_v23 = vld [vmem:[%s3207_s24 + $0x28] sm:$0xff] }
 0x112   : > { %v983_v60 = vsub.f32 %v979_v47, %v3746_v45  ;;  %v984_v57 = vsub.f32 %v980_v2, %v3749_v37  ;;  %v3961_v35 = vmul.f32 %v1024_v22, %v3898_v10  ;;  %v3964_v17 = vmul.f32 %v1025_v19, %v3901_v55  ;;  %v2226_v22 = vld [vmem:[%s3207_s24 + $0x30] sm:$0xff] }
 0x113   : > { %v2483_v0 = vpop.eup %2482  ;;  %v3967_v25 = vmul.f32 %v2224_v58, %v3939_v29  ;;  %v961_v20 = vadd.f32 0.083333336, %v957_v15  ;;  %v985_v36 = vsub.f32 %v981_v56, %v3752_v24  ;;  %2500 = vrcp.f32 %v3913_v1  ;;  %v5250_v58 = vld [vmem:[#allocation31_spill] sm:$0xff] }
 0x114   : > { %v2485_v27 = vpop.eup %2484  ;;  %v717_v45 = vmul.f32 0.6931472, %v2483_v0  ;;  %v962_v37 = vmul.f32 %v3828_v43, %v958_v11  ;;  %v963_v10 = vmul.f32 %v3842_v14, %v959_v16  ;;  %2502 = vrcp.f32 %v3916_v28  ;;  %v5251_v0 = vld [vmem:[#allocation19_spill] sm:$0xff] }
 0x115   : > { %v2487_v48 = vpop.eup %2486  ;;  %v745_v13 = vmul.f32 0.6931472, %v2485_v27  ;;  %v964_v19 = vmul.f32 %v3853_v9, %v960_v38  ;;  %v986_v34 = vadd.f32 0.9189385, %v982_v52  ;;  %2504 = vrcp.f32 %v3919_v31 }
 0x116   : > { %v2489_v54 = vpop.eup %2488  ;;  %v719_v42 = vmul.f32 0.6931472, %v2487_v48  ;;  %v987_v5 = vadd.f32 0.9189385, %v983_v60  ;;  %v988_v63 = vadd.f32 0.9189385, %v984_v57  ;;  %2506 = vrcp.f32 %v3923_v21 }
 0x117   : > { %v2491_v55 = vpop.eup %2490  ;;  %v721_v43 = vmul.f32 0.6931472, %v2489_v54  ;;  %v3980_v14 = vmul.f32 %v2225_v23, %v3939_v29  ;;  %v965_v62 = vmul.f32 %v3872_v49, %v961_v20  ;;  %v989_v32 = vadd.f32 0.9189385, %v985_v36  ;;  %v5252_v60 = vld [vmem:[#allocation16_spill] sm:$0xff]  ;;  %v2227_v36 = vld [vmem:[%s3207_s24 + $0x38] sm:$0xff] }
 0x118   : > { %v2493_v24 = vpop.eup %2492  ;;  %v724_v9 = vmul.f32 %v717_v45, %v5249_v26  ;;  %v3985_v61 = vmul.f32 %v2226_v22, %v3939_v29  ;;  %v995_v4 = vmul.f32 0.6931472, %v2477_v33  ;;  %v997_v47 = vmul.f32 0.6931472, %v2479_v39  ;;  %v5253_v33 = vld [vmem:[#allocation29_spill] sm:$0xff] }
 0x119   : > { %v2495_v30 = vpop.eup %2494  ;;  %v723_v15 = vmul.f32 0.6931472, %v2491_v55  ;;  %v747_v56 = vmul.f32 0.6931472, %v2493_v24  ;;  %v752_v11 = vsub.f32 %v5250_v58, %v745_v13  ;;  %v990_v16 = vadd.f32 %v986_v34, %v962_v37  ;;  %v5254_v37 = vld [vmem:[#allocation17_spill] sm:$0xff]  ;;  %v2764_v13 = vld [vmem:[%s3200_s5] sm:$0xff] }
 0x11a   : > { %v2497_v53 = vpop.eup %2496  ;;  %v725_v38 = vmul.f32 %v719_v42, %v5251_v0  ;;  %v749_v49 = vmul.f32 0.6931472, %v2495_v30  ;;  %v991_v52 = vadd.f32 %v987_v5, %v963_v10  ;;  %v992_v27 = vadd.f32 %v988_v63, %v964_v19  ;;  %v5255_v5 = vld [vmem:[#allocation42_spill] sm:$0xff]  ;;  %v5256_v30 = vld [vmem:[#allocation47_spill] sm:$0xff] }
 0x11b   : > { %v2499_v2 = vpop.eup %2498  ;;  %v726_v57 = vmul.f32 %v721_v43, %v5252_v60  ;;  %v751_v48 = vmul.f32 0.6931472, %v2497_v53  ;;  %v993_v20 = vadd.f32 %v989_v32, %v965_v62  ;;  %2508 = vlog2.f32 %v3913_v1 }
 0x11c   : > { %v728_v39 = vadd.f32 %v724_v9, %v5253_v33  ;;  %v999_v54 = vmul.f32 0.6931472, %v3937_v59  ;;  %v1001_v45 = vmul.f32 0.6931472, %v2499_v2  ;;  %2510 = vlog2.f32 %v3916_v28 }
 0x11d   : > { %v3995_v23 = vpop.eup %2500  ;;  %v727_v55 = vmul.f32 %v723_v15, %v5254_v37  ;;  %v753_v10 = vsub.f32 %v3802_v41, %v747_v56  ;;  %v756_v22 = vmul.f32 %v2764_v13, %v752_v11  ;;  %2512 = vlog2.f32 %v3919_v31  ;;  %v2765_v15 = vld [vmem:[%s3200_s5 + $0x8] sm:$0xff]  ;;  %v5259_v11 = vld [vmem:[#allocation36_spill] sm:$0xff] }
 0x11e   : > { %v4001_v19 = vpop.eup %2502  ;;  %v754_v34 = vsub.f32 %v3805_v8, %v749_v49  ;;  %v1002_v24 = vsub.f32 %v990_v16, %v995_v4  ;;  %v1003_v59 = vsub.f32 %v991_v52, %v997_v47  ;;  %2514 = vlog2.f32 %v3923_v21  ;;  %v5257_v8 = vld [vmem:[#allocation43_spill] sm:$0xff]  ;;  %v5258_v47 = vld [vmem:[#allocation46_spill] sm:$0xff]  ;;  %v5262_v49 = vld [vmem:[#allocation37_spill] sm:$0xff] }
 0x11f   : > { %v4005_v42 = vpop.eup %2504  ;;  %v729_v63 = vadd.f32 %v725_v38, %v5255_v5  ;;  %v755_v41 = vsub.f32 %v5256_v30, %v751_v48  ;;  %v4010_v43 = vmul.f32 %v2227_v36, %v3939_v29  ;;  %v1038_v62 = vmul.f32 %v3953_v6, %v3929_v3  ;;  %v2766_v3 = vld [vmem:[%s3200_s5 + $0x10] sm:$0xff]  ;;  %v5263_v52 = vld [vmem:[#allocation39_spill] sm:$0xff]  ;;  %v5267_v37 = vld [vmem:[#allocation41_spill] sm:$0xff] }
 0x120   : > { %v4014_v32 = vpop.eup %2506  ;;  %v730_v53 = vadd.f32 %v726_v57, %v5257_v8  ;;  %v4017_v26 = vadd.f32 %v756_v22, %v728_v39  ;;  %v1004_v9 = vsub.f32 %v992_v27, %v999_v54  ;;  %v1005_v4 = vsub.f32 %v993_v20, %v1001_v45  ;;  %v5260_v16 = vld [vmem:[#allocation38_spill] sm:$0xff]  ;;  %v2767_v48 = vld [vmem:[%s3200_s5 + $0x18] sm:$0xff]  ;;  %v5266_v45 = vld [vmem:[#allocation40_spill] sm:$0xff] }
 0x121   : > { %v731_v2 = vadd.f32 %v727_v55, %v5258_v47  ;;  %v757_v56 = vmul.f32 %v2765_v15, %v753_v10  ;;  %v1050_v29 = vmul.f32 %v3995_v23, %v3995_v23  ;;  %v1051_v58 = vmul.f32 %v4001_v19, %v4001_v19  ;;  %v5269_v13 = vld [vmem:[#allocation44_spill] sm:$0xff]  ;;  %v5270_v22 = vld [vmem:[#allocation45_spill] sm:$0xff] }
 0x122   : > { %v758_v6 = vmul.f32 %v2766_v3, %v754_v34  ;;  %v5261_v0 = vsub.f32 %v5259_v11, %v5260_v16  ;;  %v5264_v27 = vsub.f32 %v5262_v49, %v5263_v52  ;;  %v1052_v57 = vmul.f32 %v4005_v42, %v4005_v42  ;;  %v5272_v30 = vld [vmem:[#allocation24_spill] sm:$0xff]  ;;  %v2238_v11 = vld [vmem:[%s3207_s24 + $0x48] sm:$0xff]  ;;  %v5278_v49 = vld [vmem:[#allocation22_spill] sm:$0xff] }
 0x123   : > { %v759_v20 = vmul.f32 %v2767_v48, %v755_v41  ;;  %v4039_v33 = vadd.f32 %v757_v56, %v729_v63  ;;  %v1039_v39 = vmul.f32 %v3956_v51, %v3935_v44  ;;  %v1053_v36 = vmul.f32 %v4014_v32, %v4014_v32 }
 0x124   : > { %v4029_v38 = vadd.f32 %v1002_v24, %v5261_v0  ;;  %v4034_v60 = vadd.f32 %v1003_v59, %v5264_v27  ;;  %v4045_v54 = vadd.f32 %v758_v6, %v730_v53  ;;  %v5268_v55 = vsub.f32 %v5266_v45, %v5267_v37  ;;  %v5276_v6 = vld [vmem:[#allocation27_spill] sm:$0xff]  ;;  %v5277_v0 = vld [vmem:[#allocation32_spill] sm:$0xff] }
 0x125   : > { %v5271_v34 = vsub.f32 %v5269_v13, %v5270_v22  ;;  %v1040_v59 = vmul.f32 %v3961_v35, %v3944_v40  ;;  %v2509_v44 = vpop.eup %2508  ;;  %v1041_v51 = vmul.f32 %v3964_v17, %v3948_v50  ;;  %v1054_v5 = vmul.f32 0.0007936508, %v1050_v29  ;;  %v5275_v50 = vld [vmem:[#allocation26_spill] sm:$0xff]  ;;  %v2237_v17 = vld [vmem:[%s3207_s24 + $0x40] sm:$0xff]  ;;  %v5280_v45 = vld [vmem:[#allocation23_spill] sm:$0xff] }
 0x126   : > { %5265 = vst [vmem:[#allocation21_spill] sm:$0xff] %v4045_v54  ;;  %v4050_v10 = vadd.f32 %v1004_v9, %v5268_v55  ;;  %v1055_v63 = vmul.f32 0.0007936508, %v1051_v58  ;;  %2516 = vrcp.f32 %v5272_v30  ;;  %v2511_v41 = vpop.eup %2510  ;;  %v4062_v8 = vadd.f32 %v759_v20, %v731_v2  ;;  %v5279_v20 = vld [vmem:[#allocation33_spill] sm:$0xff]  ;;  %v1210_v55 = vpop.permute.xlu1 %1209  ;;  %v4112_v54 = vld [vmem:[%s3200_s5 + $0x40] sm:$0xff] }
 0x127   : > { %v4055_v24 = vadd.f32 %v1005_v4, %v5271_v34  ;;  %v1056_v53 = vmul.f32 0.0007936508, %v1052_v57  ;;  %v1074_v9 = vadd.f32 3.5, %v3840_v46  ;;  %v5274_v4 = vld [vmem:[#allocation25_spill] sm:$0xff]  ;;  %v2513_v47 = vpop.eup %2512  ;;  %v1057_v40 = vmul.f32 0.0007936508, %v1053_v36 }
 0x128   : > { %5273 = vst [vmem:[#allocation30_spill] sm:$0xff] %v4062_v8  ;;  %2518 = vrcp.f32 %v5274_v4  ;;  %v1075_v35 = vadd.f32 3.5, %v3847_v7  ;;  %v1076_v15 = vadd.f32 3.5, %v3851_v12  ;;  %v2515_v56 = vpop.eup %2514  ;;  %v1077_v3 = vadd.f32 3.5, %v3858_v18  ;;  %5287 = vst [vmem:[#allocation29_spill] sm:$0xff] %v4112_v54 }
 0x129   : > { %2520 = vrcp.f32 %v5275_v50  ;;  %v4073_v2 = vadd.f32 1e-10, %v3967_v25  ;;  %v4076_v46 = vadd.f32 1e-10, %v3980_v14  ;;  %v1058_v16 = vadd.f32 -0.0027777778, %v1054_v5 }
 0x12a   : > { %2522 = vrcp.f32 %v5276_v6  ;;  %v1059_v7 = vadd.f32 -0.0027777778, %v1055_v63  ;;  %v1079_v12 = vmul.f32 0.6931472, %v2509_v44  ;;  %v4081_v52 = vadd.f32 %v5278_v49, %v5277_v0  ;;  %v2239_v5 = vld [vmem:[%s3207_s24 + $0x50] sm:$0xff]  ;;  %v4095_v63 = vld [vmem:[%s3217_s27 + $0x40] sm:$0xff] }
 0x12b   : > { %v1060_v18 = vadd.f32 -0.0027777778, %v1056_v53  ;;  %v1081_v27 = vmul.f32 0.6931472, %v2511_v41  ;;  %v1083_v48 = vmul.f32 0.6931472, %v2513_v47  ;;  %v4085_v37 = vadd.f32 %v5280_v45, %v5279_v20 }
 0x12c   : > { %v1061_v13 = vadd.f32 -0.0027777778, %v1057_v40  ;;  %v1085_v22 = vmul.f32 0.6931472, %v2515_v56  ;;  %2524 = vlog2.f32 %v1038_v62  ;;  %v4088_v34 = vadd.f32 1e-10, %v3985_v61 }
 0x12d   : > { %2526 = vlog2.f32 %v1039_v39  ;;  %v4091_v44 = vadd.f32 1e-10, %v4010_v43  ;;  %5281 = vst [vmem:[#allocation34_spill] sm:$0xff] %v4095_v63  ;;  %v4098_v41 = vld [vmem:[%s3217_s27 + $0x48] sm:$0xff]  ;;  %v4100_v53 = vmul.f32 %v2237_v17, %v1210_v55  ;;  %v4102_v47 = vmul.f32 %v2238_v11, %v1210_v55  ;;  %v2240_v0 = vld [vmem:[%s3207_s24 + $0x58] sm:$0xff]  ;;  %v4106_v39 = vld [vmem:[%s3217_s27 + $0x50] sm:$0xff] }
 0x12e   : > { %5282 = vst [vmem:[#allocation35_spill] sm:$0xff] %v4098_v41  ;;  %v1062_v40 = vmul.f32 %v1058_v16, %v1050_v29  ;;  %v1063_v62 = vmul.f32 %v1059_v7, %v1051_v58  ;;  %v1086_v56 = vmul.f32 %v1079_v12, %v1074_v9  ;;  %2528 = vlog2.f32 %v1040_v59  ;;  %5285 = vst [vmem:[#allocation19_spill] sm:$0xff] %v4106_v39  ;;  %v4109_v49 = vld [vmem:[%s3217_s27 + $0x58] sm:$0xff] }
 0x12f   : > { %5283 = vst [vmem:[#allocation18_spill] sm:$0xff] %v4100_v53  ;;  %5284 = vst [vmem:[#allocation31_spill] sm:$0xff] %v4102_v47  ;;  %v1064_v20 = vmul.f32 %v1060_v18, %v1052_v57  ;;  %v1087_v45 = vmul.f32 %v1081_v27, %v1075_v35  ;;  %v1088_v8 = vmul.f32 %v1083_v48, %v1076_v15  ;;  %2530 = vlog2.f32 %v1041_v51  ;;  %v4115_v47 = vld [vmem:[%s3200_s5 + $0x48] sm:$0xff] }
 0x130   : > { %5286 = vst [vmem:[#allocation16_spill] sm:$0xff] %v4109_v49  ;;  %v2517_v17 = vpop.eup %2516  ;;  %v1065_v53 = vmul.f32 %v1061_v13, %v1053_v36  ;;  %v1089_v11 = vmul.f32 %v1085_v22, %v1077_v3  ;;  %5288 = vst [vmem:[#allocation17_spill] sm:$0xff] %v4115_v47  ;;  %v4117_v29 = vmul.f32 %v2239_v5, %v1210_v55  ;;  %v4120_v58 = vadd.f32 1e-10, %v4095_v63 }
 0x131   : > { %v4122_v9 = vmul.f32 %v2240_v0, %v1210_v55  ;;  %v4125_v57 = vadd.f32 1e-10, %v4098_v41  ;;  %v4128_v51 = vadd.f32 1e-10, %v4106_v39  ;;  %v4131_v35 = vadd.f32 1e-10, %v4109_v49 }
 0x132   : > { %5289 = vst [vmem:[#allocation42_spill] sm:$0xff] %v4117_v29  ;;  %5290 = vst [vmem:[#allocation47_spill] sm:$0xff] %v4120_v58  ;;  %v2519_v59 = vpop.eup %2518  ;;  %v1066_v15 = vadd.f32 0.083333336, %v1062_v40  ;;  %v1067_v3 = vadd.f32 0.083333336, %v1063_v62  ;;  %v1090_v16 = vsub.f32 %v1086_v56, %v3913_v1  ;;  %v1091_v27 = vsub.f32 %v1087_v45, %v3916_v28 }
 0x133   : > { %5291 = vst [vmem:[#allocation43_spill] sm:$0xff] %v4122_v9  ;;  %5292 = vst [vmem:[#allocation46_spill] sm:$0xff] %v4125_v57  ;;  %v2521_v36 = vpop.eup %2520  ;;  %v4135_v7 = vadd.f32 1.0, %v4112_v54  ;;  %v1068_v18 = vadd.f32 0.083333336, %v1064_v20  ;;  %v1092_v48 = vsub.f32 %v1088_v8, %v3919_v31  ;;  %v1123_v55 = vmul.f32 %v2517_v17, %v3967_v25 }
 0x134   : > { %5293 = vst [vmem:[#allocation36_spill] sm:$0xff] %v4128_v51  ;;  %5294 = vst [vmem:[#allocation38_spill] sm:$0xff] %v4131_v35  ;;  %v2523_v12 = vpop.eup %2522  ;;  %v1069_v13 = vadd.f32 0.083333336, %v1065_v53  ;;  %v1093_v22 = vsub.f32 %v1089_v11, %v3923_v21  ;;  %v1125_v5 = vmul.f32 %v2519_v59, %v3980_v14  ;;  %v4143_v40 = vadd.f32 1.0, %v4115_v47 }
 0x135   : > { %5295 = vst [vmem:[#allocation37_spill] sm:$0xff] %v4135_v7  ;;  %v1127_v1 = vmul.f32 %v2521_v36, %v3985_v61  ;;  %v1220_v62 = vadd.f32 1.0, %v4120_v58  ;;  %v1221_v56 = vadd.f32 1.0, %v4125_v57  ;;  %v1222_v28 = vadd.f32 1.0, %v4128_v51 }
 0x136   : > { %5296 = vst [vmem:[#allocation39_spill] sm:$0xff] %v4143_v40  ;;  %v2525_v0 = vpop.eup %2524  ;;  %v1070_v31 = vmul.f32 %v3995_v23, %v1066_v15  ;;  %v1071_v25 = vmul.f32 %v4001_v19, %v1067_v3  ;;  %v1094_v8 = vadd.f32 0.9189385, %v1090_v16  ;;  %v1129_v21 = vmul.f32 %v2523_v12, %v4010_v43 }
 0x137   : > { %v2527_v14 = vpop.eup %2526  ;;  %v1072_v53 = vmul.f32 %v4005_v42, %v1068_v18  ;;  %v1095_v20 = vadd.f32 0.9189385, %v1091_v27  ;;  %v1096_v45 = vadd.f32 0.9189385, %v1092_v48  ;;  %v1130_v61 = vadd.f32 1.0, %v1123_v55 }
 0x138   : > { %v2529_v17 = vpop.eup %2528  ;;  %v1073_v11 = vmul.f32 %v4014_v32, %v1069_v13  ;;  %v1097_v59 = vadd.f32 0.9189385, %v1093_v22  ;;  %v1131_v36 = vadd.f32 1.0, %v1125_v5  ;;  %2532 = vlog2.f32 %v5272_v30 }
 0x139   : > { %v2531_v9 = vpop.eup %2530  ;;  %v1132_v23 = vadd.f32 1.0, %v1127_v1  ;;  %v1223_v19 = vadd.f32 1.0, %v4131_v35  ;;  %v1224_v15 = vadd.f32 2.0, %v4120_v58  ;;  %v1225_v43 = vadd.f32 2.0, %v4125_v57 }
 0x13a   : > { %v1098_v3 = vadd.f32 %v1094_v8, %v1070_v31  ;;  %v1103_v42 = vmul.f32 0.6931472, %v2525_v0  ;;  %v1133_v16 = vadd.f32 1.0, %v1129_v21  ;;  %v1226_v12 = vadd.f32 2.0, %v4128_v51 }
 0x13b   : > { %v1099_v18 = vadd.f32 %v1095_v20, %v1071_v25  ;;  %v1100_v27 = vadd.f32 %v1096_v45, %v1072_v53  ;;  %v1105_v32 = vmul.f32 0.6931472, %v2527_v14  ;;  %2534 = vlog2.f32 %v1130_v61 }
 0x13c   : > { %v1101_v48 = vadd.f32 %v1097_v59, %v1073_v11  ;;  %v1107_v55 = vmul.f32 0.6931472, %v2529_v17  ;;  %v1109_v30 = vmul.f32 0.6931472, %v2531_v9  ;;  %2536 = vlog2.f32 %v1131_v36 }
 0x13d   : > { %2538 = vlog2.f32 %v1132_v23  ;;  %v1227_v13 = vadd.f32 2.0, %v4131_v35  ;;  %v1228_v22 = vadd.f32 3.0, %v4120_v58  ;;  %v1229_v5 = vadd.f32 3.0, %v4125_v57 }
 0x13e   : > { %2540 = vlog2.f32 %v1133_v16  ;;  %v1230_v1 = vadd.f32 3.0, %v4128_v51  ;;  %v1231_v0 = vadd.f32 3.0, %v4131_v35  ;;  %v4165_v31 = vadd.f32 4.0, %v4120_v58 }
 0x13f   : > { %v1110_v25 = vsub.f32 %v1098_v3, %v1103_v42  ;;  %2542 = vlog2.f32 %v5274_v4  ;;  %v4169_v9 = vadd.f32 4.0, %v4125_v57  ;;  %v4172_v8 = vadd.f32 4.0, %v4128_v51  ;;  %v4204_v3 = vld [vmem:[%s3200_s5 + $0x58] sm:$0xff] }
 0x140   : > { %v1111_v21 = vsub.f32 %v1099_v18, %v1105_v32  ;;  %v1112_v14 = vsub.f32 %v1100_v27, %v1107_v55  ;;  %v1113_v53 = vsub.f32 %v1101_v48, %v1109_v30  ;;  %2544 = vlog2.f32 %v5275_v50  ;;  %5298 = vst [vmem:[#allocation41_spill] sm:$0xff] %v4204_v3 }
 0x141   : > { %2546 = vlog2.f32 %v5276_v6  ;;  %v4177_v20 = vadd.f32 4.0, %v4131_v35  ;;  %v1236_v45 = vmul.f32 %v1220_v62, %v4120_v58  ;;  %v1237_v4 = vmul.f32 %v1221_v56, %v4125_v57 }
 0x142   : > { %v2533_v61 = vpop.eup %2532  ;;  %v1238_v17 = vmul.f32 %v1222_v28, %v4128_v51  ;;  %v1240_v11 = vmul.f32 %v1228_v22, %v1224_v15  ;;  %v1241_v59 = vmul.f32 %v1229_v5, %v1225_v43  ;;  %2548 = vrcp.f32 %v4165_v31  ;;  %v4201_v43 = vld [vmem:[%s3200_s5 + $0x50] sm:$0xff] }
 0x143   : > { %v1239_v50 = vmul.f32 %v1223_v19, %v4131_v35  ;;  %v1242_v36 = vmul.f32 %v1230_v1, %v1226_v12  ;;  %v1243_v6 = vmul.f32 %v1231_v0, %v1227_v13  ;;  %2550 = vrcp.f32 %v4169_v9  ;;  %5297 = vst [vmem:[#allocation40_spill] sm:$0xff] %v4201_v43 }
 0x144   : > { %v4186_v23 = vsub.f32 %v4029_v38, %v1110_v25  ;;  %v4189_v62 = vsub.f32 %v4034_v60, %v1111_v21  ;;  %v4192_v56 = vsub.f32 %v4050_v10, %v1112_v14  ;;  %2552 = vrcp.f32 %v4172_v8 }
 0x145   : > { %v2535_v28 = vpop.eup %2534  ;;  %v4196_v15 = vsub.f32 %v4055_v24, %v1113_v53  ;;  %v4198_v19 = vmul.f32 0.6931472, %v2533_v61  ;;  %2554 = vrcp.f32 %v4177_v20  ;;  %v4208_v38 = vadd.f32 3.5, %v4120_v58 }
 0x146   : > { %v2537_v60 = vpop.eup %2536  ;;  %2556 = vlog2.f32 %v4073_v2  ;;  %v4211_v10 = vmul.f32 %v1240_v11, %v1236_v45  ;;  %v4213_v42 = vmul.f32 %v1241_v59, %v1237_v4  ;;  %v4216_v24 = vadd.f32 3.5, %v4125_v57  ;;  %v5301_v11 = vld [vmem:[#allocation20_spill] sm:$0xff] }
 0x147   : > { %v2539_v16 = vpop.eup %2538  ;;  %2558 = vlog2.f32 %v4076_v46  ;;  %v4219_v12 = vmul.f32 %v1242_v36, %v1238_v17  ;;  %v4221_v18 = vmul.f32 %v1243_v6, %v1239_v50  ;;  %v4224_v27 = vadd.f32 3.5, %v4128_v51 }
 0x148   : > { %v2541_v32 = vpop.eup %2540  ;;  %2560 = vlog2.f32 %v4088_v34  ;;  %v4228_v2 = vadd.f32 3.5, %v4131_v35  ;;  %v4231_v48 = vadd.f32 1.0, %v4201_v43  ;;  %v4234_v55 = vadd.f32 1.0, %v4204_v3 }
 0x149   : > { %v2543_v46 = vpop.eup %2542  ;;  %v1135_v30 = vmul.f32 0.6931472, %v2535_v28  ;;  %2562 = vlog2.f32 %v4091_v44  ;;  %v1324_v13 = vadd.f32 1.0, %v4135_v7  ;;  %v1325_v22 = vadd.f32 1.0, %v4143_v40  ;;  %v5302_v28 = vld [vmem:[#allocation28_spill] sm:$0xff] }
 0x14a   : > { %5299 = vst [vmem:[#allocation44_spill] sm:$0xff] %v4231_v48  ;;  %5300 = vst [vmem:[#allocation45_spill] sm:$0xff] %v4234_v55  ;;  %v2545_v5 = vpop.eup %2544  ;;  %v1137_v1 = vmul.f32 0.6931472, %v2537_v60  ;;  %2564 = vlog2.f32 %v4165_v31  ;;  %v1328_v34 = vadd.f32 2.0, %v4135_v7  ;;  %v1329_v0 = vadd.f32 2.0, %v4143_v40 }
 0x14b   : > { %v2547_v25 = vpop.eup %2546  ;;  %v1139_v21 = vmul.f32 0.6931472, %v2539_v16  ;;  %2566 = vlog2.f32 %v4169_v9  ;;  %v1326_v14 = vadd.f32 1.0, %v4231_v48  ;;  %v1327_v44 = vadd.f32 1.0, %v4234_v55 }
 0x14c   : > { %v4245_v53 = vpop.eup %2548  ;;  %v1141_v45 = vmul.f32 0.6931472, %v2541_v32  ;;  %2568 = vlog2.f32 %v4172_v8  ;;  %v1330_v4 = vadd.f32 2.0, %v4231_v48  ;;  %v4250_v61 = vadd.f32 2.0, %v4234_v55 }
 0x14d   : > { %v4252_v17 = vpop.eup %2550  ;;  %v1142_v59 = vmul.f32 %v1135_v30, %v5301_v11  ;;  %2570 = vlog2.f32 %v4177_v20  ;;  %v1332_v50 = vadd.f32 3.0, %v4135_v7  ;;  %v1333_v36 = vadd.f32 3.0, %v4143_v40 }
 0x14e   : > { %v4258_v6 = vpop.eup %2552  ;;  %v1143_v60 = vmul.f32 %v1137_v1, %v5302_v28  ;;  %v1334_v16 = vadd.f32 3.0, %v4231_v48  ;;  %v1335_v32 = vadd.f32 3.0, %v4234_v55  ;;  %v4264_v29 = vadd.f32 4.0, %v4135_v7 }
 0x14f   : > { %v4266_v49 = vpop.eup %2554  ;;  %v1144_v30 = vmul.f32 %v1139_v21, %v4081_v52  ;;  %v1256_v11 = vmul.f32 %v4245_v53, %v4245_v53  ;;  %v4272_v39 = vadd.f32 4.0, %v4143_v40  ;;  %v4275_v41 = vadd.f32 4.0, %v4231_v48 }
 0x150   : > { %v2557_v1 = vpop.eup %2556  ;;  %v1145_v28 = vmul.f32 %v1141_v45, %v4085_v37  ;;  %v1257_v63 = vmul.f32 %v4252_v17, %v4252_v17  ;;  %v4281_v3 = vadd.f32 4.0, %v4234_v55  ;;  %v1340_v52 = vmul.f32 %v1324_v13, %v4135_v7 }
 0x151   : > { %v2559_v21 = vpop.eup %2558  ;;  %v4285_v35 = vadd.f32 %v1142_v59, %v4186_v23  ;;  %v1258_v43 = vmul.f32 %v4258_v6, %v4258_v6  ;;  %v4290_v51 = vmul.f32 %v1325_v22, %v4143_v40  ;;  %v4293_v37 = vmul.f32 %v1326_v14, %v4231_v48 }
 0x152   : > { %v2561_v45 = vpop.eup %2560  ;;  %v4296_v47 = vadd.f32 %v1143_v60, %v4189_v62  ;;  %v1153_v57 = vmul.f32 0.6931472, %v2543_v46  ;;  %v1155_v54 = vmul.f32 0.6931472, %v2545_v5  ;;  %v1259_v13 = vmul.f32 %v4266_v49, %v4266_v49 }
 0x153   : > { %5303 = vst [vmem:[#allocation24_spill] sm:$0xff] %v4293_v37  ;;  %v2563_v23 = vpop.eup %2562  ;;  %v4301_v59 = vadd.f32 %v1144_v30, %v4192_v56  ;;  %v4303_v7 = vmul.f32 0.6931472, %v2547_v25  ;;  %v1260_v22 = vmul.f32 0.0007936508, %v1256_v11  ;;  %v4306_v40 = vmul.f32 %v1327_v44, %v4234_v55 }
 0x154   : > { %v2565_v14 = vpop.eup %2564  ;;  %v4309_v48 = vadd.f32 %v1145_v28, %v4196_v15  ;;  %v1163_v62 = vmul.f32 0.6931472, %v2557_v1  ;;  %v1261_v46 = vmul.f32 0.0007936508, %v1257_v63  ;;  %2572 = vlog2.f32 %v4211_v10 }
 0x155   : > { %5304 = vst [vmem:[#allocation25_spill] sm:$0xff] %v4306_v40  ;;  %v2567_v5 = vpop.eup %2566  ;;  %v1165_v60 = vmul.f32 0.6931472, %v2559_v21  ;;  %v1262_v58 = vmul.f32 0.0007936508, %v1258_v43  ;;  %2574 = vlog2.f32 %v4213_v42  ;;  %v1344_v56 = vmul.f32 %v1332_v50, %v1328_v34 }
 0x156   : > { %v2569_v25 = vpop.eup %2568  ;;  %v1167_v30 = vmul.f32 0.6931472, %v2561_v45  ;;  %v1263_v37 = vmul.f32 0.0007936508, %v1259_v13  ;;  %2576 = vlog2.f32 %v4219_v12  ;;  %v1345_v44 = vmul.f32 %v1333_v36, %v1329_v0 }
 0x157   : > { %v2571_v55 = vpop.eup %2570  ;;  %v1264_v40 = vadd.f32 -0.0027777778, %v1260_v22  ;;  %v1285_v15 = vmul.f32 0.6931472, %v2565_v14  ;;  %v4314_v28 = vmul.f32 %v1334_v16, %v1330_v4  ;;  %2578 = vrcp.f32 %v4264_v29 }
 0x158   : > { %v1169_v10 = vmul.f32 0.6931472, %v2563_v23  ;;  %v1170_v1 = vsub.f32 %v4198_v19, %v1163_v62  ;;  %v1265_v21 = vadd.f32 -0.0027777778, %v1261_v46  ;;  %2580 = vrcp.f32 %v4272_v39  ;;  %v2768_v19 = vld [vmem:[%s3200_s5 + $0x20] sm:$0xff] }
 0x159   : > { %v1171_v42 = vsub.f32 %v1153_v57, %v1165_v60  ;;  %v1266_v34 = vadd.f32 -0.0027777778, %v1262_v58  ;;  %v1287_v50 = vmul.f32 0.6931472, %v2567_v5  ;;  %2582 = vrcp.f32 %v4275_v41 }
 0x15a   : > { %v1172_v12 = vsub.f32 %v1155_v54, %v1167_v30  ;;  %v1267_v0 = vadd.f32 -0.0027777778, %v1263_v37  ;;  %v1289_v36 = vmul.f32 0.6931472, %v2569_v25  ;;  %v1291_v4 = vmul.f32 0.6931472, %v2571_v55 }
 0x15b   : > { %v1268_v16 = vmul.f32 %v1264_v40, %v1256_v11  ;;  %v1292_v45 = vmul.f32 %v1285_v15, %v4208_v38  ;;  %v4322_v23 = vmul.f32 %v1335_v32, %v4250_v61  ;;  %2584 = vrcp.f32 %v4281_v3  ;;  %v2769_v37 = vld [vmem:[%s3200_s5 + $0x28] sm:$0xff]  ;;  %v2770_v11 = vld [vmem:[%s3200_s5 + $0x30] sm:$0xff] }
 0x15c   : > { %v1174_v57 = vmul.f32 %v2768_v19, %v1170_v1  ;;  %v1269_v58 = vmul.f32 %v1265_v21, %v1257_v63  ;;  %2586 = vlog2.f32 %v4221_v18  ;;  %v4327_v22 = vmul.f32 %v1344_v56, %v1340_v52 }
 0x15d   : > { %v1173_v54 = vsub.f32 %v4303_v7, %v1169_v10  ;;  %v1175_v55 = vmul.f32 %v2769_v37, %v1171_v42  ;;  %v1270_v14 = vmul.f32 %v1266_v34, %v1258_v43  ;;  %v1293_v40 = vmul.f32 %v1287_v50, %v4216_v24  ;;  %v5313_v37 = vld [vmem:[#allocation29_spill] sm:$0xff] }
 0x15e   : > { %v2573_v38 = vpop.eup %2572  ;;  %v1176_v61 = vmul.f32 %v2770_v11, %v1172_v12  ;;  %v1271_v32 = vmul.f32 %v1267_v0, %v1259_v13  ;;  %v1294_v62 = vmul.f32 %v1289_v36, %v4224_v27  ;;  %v1295_v63 = vmul.f32 %v1291_v4, %v4228_v2  ;;  %v2771_v27 = vld [vmem:[%s3200_s5 + $0x38] sm:$0xff] }
 0x15f   : > { %v2575_v46 = vpop.eup %2574  ;;  %v1178_v18 = vadd.f32 %v1174_v57, %v4285_v35  ;;  %v1272_v52 = vadd.f32 0.083333336, %v1268_v16  ;;  %v1296_v7 = vsub.f32 %v1292_v45, %v4165_v31  ;;  %2588 = vlog2.f32 %v4264_v29  ;;  %v5311_v57 = vld [vmem:[#allocation24_spill] sm:$0xff] }
 0x160   : > { %v2577_v43 = vpop.eup %2576  ;;  %v1179_v24 = vadd.f32 %v1175_v55, %v4296_v47  ;;  %v1180_v5 = vadd.f32 %v1176_v61, %v4301_v59  ;;  %v1273_v60 = vadd.f32 0.083333336, %v1269_v58  ;;  %2590 = vlog2.f32 %v4272_v39 }
 0x161   : > { %v4341_v13 = vpop.eup %2578  ;;  %v1177_v2 = vmul.f32 %v2771_v27, %v1173_v54  ;;  %v1274_v56 = vadd.f32 0.083333336, %v1270_v14  ;;  %v1297_v35 = vsub.f32 %v1293_v40, %v4169_v9  ;;  %2592 = vlog2.f32 %v4275_v41  ;;  %v5312_v54 = vld [vmem:[#allocation47_spill] sm:$0xff]  ;;  %v5317_v27 = vld [vmem:[#allocation46_spill] sm:$0xff] }
 0x162   : > { %v4346_v31 = vpop.eup %2580  ;;  %v1275_v25 = vadd.f32 0.083333336, %v1271_v32  ;;  %v1298_v30 = vsub.f32 %v1294_v62, %v4172_v8  ;;  %v1299_v47 = vsub.f32 %v1295_v63, %v4177_v20  ;;  %v1349_v59 = vmul.f32 %v1345_v44, %v4290_v51  ;;  %v5307_v8 = vld [vmem:[#allocation21_spill] sm:$0xff] }
 0x163   : > { %v4351_v15 = vpop.eup %2582  ;;  %v1181_v10 = vadd.f32 %v1177_v2, %v4309_v48  ;;  %v1276_v1 = vmul.f32 %v4245_v53, %v1272_v52  ;;  %v1300_v21 = vadd.f32 0.9189385, %v1296_v7  ;;  %2594 = vlog2.f32 %v4281_v3  ;;  %v5318_v2 = vld [vmem:[#allocation17_spill] sm:$0xff] }
 0x164   : > { %v4357_v9 = vadd.f32 %v1178_v18, %v4017_v26  ;;  %v4360_v42 = vadd.f32 %v1179_v24, %v4039_v33  ;;  %v4363_v34 = vadd.f32 %v1180_v5, %v5307_v8  ;;  %v1277_v51 = vmul.f32 %v4252_v17, %v1273_v60  ;;  %v5309_v17 = vld [vmem:[#allocation30_spill] sm:$0xff]  ;;  %v5316_v5 = vld [vmem:[#allocation39_spill] sm:$0xff] }
 0x165   : > { %v4366_v20 = vpop.eup %2584  ;;  %v1278_v48 = vmul.f32 %v4258_v6, %v1274_v56  ;;  %v1301_v44 = vadd.f32 0.9189385, %v1297_v35  ;;  %v1360_v53 = vmul.f32 %v4341_v13, %v4341_v13  ;;  %v1361_v26 = vmul.f32 %v4346_v31, %v4346_v31 }
 0x166   : > { %5305 = vst [vmem:[#allocation26_spill] sm:$0xff] %v4357_v9  ;;  %5306 = vst [vmem:[#allocation27_spill] sm:$0xff] %v4360_v42  ;;  %v2587_v50 = vpop.eup %2586  ;;  %v1279_v33 = vmul.f32 %v4266_v49, %v1275_v25  ;;  %v1302_v12 = vadd.f32 0.9189385, %v1298_v30  ;;  %v1303_v0 = vadd.f32 0.9189385, %v1299_v47  ;;  %v1362_v36 = vmul.f32 %v4351_v15, %v4351_v15 }
 0x167   : > { %5308 = vst [vmem:[#allocation32_spill] sm:$0xff] %v4363_v34  ;;  %v4377_v4 = vadd.f32 %v1181_v10, %v5309_v17  ;;  %v4379_v16 = vadd.f32 %v1300_v21, %v1276_v1  ;;  %v4381_v6 = vmul.f32 0.6931472, %v2573_v38  ;;  %v4383_v45 = vmul.f32 0.6931472, %v2575_v46  ;;  %v5319_v25 = vld [vmem:[#allocation44_spill] sm:$0xff] }
 0x168   : > { %v4385_v19 = vmul.f32 0.6931472, %v2577_v43  ;;  %v1350_v58 = vmul.f32 %v4314_v28, %v5311_v57  ;;  %v1363_v49 = vmul.f32 %v4366_v20, %v4366_v20  ;;  %v4393_v55 = vadd.f32 %v5313_v37, %v5312_v54  ;;  %v5314_v28 = vld [vmem:[#allocation25_spill] sm:$0xff]  ;;  %v5320_v47 = vld [vmem:[#allocation36_spill] sm:$0xff]  ;;  %v5323_v17 = vld [vmem:[#allocation38_spill] sm:$0xff] }
 0x169   : > { %5310 = vst [vmem:[#allocation22_spill] sm:$0xff] %v4377_v4  ;;  %v2589_v14 = vpop.eup %2588  ;;  %v4395_v40 = vadd.f32 %v1301_v44, %v1277_v51  ;;  %v4397_v11 = vmul.f32 0.6931472, %v2587_v50  ;;  %v1364_v38 = vmul.f32 0.0007936508, %v1360_v53  ;;  %v4399_v62 = vadd.f32 %v1302_v12, %v1278_v48  ;;  %v5315_v43 = vld [vmem:[#allocation37_spill] sm:$0xff] }
 0x16a   : > { %v1365_v61 = vmul.f32 0.0007936508, %v1361_v26  ;;  %v2591_v32 = vpop.eup %2590  ;;  %v4401_v63 = vadd.f32 %v1303_v0, %v1279_v33  ;;  %v1351_v46 = vmul.f32 %v4322_v23, %v5314_v28  ;;  %v1366_v18 = vmul.f32 0.0007936508, %v1362_v36  ;;  %v5321_v10 = vld [vmem:[#allocation40_spill] sm:$0xff]  ;;  %v5322_v12 = vld [vmem:[#allocation45_spill] sm:$0xff] }
 0x16b   : > { %v2593_v52 = vpop.eup %2592  ;;  %v1384_v24 = vadd.f32 3.5, %v5315_v43  ;;  %v1385_v60 = vadd.f32 3.5, %v5316_v5  ;;  %v4411_v56 = vadd.f32 %v5318_v2, %v5317_v27  ;;  %v1367_v35 = vmul.f32 0.0007936508, %v1363_v49  ;;  %v5324_v57 = vld [vmem:[#allocation41_spill] sm:$0xff] }
 0x16c   : > { %v1386_v30 = vadd.f32 3.5, %v5319_v25  ;;  %v4416_v1 = vadd.f32 %v5321_v10, %v5320_v47  ;;  %v4419_v23 = vadd.f32 4.0, %v4393_v55  ;;  %v1368_v8 = vadd.f32 -0.0027777778, %v1364_v38 }
 0x16d   : > { %v2595_v21 = vpop.eup %2594  ;;  %v1369_v51 = vadd.f32 -0.0027777778, %v1365_v61  ;;  %v1389_v48 = vmul.f32 0.6931472, %v2589_v14  ;;  %2596 = vlog2.f32 %v4327_v22  ;;  %v1370_v44 = vadd.f32 -0.0027777778, %v1366_v18 }
 0x16e   : > { %v1391_v50 = vmul.f32 0.6931472, %v2591_v32  ;;  %v1393_v33 = vmul.f32 0.6931472, %v2593_v52  ;;  %2598 = vlog2.f32 %v1349_v59  ;;  %v1387_v0 = vadd.f32 3.5, %v5322_v12 }
 0x16f   : > { %2600 = vlog2.f32 %v1350_v58  ;;  %v4425_v28 = vadd.f32 %v5324_v57, %v5323_v17  ;;  %v4428_v43 = vadd.f32 4.0, %v4411_v56  ;;  %v1371_v5 = vadd.f32 -0.0027777778, %v1367_v35 }
 0x170   : > { %v1395_v38 = vmul.f32 0.6931472, %v2595_v21  ;;  %2602 = vlog2.f32 %v1351_v46  ;;  %v4431_v14 = vadd.f32 4.0, %v4416_v1  ;;  %v1372_v59 = vmul.f32 %v1368_v8, %v1360_v53 }
 0x171   : > { %v1396_v61 = vmul.f32 %v1389_v48, %v1384_v24  ;;  %2604 = vrcp.f32 %v4419_v23  ;;  %v1373_v58 = vmul.f32 %v1369_v51, %v1361_v26  ;;  %v1374_v32 = vmul.f32 %v1370_v44, %v1362_v36 }
 0x172   : > { %v1397_v18 = vmul.f32 %v1391_v50, %v1385_v60  ;;  %v1398_v52 = vmul.f32 %v1393_v33, %v1386_v30  ;;  %v4441_v35 = vadd.f32 4.0, %v4425_v28  ;;  %2606 = vrcp.f32 %v4428_v43 }
 0x173   : > { %v1375_v21 = vmul.f32 %v1371_v5, %v1363_v49  ;;  %v1399_v53 = vmul.f32 %v1395_v38, %v1387_v0  ;;  %v1432_v24 = vadd.f32 1.0, %v4393_v55  ;;  %2608 = vrcp.f32 %v4431_v14 }
 0x174   : > { %v1376_v26 = vadd.f32 0.083333336, %v1372_v59  ;;  %v1400_v36 = vsub.f32 %v1396_v61, %v4264_v29  ;;  %v1433_v60 = vadd.f32 1.0, %v4411_v56  ;;  %v1436_v30 = vadd.f32 2.0, %v4393_v55 }
 0x175   : > { %v1377_v8 = vadd.f32 0.083333336, %v1373_v58  ;;  %v1378_v51 = vadd.f32 0.083333336, %v1374_v32  ;;  %v1401_v48 = vsub.f32 %v1397_v18, %v4272_v39  ;;  %v1402_v44 = vsub.f32 %v1398_v52, %v4275_v41 }
 0x176   : > { %v1434_v49 = vadd.f32 1.0, %v4416_v1  ;;  %v1435_v33 = vadd.f32 1.0, %v4425_v28  ;;  %v1437_v12 = vadd.f32 2.0, %v4411_v56  ;;  %2610 = vrcp.f32 %v4441_v35 }
 0x177   : > { %v2597_v50 = vpop.eup %2596  ;;  %v1379_v0 = vadd.f32 0.083333336, %v1375_v21  ;;  %v1403_v5 = vsub.f32 %v1399_v53, %v4281_v3  ;;  %v1438_v38 = vadd.f32 2.0, %v4416_v1  ;;  %v1439_v59 = vadd.f32 2.0, %v4425_v28 }
 0x178   : > { %v2599_v29 = vpop.eup %2598  ;;  %v1380_v41 = vmul.f32 %v4341_v13, %v1376_v26  ;;  %v1404_v61 = vadd.f32 0.9189385, %v1400_v36  ;;  %v1440_v58 = vadd.f32 3.0, %v4393_v55  ;;  %v1441_v32 = vadd.f32 3.0, %v4411_v56 }
 0x179   : > { %v2601_v39 = vpop.eup %2600  ;;  %v1381_v52 = vmul.f32 %v4346_v31, %v1377_v8  ;;  %v1382_v46 = vmul.f32 %v4351_v15, %v1378_v51  ;;  %v1405_v21 = vadd.f32 0.9189385, %v1401_v48  ;;  %v1406_v25 = vadd.f32 0.9189385, %v1402_v44 }
 0x17a   : > { %v2603_v18 = vpop.eup %2602  ;;  %v1442_v53 = vadd.f32 3.0, %v4416_v1  ;;  %v1443_v22 = vadd.f32 3.0, %v4425_v28  ;;  %v1448_v13 = vmul.f32 %v1432_v24, %v4393_v55  ;;  %2612 = vlog2.f32 %v4419_v23 }
 0x17b   : > { %v4463_v3 = vpop.eup %2604  ;;  %v1383_v26 = vmul.f32 %v4366_v20, %v1379_v0  ;;  %v1407_v36 = vadd.f32 0.9189385, %v1403_v5  ;;  %v1449_v7 = vmul.f32 %v1433_v60, %v4411_v56  ;;  %2614 = vlog2.f32 %v4428_v43 }
 0x17c   : > { %v4472_v31 = vpop.eup %2606  ;;  %v1408_v15 = vadd.f32 %v1404_v61, %v1380_v41  ;;  %v1413_v8 = vmul.f32 0.6931472, %v2597_v50  ;;  %v1450_v51 = vmul.f32 %v1434_v49, %v4416_v1  ;;  %2616 = vlog2.f32 %v4431_v14 }
 0x17d   : > { %v4476_v48 = vpop.eup %2608  ;;  %v1409_v24 = vadd.f32 %v1405_v21, %v1381_v52  ;;  %v1410_v44 = vadd.f32 %v1406_v25, %v1382_v46  ;;  %v1415_v4 = vmul.f32 0.6931472, %v2599_v29  ;;  %v1417_v34 = vmul.f32 0.6931472, %v2601_v39  ;;  %v5325_v39 = vld [vmem:[#allocation34_spill] sm:$0xff] }
 0x17e   : > { %v1451_v20 = vmul.f32 %v1435_v33, %v4425_v28  ;;  %v1452_v0 = vmul.f32 %v1440_v58, %v1436_v30  ;;  %v1453_v60 = vmul.f32 %v1441_v32, %v1437_v12  ;;  %v1468_v5 = vmul.f32 %v4463_v3, %v4463_v3 }
 0x17f   : > { %v1411_v42 = vadd.f32 %v1407_v36, %v1383_v26  ;;  %v1419_v41 = vmul.f32 0.6931472, %v2603_v18  ;;  %v1454_v50 = vmul.f32 %v1442_v53, %v1438_v38  ;;  %2618 = vlog2.f32 %v4441_v35 }
 0x180   : > { %v4482_v49 = vpop.eup %2610  ;;  %v1455_v61 = vmul.f32 %v1443_v22, %v1439_v59  ;;  %v1469_v25 = vmul.f32 %v4472_v31, %v4472_v31  ;;  %v1470_v46 = vmul.f32 %v4476_v48, %v4476_v48  ;;  %2620 = vrcp.f32 %v5312_v54 }
 0x181   : > { %v1420_v30 = vsub.f32 %v1408_v15, %v1413_v8  ;;  %v1421_v33 = vsub.f32 %v1409_v24, %v1415_v4  ;;  %v1422_v12 = vsub.f32 %v1410_v44, %v1417_v34  ;;  %2622 = vrcp.f32 %v5317_v27 }
 0x182   : > { %v1456_v29 = vmul.f32 %v1452_v0, %v1448_v13  ;;  %v1472_v38 = vmul.f32 0.0007936508, %v1468_v5  ;;  %v4492_v58 = vadd.f32 %v5325_v39, %v5313_v37  ;;  %2624 = vrcp.f32 %v5320_v47  ;;  %v5335_v39 = vld [vmem:[#allocation42_spill] sm:$0xff] }
 0x183   : > { %v1423_v22 = vsub.f32 %v1411_v42, %v1419_v41  ;;  %v1457_v59 = vmul.f32 %v1453_v60, %v1449_v7  ;;  %v1471_v32 = vmul.f32 %v4482_v49, %v4482_v49  ;;  %2626 = vrcp.f32 %v5323_v17 }
 0x184   : > { %v2613_v18 = vpop.eup %2612  ;;  %v1458_v4 = vmul.f32 %v1454_v50, %v1450_v51  ;;  %v1459_v34 = vmul.f32 %v1455_v61, %v1451_v20  ;;  %v1473_v52 = vmul.f32 0.0007936508, %v1469_v25  ;;  %v1474_v21 = vmul.f32 0.0007936508, %v1470_v46  ;;  %v5333_v61 = vld [vmem:[#allocation18_spill] sm:$0xff] }
 0x185   : > { %v2615_v53 = vpop.eup %2614  ;;  %v5326_v13 = vsub.f32 %v4379_v16, %v4381_v6  ;;  %v5327_v42 = vsub.f32 %v4395_v40, %v4383_v45  ;;  %v5328_v26 = vsub.f32 %v4399_v62, %v4385_v19  ;;  %v1492_v15 = vadd.f32 3.5, %v4393_v55  ;;  %v5330_v62 = vld [vmem:[#allocation35_spill] sm:$0xff]  ;;  %v4526_v55 = vpop.permute.xlu1 %1627 }
 0x186   : > { %v2617_v8 = vpop.eup %2616  ;;  %v1476_v51 = vadd.f32 -0.0027777778, %v1472_v38  ;;  %v1493_v24 = vadd.f32 3.5, %v4411_v56  ;;  %v1494_v16 = vadd.f32 3.5, %v4416_v1  ;;  %v1495_v6 = vadd.f32 3.5, %v4425_v28  ;;  %v5331_v1 = vld [vmem:[#allocation19_spill] sm:$0xff] }
 0x187   : > { %v4501_v37 = vadd.f32 %v1420_v30, %v5326_v13  ;;  %v4506_v7 = vadd.f32 %v1421_v33, %v5327_v42  ;;  %v4511_v36 = vadd.f32 %v1422_v12, %v5328_v26  ;;  %v5329_v45 = vsub.f32 %v4401_v63, %v4397_v11  ;;  %v5332_v28 = vld [vmem:[#allocation16_spill] sm:$0xff]  ;;  %v5334_v38 = vld [vmem:[#allocation31_spill] sm:$0xff]  ;;  %v4554_v42 = vld [vmem:[%s3217_s27 + $0x68] sm:$0xff] }
 0x188   : > { %v1475_v44 = vmul.f32 0.0007936508, %v1471_v32  ;;  %v1497_v19 = vmul.f32 0.6931472, %v2613_v18  ;;  %v4524_v20 = vadd.f32 %v5330_v62, %v5318_v2  ;;  %v1477_v0 = vadd.f32 -0.0027777778, %v1473_v52 }
 0x189   : > { %v4520_v40 = vadd.f32 %v1423_v22, %v5329_v45  ;;  %v1478_v56 = vadd.f32 -0.0027777778, %v1474_v21  ;;  %v4530_v60 = vadd.f32 %v5331_v1, %v5321_v10  ;;  %v4534_v11 = vadd.f32 %v5332_v28, %v5324_v57  ;;  %v2250_v63 = vld [vmem:[%s3207_s24 + $0x60] sm:$0xff]  ;;  %v2619_v41 = vpop.eup %2618  ;;  %v2251_v57 = vld [vmem:[%s3207_s24 + $0x68] sm:$0xff]  ;;  %5338 = vst [vmem:[#allocation23_spill] sm:$0xff] %v4554_v42 }
 0x18a   : > { %v1499_v50 = vmul.f32 0.6931472, %v2615_v53  ;;  %v1501_v2 = vmul.f32 0.6931472, %v2617_v8  ;;  %2628 = vlog2.f32 %v1456_v29  ;;  %v4538_v30 = vadd.f32 1e-10, %v5333_v61  ;;  %v2621_v33 = vpop.eup %2620 }
 0x18b   : > { %v1480_v12 = vmul.f32 %v1476_v51, %v1468_v5  ;;  %2630 = vlog2.f32 %v1457_v59  ;;  %v4541_v10 = vadd.f32 1e-10, %v5334_v38  ;;  %v4544_v22 = vadd.f32 1e-10, %v5335_v39  ;;  %v2623_v18 = vpop.eup %2622  ;;  %v5336_v53 = vld [vmem:[#allocation43_spill] sm:$0xff]  ;;  %v4551_v29 = vld [vmem:[%s3217_s27 + $0x60] sm:$0xff] }
 0x18c   : > { %v1479_v52 = vadd.f32 -0.0027777778, %v1475_v44  ;;  %v1504_v21 = vmul.f32 %v1497_v19, %v1492_v15  ;;  %v4548_v13 = vadd.f32 1e-10, %v5336_v53  ;;  %5337 = vst [vmem:[#allocation33_spill] sm:$0xff] %v4551_v29  ;;  %v4557_v5 = vmul.f32 %v2250_v63, %v4526_v55  ;;  %v2625_v59 = vpop.eup %2624  ;;  %v4561_v19 = vld [vmem:[%s3217_s27 + $0x70] sm:$0xff] }
 0x18d   : > { %v1481_v26 = vmul.f32 %v1477_v0, %v1469_v25  ;;  %v1482_v8 = vmul.f32 %v1478_v56, %v1470_v46  ;;  %v1503_v51 = vmul.f32 0.6931472, %v2619_v41  ;;  %2632 = vlog2.f32 %v1458_v4  ;;  %v2627_v45 = vpop.eup %2626  ;;  %5340 = vst [vmem:[#allocation28_spill] sm:$0xff] %v4561_v19 }
 0x18e   : > { %5339 = vst [vmem:[#allocation20_spill] sm:$0xff] %v4557_v5  ;;  %v1505_v62 = vmul.f32 %v1499_v50, %v1493_v24  ;;  %v1506_v44 = vmul.f32 %v1501_v2, %v1494_v16  ;;  %v1541_v15 = vmul.f32 %v2621_v33, %v5333_v61  ;;  %v4564_v1 = vmul.f32 %v2251_v57, %v4526_v55  ;;  %v4576_v16 = vld [vmem:[%s3217_s27 + $0x78] sm:$0xff] }
 0x18f   : > { %v1484_v28 = vadd.f32 0.083333336, %v1480_v12  ;;  %v1543_v63 = vmul.f32 %v2623_v18, %v5334_v38  ;;  %v4568_v9 = vadd.f32 1e-10, %v4551_v29  ;;  %v4571_v25 = vadd.f32 1e-10, %v4554_v42 }
 0x190   : > { %5341 = vst [vmem:[#allocation21_spill] sm:$0xff] %v4564_v1  ;;  %v1483_v46 = vmul.f32 %v1479_v52, %v1471_v32  ;;  %v1508_v4 = vsub.f32 %v1504_v21, %v4419_v23  ;;  %2634 = vlog2.f32 %v1459_v34  ;;  %v1545_v24 = vmul.f32 %v2625_v59, %v5335_v39  ;;  %5343 = vst [vmem:[#allocation24_spill] sm:$0xff] %v4576_v16 }
 0x191   : > { %5342 = vst [vmem:[#allocation30_spill] sm:$0xff] %v4571_v25  ;;  %v1485_v0 = vadd.f32 0.083333336, %v1481_v26  ;;  %v1486_v56 = vadd.f32 0.083333336, %v1482_v8  ;;  %v1507_v41 = vmul.f32 %v1503_v51, %v1495_v6  ;;  %v1547_v50 = vmul.f32 %v2627_v45, %v5336_v53  ;;  %v2253_v45 = vld [vmem:[%s3207_s24 + $0x78] sm:$0xff] }
 0x192   : > { %v1509_v2 = vsub.f32 %v1505_v62, %v4428_v43  ;;  %v1510_v61 = vsub.f32 %v1506_v44, %v4431_v14  ;;  %v1548_v33 = vadd.f32 1.0, %v1541_v15  ;;  %v4582_v32 = vadd.f32 1e-10, %v4561_v19  ;;  %v2252_v43 = vld [vmem:[%s3207_s24 + $0x70] sm:$0xff] }
 0x193   : > { %v1488_v23 = vmul.f32 %v4463_v3, %v1484_v28  ;;  %v1549_v34 = vadd.f32 1.0, %v1543_v63  ;;  %2636 = vlog2.f32 %v5312_v54  ;;  %v4587_v12 = vadd.f32 1e-10, %v4576_v16 }
 0x194   : > { %5344 = vst [vmem:[#allocation47_spill] sm:$0xff] %v4582_v32  ;;  %v2629_v38 = vpop.eup %2628  ;;  %v1487_v6 = vadd.f32 0.083333336, %v1483_v46  ;;  %v1512_v39 = vadd.f32 0.9189385, %v1508_v4  ;;  %v1550_v57 = vadd.f32 1.0, %v1545_v24  ;;  %2638 = vlog2.f32 %v5317_v27 }
 0x195   : > { %5345 = vst [vmem:[#allocation29_spill] sm:$0xff] %v4587_v12  ;;  %v2631_v14 = vpop.eup %2630  ;;  %v1489_v18 = vmul.f32 %v4472_v31, %v1485_v0  ;;  %v1490_v52 = vmul.f32 %v4476_v48, %v1486_v56  ;;  %v1511_v3 = vsub.f32 %v1507_v41, %v4441_v35  ;;  %v1551_v54 = vadd.f32 1.0, %v1547_v50  ;;  %v4604_v35 = vld [vmem:[%s3200_s5 + $0x60] sm:$0xff] }
 0x196   : > { %v1513_v21 = vadd.f32 0.9189385, %v1509_v2  ;;  %v1514_v53 = vadd.f32 0.9189385, %v1510_v61  ;;  %2640 = vlog2.f32 %v1548_v33  ;;  %v4595_v59 = vadd.f32 4.0, %v4568_v9  ;;  %5347 = vst [vmem:[#allocation37_spill] sm:$0xff] %v4604_v35 }
 0x197   : > { %v2633_v26 = vpop.eup %2632  ;;  %v1521_v8 = vmul.f32 0.6931472, %v2629_v38  ;;  %2642 = vlog2.f32 %v1549_v34  ;;  %v4598_v27 = vmul.f32 %v2252_v43, %v4526_v55  ;;  %v4601_v31 = vadd.f32 4.0, %v4571_v25 }
 0x198   : > { %v1516_v48 = vadd.f32 %v1512_v39, %v1488_v23  ;;  %v1523_v51 = vmul.f32 0.6931472, %v2631_v14  ;;  %2644 = vlog2.f32 %v1550_v57  ;;  %v4608_v62 = vadd.f32 4.0, %v4582_v32 }
 0x199   : > { %5346 = vst [vmem:[#allocation25_spill] sm:$0xff] %v4598_v27  ;;  %v1491_v44 = vmul.f32 %v4482_v49, %v1487_v6  ;;  %v1515_v15 = vadd.f32 0.9189385, %v1511_v3  ;;  %2646 = vlog2.f32 %v1551_v54  ;;  %v4612_v28 = vadd.f32 4.0, %v4587_v12 }
 0x19a   : > { %v2635_v63 = vpop.eup %2634  ;;  %v1517_v46 = vadd.f32 %v1513_v21, %v1489_v18  ;;  %v1518_v4 = vadd.f32 %v1514_v53, %v1490_v52  ;;  %v1525_v24 = vmul.f32 0.6931472, %v2633_v26  ;;  %2648 = vrcp.f32 %v4595_v59 }
 0x19b   : > { %v4616_v0 = vmul.f32 %v2253_v45, %v4526_v55  ;;  %v1638_v56 = vadd.f32 1.0, %v4568_v9  ;;  %2650 = vrcp.f32 %v4601_v31  ;;  %v4621_v49 = vadd.f32 1.0, %v4604_v35 }
 0x19c   : > { %v1528_v41 = vsub.f32 %v1516_v48, %v1521_v8  ;;  %v1639_v50 = vadd.f32 1.0, %v4571_v25  ;;  %v1640_v2 = vadd.f32 1.0, %v4582_v32  ;;  %2652 = vrcp.f32 %v4608_v62 }
 0x19d   : > { %5348 = vst [vmem:[#allocation39_spill] sm:$0xff] %v4616_v0  ;;  %v2637_v61 = vpop.eup %2636  ;;  %v1519_v33 = vadd.f32 %v1515_v15, %v1491_v44  ;;  %v1527_v23 = vmul.f32 0.6931472, %v2635_v63  ;;  %v1641_v55 = vadd.f32 1.0, %v4587_v12  ;;  %2654 = vrcp.f32 %v4612_v28 }
 0x19e   : > { %v2639_v34 = vpop.eup %2638  ;;  %v1529_v38 = vsub.f32 %v1517_v46, %v1523_v51  ;;  %v1530_v6 = vsub.f32 %v1518_v4, %v1525_v24  ;;  %2656 = vlog2.f32 %v5320_v47  ;;  %v1642_v39 = vadd.f32 2.0, %v4568_v9 }
 0x19f   : > { %2658 = vlog2.f32 %v5323_v17  ;;  %v1643_v57 = vadd.f32 2.0, %v4571_v25  ;;  %v1646_v43 = vadd.f32 3.0, %v4568_v9  ;;  %v1647_v14 = vadd.f32 3.0, %v4571_v25 }
 0x1a0   : > { %v2641_v18 = vpop.eup %2640  ;;  %v4635_v52 = vsub.f32 %v4501_v37, %v1528_v41  ;;  %2660 = vlog2.f32 %v4538_v30  ;;  %v1644_v3 = vadd.f32 2.0, %v4582_v32  ;;  %v1645_v47 = vadd.f32 2.0, %v4587_v12 }
 0x1a1   : > { %v2643_v54 = vpop.eup %2642  ;;  %v1531_v21 = vsub.f32 %v1519_v33, %v1527_v23  ;;  %2662 = vlog2.f32 %v4541_v10  ;;  %v1648_v17 = vadd.f32 3.0, %v4582_v32  ;;  %v1649_v53 = vadd.f32 3.0, %v4587_v12  ;;  %v4677_v23 = vld [vmem:[%s3200_s5 + $0x68] sm:$0xff] }
 0x1a2   : > { %v2645_v26 = vpop.eup %2644  ;;  %v4644_v8 = vsub.f32 %v4506_v7, %v1529_v38  ;;  %v4647_v37 = vsub.f32 %v4511_v36, %v1530_v6  ;;  %v1654_v30 = vmul.f32 %v1638_v56, %v4568_v9  ;;  %2664 = vlog2.f32 %v4595_v59  ;;  %5349 = vst [vmem:[#allocation46_spill] sm:$0xff] %v4677_v23 }
 0x1a3   : > { %v2647_v48 = vpop.eup %2646  ;;  %v1655_v51 = vmul.f32 %v1639_v50, %v4571_v25  ;;  %v1658_v45 = vmul.f32 %v1646_v43, %v1642_v39  ;;  %v1659_v10 = vmul.f32 %v1647_v14, %v1643_v57  ;;  %2666 = vlog2.f32 %v4601_v31 }
 0x1a4   : > { %v4653_v44 = vpop.eup %2648  ;;  %v4655_v15 = vmul.f32 0.6931472, %v2637_v61  ;;  %v4657_v7 = vmul.f32 0.6931472, %v2639_v34  ;;  %v1656_v36 = vmul.f32 %v1640_v2, %v4582_v32  ;;  %2668 = vlog2.f32 %v4608_v62 }
 0x1a5   : > { %v4661_v63 = vpop.eup %2650  ;;  %v1657_v46 = vmul.f32 %v1641_v55, %v4587_v12  ;;  %v1660_v4 = vmul.f32 %v1648_v17, %v1644_v3  ;;  %v1661_v24 = vmul.f32 %v1649_v53, %v1645_v47  ;;  %2670 = vlog2.f32 %v4612_v28  ;;  %v4680_v55 = vld [vmem:[%s3200_s5 + $0x70] sm:$0xff] }
 0x1a6   : > { %v4665_v56 = vpop.eup %2652  ;;  %v4668_v41 = vsub.f32 %v4520_v40, %v1531_v21  ;;  %v1553_v50 = vmul.f32 0.6931472, %v2641_v18  ;;  %2672 = vlog2.f32 %v4544_v22  ;;  %v4672_v2 = vadd.f32 3.5, %v4568_v9  ;;  %5350 = vst [vmem:[#allocation17_spill] sm:$0xff] %v4680_v55  ;;  %v4686_v22 = vld [vmem:[%s3200_s5 + $0x78] sm:$0xff] }
 0x1a7   : > { %v4674_v61 = vpop.eup %2654  ;;  %v1555_v33 = vmul.f32 0.6931472, %v2643_v54  ;;  %v1662_v34 = vmul.f32 %v1658_v45, %v1654_v30  ;;  %v1663_v38 = vmul.f32 %v1659_v10, %v1655_v51  ;;  %v1674_v6 = vmul.f32 %v4653_v44, %v4653_v44  ;;  %5351 = vst [vmem:[#allocation44_spill] sm:$0xff] %v4686_v22 }
 0x1a8   : > { %v2657_v40 = vpop.eup %2656  ;;  %v1557_v39 = vmul.f32 0.6931472, %v2645_v26  ;;  %2674 = vlog2.f32 %v4548_v13  ;;  %v1675_v57 = vmul.f32 %v4661_v63, %v4661_v63  ;;  %v1699_v43 = vadd.f32 3.5, %v4571_v25 }
 0x1a9   : > { %v2659_v14 = vpop.eup %2658  ;;  %v1664_v18 = vmul.f32 %v1660_v4, %v1656_v36  ;;  %v1665_v3 = vmul.f32 %v1661_v24, %v1657_v46  ;;  %v1676_v47 = vmul.f32 %v4665_v56, %v4665_v56  ;;  %v1700_v54 = vadd.f32 3.5, %v4582_v32 }
 0x1aa   : > { %v2661_v21 = vpop.eup %2660  ;;  %v1560_v17 = vmul.f32 %v1553_v50, %v4492_v58  ;;  %v1677_v13 = vmul.f32 %v4674_v61, %v4674_v61  ;;  %v4698_v53 = vadd.f32 1.0, %v4677_v23  ;;  %v4701_v26 = vadd.f32 1.0, %v4680_v55 }
 0x1ab   : > { %v2663_v30 = vpop.eup %2662  ;;  %v1559_v51 = vmul.f32 0.6931472, %v2647_v48  ;;  %v1561_v45 = vmul.f32 %v1555_v33, %v4524_v20  ;;  %v1678_v10 = vmul.f32 0.0007936508, %v1674_v6  ;;  %v4705_v36 = vadd.f32 1.0, %v4686_v22 }
 0x1ac   : > { %v2665_v46 = vpop.eup %2664  ;;  %v1562_v58 = vmul.f32 %v1557_v39, %v4530_v60  ;;  %v1679_v4 = vmul.f32 0.0007936508, %v1675_v57  ;;  %v1701_v24 = vadd.f32 3.5, %v4587_v12  ;;  %v4710_v50 = vadd.f32 1.0, %v4621_v49 }
 0x1ad   : > { %v2667_v16 = vpop.eup %2666  ;;  %v1680_v19 = vmul.f32 0.0007936508, %v1676_v47  ;;  %v4713_v42 = vadd.f32 1.0, %v4698_v53  ;;  %v4716_v20 = vadd.f32 1.0, %v4701_v26  ;;  %v4719_v48 = vadd.f32 1.0, %v4705_v36 }
 0x1ae   : > { %v2669_v33 = vpop.eup %2668  ;;  %v4722_v60 = vadd.f32 %v1560_v17, %v4635_v52  ;;  %v4724_v39 = vmul.f32 0.6931472, %v2657_v40  ;;  %v1681_v29 = vmul.f32 0.0007936508, %v1677_v13  ;;  %v4727_v0 = vadd.f32 2.0, %v4621_v49 }
 0x1af   : > { %5352 = vst [vmem:[#allocation36_spill] sm:$0xff] %v4713_v42  ;;  %5353 = vst [vmem:[#allocation40_spill] sm:$0xff] %v4716_v20  ;;  %v2671_v27 = vpop.eup %2670  ;;  %v1563_v1 = vmul.f32 %v1559_v51, %v4534_v11  ;;  %v4731_v5 = vadd.f32 %v1561_v45, %v4644_v8  ;;  %v1682_v22 = vadd.f32 -0.0027777778, %v1678_v10  ;;  %v1703_v12 = vmul.f32 0.6931472, %v2665_v46 }
 0x1b0   : > { %5354 = vst [vmem:[#allocation45_spill] sm:$0xff] %v4719_v48  ;;  %v2673_v55 = vpop.eup %2672  ;;  %v4734_v32 = vadd.f32 %v1562_v58, %v4647_v37  ;;  %v4736_v52 = vmul.f32 0.6931472, %v2659_v14  ;;  %v1581_v40 = vmul.f32 0.6931472, %v2661_v21  ;;  %2676 = vlog2.f32 %v1662_v34  ;;  %v2773_v58 = vld [vmem:[%s3200_s5 + $0x48] sm:$0xff] }
 0x1b1   : > { %5355 = vst [vmem:[#allocation38_spill] sm:$0xff] %v4731_v5  ;;  %v1683_v17 = vadd.f32 -0.0027777778, %v1679_v4  ;;  %v1684_v23 = vadd.f32 -0.0027777778, %v1680_v19  ;;  %2678 = vlog2.f32 %v1663_v38  ;;  %v4739_v8 = vadd.f32 2.0, %v4698_v53 }
 0x1b2   : > { %5356 = vst [vmem:[#allocation41_spill] sm:$0xff] %v4734_v32  ;;  %5357 = vst [vmem:[#allocation34_spill] sm:$0xff] %v4736_v52  ;;  %v1705_v25 = vmul.f32 0.6931472, %v2667_v16  ;;  %v1707_v48 = vmul.f32 0.6931472, %v2669_v33  ;;  %v2675_v20 = vpop.eup %2674  ;;  %v4742_v51 = vadd.f32 %v1563_v1, %v4668_v41  ;;  %v1686_v37 = vmul.f32 %v1682_v22, %v1674_v6 }
 0x1b3   : > { %v1685_v42 = vadd.f32 -0.0027777778, %v1681_v29  ;;  %v1709_v11 = vmul.f32 0.6931472, %v2671_v27  ;;  %v1710_v14 = vmul.f32 %v1703_v12, %v4672_v2  ;;  %2680 = vlog2.f32 %v1664_v18 }
 0x1b4   : > { %5358 = vst [vmem:[#allocation35_spill] sm:$0xff] %v4742_v51  ;;  %v1583_v21 = vmul.f32 0.6931472, %v2663_v30  ;;  %v1687_v45 = vmul.f32 %v1683_v17, %v1675_v57  ;;  %2682 = vlog2.f32 %v1665_v3  ;;  %v4746_v19 = vadd.f32 2.0, %v4701_v26 }
 0x1b5   : > { %v1688_v16 = vmul.f32 %v1684_v23, %v1676_v47  ;;  %v1711_v29 = vmul.f32 %v1705_v25, %v1699_v43  ;;  %v1712_v27 = vmul.f32 %v1707_v48, %v1700_v54  ;;  %v4749_v34 = vadd.f32 4.0, %v4621_v49  ;;  %v2772_v54 = vld [vmem:[%s3200_s5 + $0x40] sm:$0xff] }
 0x1b6   : > { %v1585_v38 = vmul.f32 0.6931472, %v2673_v55  ;;  %v1689_v10 = vmul.f32 %v1685_v42, %v1677_v13  ;;  %v1713_v1 = vmul.f32 %v1709_v11, %v1701_v24  ;;  %v4752_v41 = vadd.f32 4.0, %v4698_v53 }
 0x1b7   : > { %v1588_v12 = vsub.f32 %v4655_v15, %v1581_v40  ;;  %v1690_v2 = vadd.f32 0.083333336, %v1686_v37  ;;  %v1714_v6 = vsub.f32 %v1710_v14, %v4595_v59  ;;  %v4757_v22 = vadd.f32 2.0, %v4705_v36  ;;  %v2774_v37 = vld [vmem:[%s3200_s5 + $0x50] sm:$0xff] }
 0x1b8   : > { %v4759_v25 = vmul.f32 0.6931472, %v2675_v20  ;;  %v1589_v23 = vsub.f32 %v4657_v7, %v1583_v21  ;;  %v1691_v57 = vadd.f32 0.083333336, %v1687_v45  ;;  %v4763_v42 = vadd.f32 4.0, %v4701_v26 }
 0x1b9   : > { %v1692_v55 = vadd.f32 0.083333336, %v1688_v16  ;;  %v1715_v43 = vsub.f32 %v1711_v29, %v4601_v31  ;;  %v1716_v15 = vsub.f32 %v1712_v27, %v4608_v62  ;;  %2684 = vrcp.f32 %v4749_v34 }
 0x1ba   : > { %5359 = vst [vmem:[#allocation19_spill] sm:$0xff] %v4759_v25  ;;  %v1693_v59 = vadd.f32 0.083333336, %v1689_v10  ;;  %v1717_v18 = vsub.f32 %v1713_v1, %v4612_v28  ;;  %v4770_v3 = vadd.f32 4.0, %v4705_v36  ;;  %2686 = vrcp.f32 %v4752_v41  ;;  %v2677_v7 = vpop.eup %2676 }
 0x1bb   : > { %v1590_v47 = vsub.f32 %v4724_v39, %v1585_v38  ;;  %v1592_v13 = vmul.f32 %v2772_v54, %v1588_v12  ;;  %v1694_v30 = vmul.f32 %v4653_v44, %v1690_v2  ;;  %v1718_v31 = vadd.f32 0.9189385, %v1714_v6  ;;  %v2679_v46 = vpop.eup %2678 }
 0x1bc   : > { %v4779_v28 = vmul.f32 %v2773_v58, %v1589_v23  ;;  %v1750_v4 = vadd.f32 3.0, %v4621_v49  ;;  %2688 = vrcp.f32 %v4763_v42  ;;  %v1695_v20 = vmul.f32 %v4661_v63, %v1691_v57  ;;  %v5369_v57 = vld [vmem:[#allocation36_spill] sm:$0xff]  ;;  %v5372_v58 = vld [vmem:[#allocation30_spill] sm:$0xff] }
 0x1bd   : > { %v2681_v24 = vpop.eup %2680  ;;  %v1696_v48 = vmul.f32 %v4665_v56, %v1692_v55  ;;  %v1719_v33 = vadd.f32 0.9189385, %v1715_v43  ;;  %v1720_v44 = vadd.f32 0.9189385, %v1716_v15  ;;  %v1697_v40 = vmul.f32 %v4674_v61, %v1693_v59  ;;  %v5370_v59 = vld [vmem:[#allocation40_spill] sm:$0xff] }
 0x1be   : > { %5360 = vst [vmem:[#allocation16_spill] sm:$0xff] %v4779_v28  ;;  %v2683_v39 = vpop.eup %2682  ;;  %v1721_v17 = vadd.f32 0.9189385, %v1717_v18  ;;  %v1751_v11 = vadd.f32 3.0, %v4698_v53  ;;  %2690 = vrcp.f32 %v4770_v3  ;;  %v4789_v14 = vmul.f32 %v2774_v37, %v1590_v47  ;;  %v5371_v47 = vld [vmem:[#allocation45_spill] sm:$0xff] }
 0x1bf   : > { %v4792_v21 = vadd.f32 %v1592_v13, %v4722_v60  ;;  %v4794_v45 = vadd.f32 %v1718_v31, %v1694_v30  ;;  %v4796_v63 = vmul.f32 0.6931472, %v2677_v7  ;;  %v4798_v56 = vmul.f32 0.6931472, %v2679_v46 }
 0x1c0   : > { %5361 = vst [vmem:[#allocation18_spill] sm:$0xff] %v4789_v14  ;;  %v4800_v16 = vmul.f32 0.6931472, %v2681_v24  ;;  %v1752_v61 = vadd.f32 3.0, %v4701_v26  ;;  %v4805_v29 = vadd.f32 %v4604_v35, %v4568_v9  ;;  %v4807_v27 = vadd.f32 %v1719_v33, %v1695_v20  ;;  %v5374_v33 = vld [vmem:[#allocation47_spill] sm:$0xff] }
 0x1c1   : > { %5362 = vst [vmem:[#allocation31_spill] sm:$0xff] %v4792_v21  ;;  %5363 = vst [vmem:[#allocation42_spill] sm:$0xff] %v4794_v45  ;;  %v4809_v38 = vadd.f32 %v1720_v44, %v1696_v48  ;;  %v1753_v60 = vadd.f32 3.0, %v4705_v36  ;;  %2692 = vlog2.f32 %v4749_v34  ;;  %v4813_v10 = vadd.f32 %v1721_v17, %v1697_v40 }
 0x1c2   : > { %5364 = vst [vmem:[#allocation43_spill] sm:$0xff] %v4796_v63  ;;  %5365 = vst [vmem:[#allocation48_spill] sm:$0xff] %v4798_v56  ;;  %v4815_v1 = vmul.f32 0.6931472, %v2683_v39  ;;  %v1758_v12 = vmul.f32 %v4710_v50, %v4621_v49  ;;  %v1762_v2 = vmul.f32 %v1750_v4, %v4727_v0  ;;  %v1759_v55 = vmul.f32 %v5369_v57, %v4698_v53  ;;  %v5373_v4 = vld [vmem:[#allocation46_spill] sm:$0xff] }
 0x1c3   : > { %5366 = vst [vmem:[#allocation49_spill] sm:$0xff] %v4800_v16  ;;  %5367 = vst [vmem:[#allocation50_spill] sm:$0xff] %v4807_v27  ;;  %v4820_v6 = vpop.eup %2684  ;;  %v1763_v43 = vmul.f32 %v1751_v11, %v4739_v8  ;;  %2694 = vlog2.f32 %v4752_v41  ;;  %v1760_v18 = vmul.f32 %v5370_v59, %v4701_v26  ;;  %v1764_v50 = vmul.f32 %v1752_v61, %v4746_v19  ;;  %v5377_v11 = vld [vmem:[#allocation44_spill] sm:$0xff] }
 0x1c4   : > { %5368 = vst [vmem:[#allocation51_spill] sm:$0xff] %v4809_v38  ;;  %v4828_v15 = vpop.eup %2686  ;;  %2696 = vlog2.f32 %v4763_v42  ;;  %v4835_v0 = vadd.f32 4.0, %v4805_v29  ;;  %v1761_v54 = vmul.f32 %v5371_v47, %v4705_v36  ;;  %v1765_v13 = vmul.f32 %v1753_v60, %v4757_v22  ;;  %v5375_v22 = vld [vmem:[#allocation17_spill] sm:$0xff] }
 0x1c5   : > { %v1766_v31 = vmul.f32 %v1762_v2, %v1758_v12  ;;  %v1778_v19 = vmul.f32 %v4820_v6, %v4820_v6  ;;  %v1802_v46 = vadd.f32 3.5, %v4621_v49  ;;  %v4851_v24 = vadd.f32 %v5373_v4, %v5372_v58  ;;  %v5376_v49 = vld [vmem:[#allocation29_spill] sm:$0xff] }
 0x1c6   : > { %v4844_v30 = vpop.eup %2688  ;;  %v1767_v20 = vmul.f32 %v1763_v43, %v1759_v55  ;;  %v1779_v48 = vmul.f32 %v4828_v15, %v4828_v15  ;;  %2698 = vlog2.f32 %v4770_v3  ;;  %v4858_v44 = vadd.f32 %v5375_v22, %v5374_v33 }
 0x1c7   : > { %v1768_v40 = vmul.f32 %v1764_v50, %v1760_v18  ;;  %v1803_v17 = vadd.f32 3.5, %v4698_v53  ;;  %v4865_v37 = vadd.f32 %v5377_v11, %v5376_v49  ;;  %2700 = vrcp.f32 %v4835_v0 }
 0x1c8   : > { %v4860_v39 = vpop.eup %2690  ;;  %v1769_v61 = vmul.f32 %v1765_v13, %v1761_v54  ;;  %v1780_v60 = vmul.f32 %v4844_v30, %v4844_v30  ;;  %v1804_v12 = vadd.f32 3.5, %v4701_v26  ;;  %v4872_v2 = vadd.f32 3.5, %v4705_v36 }
 0x1c9   : > { %v1782_v57 = vmul.f32 0.0007936508, %v1778_v19  ;;  %v1850_v55 = vadd.f32 1.0, %v4805_v29  ;;  %v1851_v53 = vadd.f32 1.0, %v4851_v24  ;;  %v4877_v43 = vadd.f32 4.0, %v4851_v24 }
 0x1ca   : > { %v1781_v18 = vmul.f32 %v4860_v39, %v4860_v39  ;;  %v1783_v50 = vmul.f32 0.0007936508, %v1779_v48  ;;  %v1854_v47 = vadd.f32 2.0, %v4805_v29  ;;  %v4883_v26 = vadd.f32 4.0, %v4858_v44 }
 0x1cb   : > { %v2693_v59 = vpop.eup %2692  ;;  %2702 = vlog2.f32 %v1766_v31  ;;  %v1852_v36 = vadd.f32 1.0, %v4858_v44  ;;  %v1853_v54 = vadd.f32 1.0, %v4865_v37  ;;  %v4888_v13 = vadd.f32 4.0, %v4865_v37 }
 0x1cc   : > { %v1784_v8 = vmul.f32 0.0007936508, %v1780_v60  ;;  %2704 = vlog2.f32 %v1767_v20  ;;  %v1855_v7 = vadd.f32 2.0, %v4851_v24  ;;  %v1856_v23 = vadd.f32 2.0, %v4858_v44 }
 0x1cd   : > { %v2695_v62 = vpop.eup %2694  ;;  %v1786_v21 = vadd.f32 -0.0027777778, %v1782_v57  ;;  %v1807_v14 = vmul.f32 0.6931472, %v2693_v59  ;;  %v1857_v32 = vadd.f32 2.0, %v4865_v37  ;;  %2706 = vrcp.f32 %v4877_v43 }
 0x1ce   : > { %v2697_v51 = vpop.eup %2696  ;;  %v1785_v31 = vmul.f32 0.0007936508, %v1781_v18  ;;  %v1787_v28 = vadd.f32 -0.0027777778, %v1783_v50  ;;  %v1858_v5 = vadd.f32 3.0, %v4805_v29  ;;  %2708 = vrcp.f32 %v4883_v26 }
 0x1cf   : > { %v1809_v25 = vmul.f32 0.6931472, %v2695_v62  ;;  %v1859_v20 = vadd.f32 3.0, %v4851_v24  ;;  %v1860_v52 = vadd.f32 3.0, %v4858_v44  ;;  %2710 = vrcp.f32 %v4888_v13 }
 0x1d0   : > { %v2699_v11 = vpop.eup %2698  ;;  %v1788_v57 = vadd.f32 -0.0027777778, %v1784_v8  ;;  %v1811_v59 = vmul.f32 0.6931472, %v2697_v51  ;;  %2712 = vlog2.f32 %v1768_v40  ;;  %v1861_v22 = vadd.f32 3.0, %v4865_v37 }
 0x1d1   : > { %v4900_v16 = vpop.eup %2700  ;;  %v1790_v50 = vmul.f32 %v1786_v21, %v1778_v19  ;;  %v1814_v38 = vmul.f32 %v1807_v14, %v1802_v46  ;;  %v1866_v4 = vmul.f32 %v1850_v55, %v4805_v29  ;;  %v1867_v62 = vmul.f32 %v1851_v53, %v4851_v24 }
 0x1d2   : > { %v1789_v56 = vadd.f32 -0.0027777778, %v1785_v31  ;;  %v1791_v27 = vmul.f32 %v1787_v28, %v1779_v48  ;;  %2714 = vlog2.f32 %v1769_v61  ;;  %v1868_v35 = vmul.f32 %v1852_v36, %v4858_v44 }
 0x1d3   : > { %v1813_v63 = vmul.f32 0.6931472, %v2699_v11  ;;  %v1815_v45 = vmul.f32 %v1809_v25, %v1803_v17  ;;  %v1870_v8 = vmul.f32 %v1858_v5, %v1854_v47  ;;  %2716 = vlog2.f32 %v4835_v0 }
 0x1d4   : > { %v1792_v51 = vmul.f32 %v1788_v57, %v1780_v60  ;;  %v1816_v40 = vmul.f32 %v1811_v59, %v1804_v12  ;;  %v1886_v21 = vmul.f32 %v4900_v16, %v4900_v16  ;;  %2718 = vlog2.f32 %v4877_v43 }
 0x1d5   : > { %v2703_v14 = vpop.eup %2702  ;;  %v1794_v19 = vadd.f32 0.083333336, %v1790_v50  ;;  %v1818_v46 = vsub.f32 %v1814_v38, %v4749_v34  ;;  %v1869_v28 = vmul.f32 %v1853_v54, %v4865_v37  ;;  %2720 = vlog2.f32 %v4883_v26 }
 0x1d6   : > { %v2705_v48 = vpop.eup %2704  ;;  %v1793_v25 = vmul.f32 %v1789_v56, %v1781_v18  ;;  %v1795_v5 = vadd.f32 0.083333336, %v1791_v27  ;;  %v1871_v17 = vmul.f32 %v1859_v20, %v1855_v7  ;;  %2722 = vlog2.f32 %v4888_v13 }
 0x1d7   : > { %v4913_v11 = vpop.eup %2706  ;;  %v1817_v61 = vmul.f32 %v1813_v63, %v4872_v2  ;;  %v1819_v60 = vsub.f32 %v1815_v45, %v4752_v41  ;;  %v1872_v12 = vmul.f32 %v1860_v52, %v1856_v23  ;;  %v1873_v55 = vmul.f32 %v1861_v22, %v1857_v32 }
 0x1d8   : > { %v4917_v53 = vpop.eup %2708  ;;  %v1796_v34 = vadd.f32 0.083333336, %v1792_v51  ;;  %v1820_v38 = vsub.f32 %v1816_v40, %v4763_v42  ;;  %v1874_v47 = vmul.f32 %v1870_v8, %v1866_v4  ;;  %v1890_v36 = vmul.f32 0.0007936508, %v1886_v21 }
 0x1d9   : > { %v4920_v56 = vpop.eup %2710  ;;  %v1798_v27 = vmul.f32 %v4820_v6, %v1794_v19  ;;  %v1822_v7 = vadd.f32 0.9189385, %v1818_v46  ;;  %v1887_v18 = vmul.f32 %v4913_v11, %v4913_v11  ;;  %2724 = vrcp.f32 %v4568_v9 }
 0x1da   : > { %v2713_v41 = vpop.eup %2712  ;;  %v1797_v52 = vadd.f32 0.083333336, %v1793_v25  ;;  %v1799_v32 = vmul.f32 %v4828_v15, %v1795_v5  ;;  %v1888_v45 = vmul.f32 %v4917_v53, %v4917_v53  ;;  %2726 = vrcp.f32 %v5372_v58 }
 0x1db   : > { %v1821_v42 = vsub.f32 %v1817_v61, %v4770_v3  ;;  %v1823_v63 = vadd.f32 0.9189385, %v1819_v60  ;;  %v1889_v6 = vmul.f32 %v4920_v56, %v4920_v56  ;;  %2728 = vrcp.f32 %v5374_v33 }
 0x1dc   : > { %v4934_v23 = vpop.eup %2714  ;;  %v1800_v4 = vmul.f32 %v4844_v30, %v1796_v34  ;;  %v1824_v22 = vadd.f32 0.9189385, %v1820_v38  ;;  %v1894_v2 = vadd.f32 -0.0027777778, %v1890_v36  ;;  %2730 = vrcp.f32 %v5376_v49 }
 0x1dd   : > { %v2717_v15 = vpop.eup %2716  ;;  %v1875_v54 = vmul.f32 %v1871_v17, %v1867_v62  ;;  %v1876_v31 = vmul.f32 %v1872_v12, %v1868_v35  ;;  %v1877_v20 = vmul.f32 %v1873_v55, %v1869_v28  ;;  %v1891_v57 = vmul.f32 0.0007936508, %v1887_v18 }
 0x1de   : > { %v2719_v3 = vpop.eup %2718  ;;  %v4939_v59 = vmul.f32 %v4860_v39, %v1797_v52  ;;  %v4941_v50 = vadd.f32 %v1822_v7, %v1798_v27  ;;  %v4943_v8 = vmul.f32 0.6931472, %v2703_v14  ;;  %v1892_v51 = vmul.f32 0.0007936508, %v1888_v45 }
 0x1df   : > { %v2721_v40 = vpop.eup %2720  ;;  %v4945_v30 = vadd.f32 0.9189385, %v1821_v42  ;;  %v4947_v19 = vadd.f32 %v1823_v63, %v1799_v32  ;;  %v4949_v46 = vmul.f32 0.6931472, %v2705_v48  ;;  %v1893_v62 = vmul.f32 0.0007936508, %v1889_v6 }
 0x1e0   : > { %v2723_v35 = vpop.eup %2722  ;;  %v4951_v28 = vadd.f32 %v1824_v22, %v1800_v4  ;;  %v1898_v25 = vmul.f32 %v1894_v2, %v1886_v21  ;;  %v1910_v39 = vadd.f32 3.5, %v4805_v29  ;;  %v1915_v5 = vmul.f32 0.6931472, %v2717_v15  ;;  %v5378_v32 = vld [vmem:[#allocation20_spill] sm:$0xff]  ;;  %v5379_v22 = vld [vmem:[#allocation21_spill] sm:$0xff] }
 0x1e1   : > { %v1895_v17 = vadd.f32 -0.0027777778, %v1891_v57  ;;  %v1911_v14 = vadd.f32 3.5, %v4851_v24  ;;  %v1917_v61 = vmul.f32 0.6931472, %v2719_v3  ;;  %2732 = vlog2.f32 %v1874_v47  ;;  %v5380_v2 = vld [vmem:[#allocation25_spill] sm:$0xff] }
 0x1e2   : > { %v1896_v60 = vadd.f32 -0.0027777778, %v1892_v51  ;;  %v1912_v12 = vadd.f32 3.5, %v4858_v44  ;;  %v1919_v55 = vmul.f32 0.6931472, %v2721_v40  ;;  %2734 = vlog2.f32 %v1875_v54 }
 0x1e3   : > { %v2725_v48 = vpop.eup %2724  ;;  %v1897_v34 = vadd.f32 -0.0027777778, %v1893_v62  ;;  %v1913_v38 = vadd.f32 3.5, %v4865_v37  ;;  %v1921_v36 = vmul.f32 0.6931472, %v2723_v35  ;;  %2736 = vlog2.f32 %v1876_v31  ;;  %v5381_v31 = vld [vmem:[#allocation39_spill] sm:$0xff] }
 0x1e4   : > { %v2727_v21 = vpop.eup %2726  ;;  %v4957_v27 = vmul.f32 0.6931472, %v2713_v41  ;;  %v1902_v29 = vadd.f32 0.083333336, %v1898_v25  ;;  %v1922_v7 = vmul.f32 %v1915_v5, %v1910_v39  ;;  %2738 = vlog2.f32 %v1877_v20 }
 0x1e5   : > { %v2729_v24 = vpop.eup %2728  ;;  %v1899_v52 = vmul.f32 %v1895_v17, %v1887_v18  ;;  %v1923_v47 = vmul.f32 %v1917_v61, %v1911_v14  ;;  %v1959_v42 = vmul.f32 %v2725_v48, %v5378_v32  ;;  %2740 = vlog2.f32 %v4568_v9 }
 0x1e6   : > { %v2731_v44 = vpop.eup %2730  ;;  %v1900_v63 = vmul.f32 %v1896_v60, %v1888_v45  ;;  %v1924_v4 = vmul.f32 %v1919_v55, %v1912_v12  ;;  %v1961_v37 = vmul.f32 %v2727_v21, %v5379_v22  ;;  %v1963_v15 = vmul.f32 %v2729_v24, %v5380_v2 }
 0x1e7   : > { %v1901_v54 = vmul.f32 %v1897_v34, %v1889_v6  ;;  %v1925_v41 = vmul.f32 %v1921_v36, %v1913_v38  ;;  %v1965_v57 = vmul.f32 %v2731_v44, %v5381_v31  ;;  %v1966_v3 = vadd.f32 1.0, %v1959_v42 }
 0x1e8   : > { %v1926_v20 = vsub.f32 %v1922_v7, %v4835_v0  ;;  %v1967_v18 = vadd.f32 1.0, %v1961_v37  ;;  %v1968_v51 = vadd.f32 1.0, %v1963_v15  ;;  %2742 = vlog2.f32 %v5372_v58  ;;  %v5388_v15 = vld [vmem:[#allocation48_spill] sm:$0xff] }
 0x1e9   : > { %v1903_v40 = vadd.f32 0.083333336, %v1899_v52  ;;  %v1927_v9 = vsub.f32 %v1923_v47, %v4877_v43  ;;  %v1969_v45 = vadd.f32 1.0, %v1965_v57  ;;  %2744 = vlog2.f32 %v1966_v3 }
 0x1ea   : > { %v4968_v62 = vmul.f32 0.6931472, %v4934_v23  ;;  %v1904_v35 = vadd.f32 0.083333336, %v1900_v63  ;;  %v1928_v6 = vsub.f32 %v1924_v4, %v4883_v26  ;;  %2746 = vlog2.f32 %v1967_v18  ;;  %v5385_v4 = vld [vmem:[#allocation37_spill] sm:$0xff]  ;;  %v5392_v18 = vld [vmem:[#allocation51_spill] sm:$0xff] }
 0x1eb   : > { %v2733_v25 = vpop.eup %2732  ;;  %v1905_v39 = vadd.f32 0.083333336, %v1901_v54  ;;  %v1929_v0 = vsub.f32 %v1925_v41, %v4888_v13  ;;  %2748 = vlog2.f32 %v1968_v51  ;;  %v1994_v5 = vadd.f32 1e-10, %v5378_v32  ;;  %v5390_v41 = vld [vmem:[#allocation46_spill] sm:$0xff]  ;;  %v5393_v51 = vld [vmem:[#allocation49_spill] sm:$0xff] }
 0x1ec   : > { %v2735_v58 = vpop.eup %2734  ;;  %v1906_v17 = vmul.f32 %v4900_v16, %v1902_v29  ;;  %v1930_v43 = vadd.f32 0.9189385, %v1926_v20  ;;  %2750 = vlog2.f32 %v1969_v45  ;;  %v1995_v14 = vadd.f32 1e-10, %v5379_v22  ;;  %v5386_v22 = vld [vmem:[#allocation33_spill] sm:$0xff] }
 0x1ed   : > { %v2737_v23 = vpop.eup %2736  ;;  %v1907_v61 = vmul.f32 %v4913_v11, %v1903_v40  ;;  %v1931_v60 = vadd.f32 0.9189385, %v1927_v9  ;;  %2752 = vlog2.f32 %v5374_v33  ;;  %v1996_v26 = vadd.f32 1e-10, %v5380_v2  ;;  %v5387_v2 = vld [vmem:[#allocation50_spill] sm:$0xff] }
 0x1ee   : > { %v2739_v12 = vpop.eup %2738  ;;  %v1908_v13 = vmul.f32 %v4917_v53, %v1904_v35  ;;  %v1932_v55 = vadd.f32 0.9189385, %v1928_v6  ;;  %2754 = vlog2.f32 %v5376_v49  ;;  %v1997_v16 = vadd.f32 1e-10, %v5381_v31  ;;  %v5391_v31 = vld [vmem:[#allocation23_spill] sm:$0xff]  ;;  %v5396_v35 = vld [vmem:[#allocation28_spill] sm:$0xff] }
 0x1ef   : > { %v2741_v48 = vpop.eup %2740  ;;  %v1829_v34 = vadd.f32 %v4945_v30, %v4939_v59  ;;  %v1909_v38 = vmul.f32 %v4920_v56, %v1905_v39  ;;  %v1933_v11 = vadd.f32 0.9189385, %v1929_v0  ;;  %2756 = vlog2.f32 %v1994_v5 }
 0x1f0   : > { %v1838_v33 = vsub.f32 %v4941_v50, %v4943_v8  ;;  %v1934_v36 = vadd.f32 %v1930_v43, %v1906_v17  ;;  %v1939_v21 = vmul.f32 0.6931472, %v2733_v25  ;;  %2758 = vlog2.f32 %v1995_v14  ;;  %v5398_v17 = vld [vmem:[#allocation24_spill] sm:$0xff] }
 0x1f1   : > { %v1839_v53 = vsub.f32 %v4947_v19, %v4949_v46  ;;  %v1935_v49 = vadd.f32 %v1931_v60, %v1907_v61  ;;  %v1941_v29 = vmul.f32 0.6931472, %v2735_v58  ;;  %2760 = vlog2.f32 %v1996_v26  ;;  %v5382_v19 = vld [vmem:[#allocation42_spill] sm:$0xff]  ;;  %v5383_v46 = vld [vmem:[#allocation43_spill] sm:$0xff]  ;;  %v5397_v58 = vld [vmem:[#allocation44_spill] sm:$0xff] }
 0x1f2   : > { %v2743_v7 = vpop.eup %2742  ;;  %v1840_v59 = vsub.f32 %v4951_v28, %v4957_v27  ;;  %v1936_v30 = vadd.f32 %v1932_v55, %v1908_v13  ;;  %v1943_v56 = vmul.f32 0.6931472, %v2737_v23  ;;  %2762 = vlog2.f32 %v1997_v16  ;;  %v2775_v61 = vld [vmem:[%s3200_s5 + $0x58] sm:$0xff]  ;;  %v5399_v60 = vld [vmem:[#allocation34_spill] sm:$0xff]  ;;  %s2872_s5 = scalar_lea.vmem %s2871_s26, 1024 }
 0x1f3   : > { %v2745_v24 = vpop.eup %2744  ;;  %v1737_v50 = vsub.f32 %v4813_v10, %v4815_v1  ;;  %v1841_v8 = vsub.f32 %v1829_v34, %v4968_v62  ;;  %v1937_v52 = vadd.f32 %v1933_v11, %v1909_v38  ;;  %v1945_v47 = vmul.f32 0.6931472, %v2739_v12  ;;  %v5395_v62 = vld [vmem:[#allocation17_spill] sm:$0xff]  ;;  %v5400_v26 = vld [vmem:[#allocation19_spill] sm:$0xff]  ;;  %v5402_v11 = vld [vmem:[#allocation38_spill] sm:$0xff]  ;;  %p2874_p6 = scmp.lt.s32.totalorder %s2872_s5, %s2866_s10 }
 0x1f4   : > { %v2747_v32 = vpop.eup %2746  ;;  %v5384_v42 = vsub.f32 %v5382_v19, %v5383_v46  ;;  %v1946_v63 = vsub.f32 %v1934_v36, %v1939_v21  ;;  %v1954_v28 = vadd.f32 %v5386_v22, %v5385_v4  ;;  %v1971_v27 = vmul.f32 0.6931472, %v2745_v24  ;;  %v5405_v46 = vld [vmem:[#allocation18_spill] sm:$0xff] }
 0x1f5   : > { %v2749_v37 = vpop.eup %2748  ;;  %v5389_v54 = vsub.f32 %v5387_v2, %v5388_v15  ;;  %v1947_v1 = vsub.f32 %v1935_v49, %v1941_v29  ;;  %v1955_v57 = vadd.f32 %v5391_v31, %v5390_v41  ;;  %v1973_v3 = vmul.f32 0.6931472, %v2747_v32  ;;  %p2875_p13 = por %p2874_p6, %p2873_p1 }
 0x1f6   : > { %v1842_v44 = vadd.f32 %v1838_v33, %v5384_v42  ;;  %v2751_v20 = vpop.eup %2750  ;;  %v5394_v40 = vsub.f32 %v5392_v18, %v5393_v51  ;;  %v1948_v45 = vsub.f32 %v1936_v30, %v1943_v56  ;;  %v1956_v6 = vadd.f32 %v5396_v35, %v5395_v62  ;;  %v5403_v33 = vld [vmem:[#allocation16_spill] sm:$0xff] }
 0x1f7   : > { %v1843_v10 = vadd.f32 %v1839_v53, %v5389_v54  ;;  %v1975_v25 = vmul.f32 0.6931472, %v2749_v37  ;;  %v2753_v39 = vpop.eup %2752  ;;  %v1845_v0 = vadd.f32 %v1841_v8, %v1737_v50  ;;  %v1949_v5 = vsub.f32 %v1937_v52, %v1945_v47  ;;  %v5408_v54 = vld [vmem:[#allocation35_spill] sm:$0xff]  ;;  %p2876_p11 = pnand %p2875_p13, %p2869_p12 }
 0x1f8   : > { %v1844_v9 = vadd.f32 %v1840_v59, %v5394_v40  ;;  %v1957_v43 = vadd.f32 %v5398_v17, %v5397_v58  ;;  %v1977_v14 = vmul.f32 0.6931472, %v2751_v20  ;;  %v2755_v23 = vpop.eup %2754  ;;  %v5401_v12 = vsub.f32 %v5399_v60, %v5400_v26 }
 0x1f9   : > { %v1950_v55 = vsub.f32 %v1842_v44, %v1946_v63  ;;  %v1978_v16 = vmul.f32 %v1971_v27, %v1954_v28  ;;  %v1987_v34 = vmul.f32 0.6931472, %v2741_v48  ;;  %v2757_v38 = vpop.eup %2756  ;;  %v1597_v36 = vadd.f32 %v5403_v33, %v5402_v11  ;;  %v5404_v48 = vld [vmem:[#allocation41_spill] sm:$0xff]  ;;  %v5406_v28 = vld [vmem:[#allocation26_spill] sm:$0xff] }
 0x1fa   : > { %v1595_v13 = vmul.f32 %v2775_v61, %v5401_v12  ;;  %v1951_v21 = vsub.f32 %v1843_v10, %v1947_v1  ;;  %v1979_v53 = vmul.f32 %v1973_v3, %v1955_v57  ;;  %v1989_v49 = vmul.f32 0.6931472, %v2743_v7  ;;  %v2759_v29 = vpop.eup %2758  ;;  %v5407_v7 = vld [vmem:[#allocation31_spill] sm:$0xff] }
 0x1fb   : > { %v1952_v59 = vsub.f32 %v1844_v9, %v1948_v45  ;;  %v1980_v30 = vmul.f32 %v1975_v25, %v1956_v6  ;;  %v1991_v56 = vmul.f32 0.6931472, %v2753_v39  ;;  %v1999_v24 = vmul.f32 0.6931472, %v2757_v38  ;;  %v2761_v50 = vpop.eup %2760  ;;  %v5409_v3 = vld [vmem:[#allocation27_spill] sm:$0xff]  ;;  %v5410_v9 = vld [vmem:[#allocation32_spill] sm:$0xff] }
 0x1fc   : > { %v1953_v8 = vsub.f32 %v1845_v0, %v1949_v5  ;;  %v1981_v52 = vmul.f32 %v1977_v14, %v1957_v43  ;;  %v1993_v47 = vmul.f32 0.6931472, %v2755_v23  ;;  %v2001_v32 = vmul.f32 0.6931472, %v2759_v29  ;;  %v2763_v19 = vpop.eup %2762  ;;  %v5411_v25 = vld [vmem:[#allocation22_spill] sm:$0xff] }
 0x1fd   : > { %v1598_v42 = vadd.f32 %v5405_v46, %v5404_v48  ;;  %v1982_v44 = vadd.f32 %v1978_v16, %v1950_v55  ;;  %v2003_v63 = vmul.f32 0.6931472, %v2761_v50  ;;  %v2006_v22 = vsub.f32 %v1987_v34, %v1999_v24 }
 0x1fe   : > { %v1600_v27 = vadd.f32 %v5407_v7, %v5406_v28  ;;  %v1983_v37 = vadd.f32 %v1979_v53, %v1951_v21  ;;  %v2005_v2 = vmul.f32 0.6931472, %v2763_v19  ;;  %v2007_v15 = vsub.f32 %v1989_v49, %v2001_v32 }
 0x1ff   : > { %v1599_v10 = vadd.f32 %v1595_v13, %v5408_v54  ;;  %v1984_v1 = vadd.f32 %v1980_v30, %v1952_v59  ;;  %v2008_v31 = vsub.f32 %v1991_v56, %v2003_v63  ;;  %v2010_v57 = vmul.f32 %v5385_v4, %v2006_v22 }
 0x200   : > { %v1601_v20 = vadd.f32 %v1597_v36, %v5409_v3  ;;  %v1985_v18 = vadd.f32 %v1981_v52, %v1953_v8  ;;  %v2009_v51 = vsub.f32 %v1993_v47, %v2005_v2  ;;  %v2011_v40 = vmul.f32 %v5390_v41, %v2007_v15 }
 0x201   : > { %v1602_v45 = vadd.f32 %v1598_v42, %v5410_v9  ;;  %v2012_v35 = vmul.f32 %v5395_v62, %v2008_v31  ;;  %v2014_v6 = vadd.f32 %v2010_v57, %v1982_v44  ;;  %v1603_v39 = vadd.f32 %v1599_v10, %v5411_v25 }
 0x202   : > { %v2013_v0 = vmul.f32 %v5397_v58, %v2009_v51  ;;  %v2015_v5 = vadd.f32 %v2011_v40, %v1983_v37 }
 0x203   : > { %v2016_v17 = vadd.f32 %v2012_v35, %v1984_v1  ;;  %v2018_v43 = vadd.f32 %v2014_v6, %v1600_v27 }
 0x204   : > { %v2017_v4 = vadd.f32 %v2013_v0, %v1985_v18  ;;  %v2019_v14 = vadd.f32 %v2015_v5, %v1601_v20 }
 0x205   : > { %v2020_v41 = vadd.f32 %v2016_v17, %v1602_v45  ;;  %2022 = vst [vmem:[%s337_s12] sm:$0xff] %v2018_v43 }
 0x206   : > { %v2021_v23 = vadd.f32 %v2017_v4, %v1603_v39  ;;  %2023 = vst [vmem:[%s337_s12 + $0x8] sm:$0xff] %v2019_v14 }
 0x207   : > { %2024 = vst [vmem:[%s337_s12 + $0x10] sm:$0xff] %v2020_v41 }
 0x208   : > { %2025 = vst [vmem:[%s337_s12 + $0x18] sm:$0xff] %v2021_v23 }
 0x209   : > { %2879 = shalt.err (!%p2876_p11)
}
 0x20a   : > { %s2880_s25 = scalar_lea.hbm %s5033_s6, 512  ;;  %s2884_s24 = scalar_lea.hbm %s5086_s4, 1024 }
 0x20b   : > { %p2881_p2 = scmp.ne.s32.totalorder %s5033_s6, %s2880_s25  ;;  %p2885_p4 = scmp.lt.u32.totalorder %s5033_s6, %s5086_s4 }
 0x20c   : > { %p2886_p3 = scmp.lt.u32.totalorder %s2884_s24, %s2880_s25  ;;  %p2888_p10 = scmp.lt.u32.totalorder %s2880_s25, %s5033_s6 }
 0x20d   : > { %p2882_p5 = pnand %p2881_p2, %p5412_p8 }
 0x20e   : > { %p2887_p0 = por %p2886_p3, %p2885_p4 }
 0x20f   : > { %p2883_p7 = pneg %p2882_p5 }
 0x210   : > { %p2889_p9 = por %p2888_p10, %p2887_p0 }
 0x212   : > { %p2890_p12 = pnand %p2889_p9, %p2883_p7 }
 0x214   : > { %2893 = shalt.err (!%p2890_p12)
}
 0x215   : > { %2277 = dma.vmem_to_hbm [thread:$0]  (%p5412_p8), %s5035_s20, 512, %s5033_s6, %s2027_s18  }
 0x216 PF: > { %s5413_s29 = sld [smem:[#allocation13_spill]]  ;;  %s2055_s9 = sand.u32 1, %s2932_s15  }
 0x217   : > { %p5414_p1 = scmp.ne.s32.totalorder %s5189_s30, 0  ;;  %s2056_s21 = scalar_lea.sflag [#allocation4], %s2055_s9 }
 0x21c   : > { %p5415_p6 = scmp.ge.s32.totalorder %s5413_s29, 2 }
 0x21e   : > { %p2290_p13 = pnand %p5415_p6, %p5414_p1 }
 0x220   : > { %2927 = dma.done.wait (!%p2290_p13), %s2056_s21, 512  }
 0x221   : > { %2929 = vsyncadd (!%p2290_p13), %s2056_s21, 4294966784  ;;  %s23_s20 = sadd.s32 1, %s5413_s29   ;;  %s5416_s28 = sld [smem:[#allocation15_spill]] }
 0x222   : > { %p20_p11 = scmp.ge.s32.totalorder %s23_s20, 4   ;;  %s5417_s18 = sld [smem:[#allocation12_spill]] }
 0x223   : > { %s5418_s19 = sld [smem:[#allocation14_spill]]  ;;  %s5419_s15 = smov %s2936_s16 }
 0x224   : > { %s5420_s16 = smov %s2940_s17  ;;  %22 = sbr.rel (!%p20_p11) target bundleno = 10 (0xa), region = 123 }
 0x227   : > { %s5421_s17 = smov %s5416_s28 }
 0x22b   :  { %2061 = vsyncpa [#allocation3], 1 }
 0x22c   :  { %2063 = vsyncpa [#allocation3 + $0x1], 1 }
 0x22d   :  { %2064 = vsyncpa [#allocation6], 1 }
 0x22e   :  { %2066 = vsyncpa [#allocation6 + $0x1], 1 }
 0x22f   :  { %2067 = vsyncpa [#allocation4], 1 }
 0x230   :  { %2069 = vsyncpa [#allocation4 + $0x1], 1 }

</bundles_post_ra>
